<compile_context>
chip_gen: v7x
topology: tpu7x:2x2x1
jax: 0.10.0
libtpu: 0.0.40
codegen_flags: <defaults>
</compile_context>

<pallas_src>
import functools
import math

import numpy as np
import jax
import jax.numpy as jnp
from jax.experimental import pallas as pl
from jax.experimental.pallas import tpu as pltpu

NEG_SLOPE = 0.01                       # nn.LeakyReLU default negative slope
_F32_MIN = float(np.finfo(np.float32).min)


def _leaky_relu(x):
    return jnp.where(x > 0, x, NEG_SLOPE * x)


def _tree_max(parts):
    """Pairwise (tree) max of a list of equal-shaped arrays."""
    parts = list(parts)
    while len(parts) > 1:
        nxt = [jnp.maximum(parts[i], parts[i + 1])
               for i in range(0, len(parts) - 1, 2)]
        if len(parts) % 2:
            nxt.append(parts[-1])
        parts = nxt
    return parts[0]


# ----------------------------------------------------------------------------
# Fused forward kernel (Bt batch elements per grid step, batch on lanes)
# ----------------------------------------------------------------------------
def _make_fused_kernel(Bt, F_pad, K1, Te, To, pad_odd, PK, Tp, K2, T2, pyr_cfg):
    """pyr_cfg: tuple of (bin_size, stride, kernel, window_positions)."""
    n_bins = len(pyr_cfg)
    J1 = K1 // 2          # stem taps per phase (15)
    JP = PK // 2          # pool taps per phase (5)

    def kernel(*refs):
        xe_ref, xo_ref, ws_ref, bs_ref, w2_ref, b2_ref = refs[:6]
        idx = 6
        branch_refs = []
        for _ in range(n_bins):
            branch_refs.append(refs[idx:idx + 6])
            idx += 6
        l1w_ref, l1b_ref, l2w_ref, l2b_ref = refs[idx:idx + 4]
        o_ref = refs[idx + 4]

        xe = xe_ref[0]                     # (F_pad, Le*Bt) bf16, even time steps
        xo = xo_ref[0]                     # (F_pad, Lo*Bt) bf16, odd time steps

        # ---- stem: folded depthwise+pointwise conv, computed directly at the
        #      even (y[2u]) and odd (y[2u+1]) output phases so the stride-2
        #      pool below needs only contiguous slices. One MXU matmul. ----
        even_rows, odd_rows = [], []
        for j in range(J1):
            even_rows.append(xe[:, j * Bt:(j + Te) * Bt])            # tap 2j
            even_rows.append(xo[:, j * Bt:(j + Te) * Bt])            # tap 2j+1
            odd_rows.append(xo[:, j * Bt:(j + To) * Bt])             # tap 2j
            odd_rows.append(xe[:, (j + 1) * Bt:(j + 1 + To) * Bt])   # tap 2j+1
        xcol = jnp.concatenate(
            [jnp.concatenate(even_rows, axis=0),
             jnp.concatenate(odd_rows, axis=0)], axis=1)   # (K1*F_pad, (Te+To)*Bt)
        y = jnp.dot(ws_ref[...], xcol,
                    preferred_element_type=jnp.float32) + bs_ref[...]
        y = _leaky_relu(y)                                  # (32, (Te+To)*Bt)
        y_e = y[:, :Te * Bt]                                # y[2u]
        y_o = y[:, Te * Bt:]                                # y[2u+1]
        if pad_odd:                                         # ceil_mode overhang
            y_o = jnp.concatenate(
                [y_o, jnp.full((32, pad_odd * Bt), _F32_MIN, jnp.float32)],
                axis=1)

        # ---- max_pool1d(kernel=PK, stride=2, ceil_mode=True) ----
        pooled = _tree_max(
            [y_e[:, j * Bt:(j + Tp) * Bt] for j in range(JP)]
            + [y_o[:, j * Bt:(j + Tp) * Bt] for j in range(JP)])   # (32, Tp*Bt)

        # ---- conv2_1D (32 -> 64, k=K2) + LeakyReLU, single im2col matmul ----
        pooled_b = pooled.astype(jnp.bfloat16)              # cast BEFORE slicing
        x2col = jnp.concatenate(
            [pooled_b[:, k * Bt:(k + T2) * Bt] for k in range(K2)], axis=0)
        c2 = jnp.dot(w2_ref[...], x2col,
                     preferred_element_type=jnp.float32) + b2_ref[...]
        c2 = _leaky_relu(c2)                                 # (64, T2*Bt)

        # ---- spatial pyramid branches ----
        feat_rows = []
        for (bin_size, s, ka, tma), (wc_ref, bc_ref, w1_ref, b1_ref,
                                     w2a_ref, b2a_ref) in zip(pyr_cfg, branch_refs):
            # adaptive max pool (uniform window, as in the module)
            ma = _tree_max([c2[:, k * Bt:(k + tma) * Bt] for k in range(ka)])
            ma_b = ma.astype(jnp.bfloat16)
            zblk = jnp.zeros((64, Bt), jnp.bfloat16)
            pp = jnp.concatenate(
                [zblk]
                + [ma_b[:, (s * t) * Bt:(s * t + 1) * Bt] for t in range(bin_size)]
                + [zblk], axis=1)                            # (64, (bin+2)*Bt)
            # Conv1d(64->4, k=3, pad=1) as one im2col matmul, then ReLU
            pcol = jnp.concatenate(
                [pp[:, k * Bt:(k + bin_size) * Bt] for k in range(3)], axis=0)
            conv = jnp.dot(wc_ref[...], pcol,
                           preferred_element_type=jnp.float32) + bc_ref[...]
            conv = jnp.maximum(conv, 0.0)                    # (4, bin*Bt)
            gap = jnp.mean(conv, axis=0, keepdims=True)      # avg over 4 channels
            # de-interleave to (bin, Bt): features on sublanes, batch on lanes
            g_t = jnp.concatenate(
                [gap[:, t * Bt:(t + 1) * Bt] for t in range(bin_size)], axis=0)
            h_t = jnp.dot(w1_ref[...], g_t,
                          preferred_element_type=jnp.float32) + b1_ref[...]
            ae_t = jnp.dot(w2a_ref[...], h_t,
                           preferred_element_type=jnp.float32) + b2a_ref[...]
            feat_rows.append(g_t + ae_t)                     # (bin, Bt)
        feat = feat_rows[0] if n_bins == 1 else jnp.concatenate(feat_rows, axis=0)

        # ---- head: Linear -> tanh -> Linear -> sigmoid (batch on lanes) ----
        z = jnp.tanh(jnp.dot(l1w_ref[...], feat,
                             preferred_element_type=jnp.float32) + l1b_ref[...])
        logit = jnp.dot(l2w_ref[...], z,
                        preferred_element_type=jnp.float32) + l2b_ref[...]
        o_ref[...] = jax.nn.sigmoid(logit).reshape(1, 1, Bt)   # lane-dense store

    return kernel


# ----------------------------------------------------------------------------
# Parameters: deterministic synthetic init in native PyTorch layouts
# ----------------------------------------------------------------------------
def init_params(key, num_feats, pyramid_bins):
    keys = iter(jax.random.split(key, 64))

    def u(shape, fan_in):
        bound = 1.0 / np.sqrt(fan_in)
        return jax.random.uniform(next(keys), shape, jnp.float32, -bound, bound)

    C1 = num_feats * 16
    p = {}
    p["dw_w"] = u((C1, 1, 30), 30)          # Conv1d(F, F*16, k=30, groups=F)
    p["dw_b"] = u((C1,), 30)
    p["pw_w"] = u((32, C1, 1), C1)          # Conv1d(F*16, 32, k=1)
    p["pw_b"] = u((32,), C1)
    p["c2_w"] = u((64, 32, 10), 32 * 10)    # Conv1d(32, 64, k=10)
    p["c2_b"] = u((64,), 32 * 10)
    p["pyr"] = []
    for b in pyramid_bins:
        h = math.ceil(b / 2)
        p["pyr"].append({
            "cw": u((4, 64, 3), 64 * 3),    # Conv1d(64, 4, k=3, pad=1)
            "cb": u((4,), 64 * 3),
            "ae1_w": u((h, b), b), "ae1_b": u((h,), b),     # Linear(b -> ceil(b/2))
            "ae2_w": u((b, h), h), "ae2_b": u((b,), h),     # Linear(ceil(b/2) -> b)
        })
    total = int(np.sum(np.array(pyramid_bins)))
    p["l1_w"] = u((400, total), total)      # Linear(total -> 400)
    p["l1_b"] = u((400,), total)
    p["l2_w"] = u((1, 400), 400)            # Linear(400 -> 1)
    p["l2_b"] = u((1,), 400)
    return p


def _fold_params(params, F, F_pad, K1, K2):
    """Fold depthwise->pointwise (exact: no nonlinearity in between) and
    re-layout all weights into the kernel's im2col / transposed-head form."""
    wd = params["dw_w"][:, 0, :]                      # (C1, K1)
    bd = params["dw_b"]                               # (C1,)
    wp = params["pw_w"][:, :, 0]                      # (32, C1)
    bp = params["pw_b"]                               # (32,)
    prod = wp[:, :, None] * wd[None, :, :]            # (32, C1, K1)
    w_eff = prod.reshape(32, F, 16, K1).sum(axis=2)   # (32, F, K1)
    if F_pad > F:
        w_eff = jnp.concatenate(
            [w_eff, jnp.zeros((32, F_pad - F, K1), jnp.float32)], axis=1)
    # column order (k, f) matches the kernel's im2col row order
    w_stem = jnp.transpose(w_eff, (0, 2, 1)).reshape(32, K1 * F_pad)
    b_stem = (bp + wp @ bd).reshape(32, 1)

    w2col = jnp.transpose(params["c2_w"], (0, 2, 1)).reshape(64, K2 * 32)
    b2 = params["c2_b"].reshape(64, 1)

    pyr = []
    for pw in params["pyr"]:
        pyr.append({
            "wc": jnp.transpose(pw["cw"], (0, 2, 1)).reshape(4, 3 * 64)
                     .astype(jnp.bfloat16),
            "bc": pw["cb"].reshape(4, 1),
            # transposed (features-on-sublanes) orientation: y_T = W @ x_T + b_T
            "w1": pw["ae1_w"], "b1": pw["ae1_b"].reshape(-1, 1),
            "w2": pw["ae2_w"], "b2": pw["ae2_b"].reshape(-1, 1),
        })
    head = {"l1_w": params["l1_w"], "l1_b": params["l1_b"].reshape(-1, 1),
            "l2_w": params["l2_w"], "l2_b": params["l2_b"].reshape(-1, 1)}
    return (w_stem.astype(jnp.bfloat16), b_stem,
            w2col.astype(jnp.bfloat16), b2, pyr, head)


# ----------------------------------------------------------------------------
# Forward wrapper: a single pallas_call over batch blocks
# ----------------------------------------------------------------------------
def cnn1d_linpool_forward(x, params, pyramid_bins, batch_tile=8):
    B, F, L = x.shape
    K1, PK, PS, K2 = 30, 10, 2, 10
    Tc = L - K1 + 1
    assert Tc >= PK, "input too short for the pooling stage"
    # ceil_mode pooling output length (PyTorch: last window must start in-bounds)
    Tp = -(-(Tc - PK) // PS) + 1
    if (Tp - 1) * PS >= Tc:
        Tp -= 1
    T2 = Tp - K2 + 1
    assert T2 >= 1, "input too short for conv2"
    assert all(1 <= b <= T2 for b in pyramid_bins), "pyramid bin exceeds conv2 length"

    Te = (Tc + 1) // 2                     # number of even stem positions y[2u]
    To = Tc // 2                           # number of odd stem positions  y[2u+1]
    assert Te == Tp + PK // 2 - 1, "phase-split pooling length mismatch"
    pad_odd = Te - To                      # ceil-mode overhang (0 or 1)

    Bt = max(1, int(batch_tile))
    nb = -(-B // Bt)
    B_pad = nb * Bt
    F_pad = ((F + 7) // 8) * 8             # sublane-aligned im2col pieces

    w_stem, b_stem, w2col, b2, pyr_w, head_w = _fold_params(params, F, F_pad, K1, K2)

    # host-side: even/odd phase split + fold the batch onto the lane axis
    # (column index = t*Bt + b), padded channels, bf16 (cast once, here).
    def _lane_pack(xs):
        Lh = xs.shape[-1]
        xs = jnp.pad(xs, ((0, B_pad - B), (0, F_pad - F), (0, 0)))
        xs = xs.reshape(nb, Bt, F_pad, Lh).transpose(0, 2, 3, 1)
        return xs.reshape(nb, F_pad, Lh * Bt).astype(jnp.bfloat16)

    xe = _lane_pack(x[:, :, 0::2])         # (nb, F_pad, ceil(L/2)*Bt)
    xo = _lane_pack(x[:, :, 1::2])         # (nb, F_pad, floor(L/2)*Bt)

    pyr_cfg = []
    const_inputs = [w_stem, b_stem, w2col, b2]
    for i, bin_size in enumerate(pyramid_bins):
        s = T2 // bin_size                 # module's uniform adaptive window
        ka = T2 - (bin_size - 1) * s
        tma = T2 - ka + 1
        pyr_cfg.append((bin_size, s, ka, tma))
        pw = pyr_w[i]
        const_inputs += [pw["wc"], pw["bc"], pw["w1"], pw["b1"], pw["w2"], pw["b2"]]
    const_inputs += [head_w["l1_w"], head_w["l1_b"], head_w["l2_w"], head_w["l2_b"]]

    def _bcast_spec(a):
        return pl.BlockSpec(a.shape, lambda b: (0,) * a.ndim)

    def _x_spec(a):
        return pl.BlockSpec((1,) + a.shape[1:], lambda b: (b, 0, 0))

    kernel = _make_fused_kernel(Bt, F_pad, K1, Te, To, pad_odd, PK, Tp, K2, T2,
                                tuple(pyr_cfg))
    out = pl.pallas_call(
        kernel,
        grid=(nb,),
        in_specs=[_x_spec(xe), _x_spec(xo)] + [_bcast_spec(a) for a in const_inputs],
        out_specs=pl.BlockSpec((1, 1, Bt), lambda b: (b, 0, 0)),
        out_shape=jax.ShapeDtypeStruct((nb, 1, Bt), jnp.float32),
        compiler_params=pltpu.CompilerParams(
            dimension_semantics=("parallel",),
            vmem_limit_bytes=48 * 1024 * 1024),
    )(xe, xo, *const_inputs)
    return out.reshape(B_pad, 1)[:B]                  # (B, 1)


# ----------------------------------------------------------------------------
# Plain-JAX (f32) reference of the PyTorch module, for validation
# ----------------------------------------------------------------------------
def _maxpool1d_ref(x, k, s, ceil_mode):
    Lx = x.shape[-1]
    if ceil_mode:
        out = -(-(Lx - k) // s) + 1
        if (out - 1) * s >= Lx:
            out -= 1
    else:
        out = (Lx - k) // s + 1
    need = (out - 1) * s + k
    if need > Lx:
        pad = jnp.full(x.shape[:-1] + (need - Lx,), -jnp.inf, x.dtype)
        x = jnp.concatenate([x, pad], axis=-1)
    wins = jnp.stack([x[..., t * s:t * s + k] for t in range(out)], axis=-2)
    return jnp.max(wins, axis=-1)


def reference_forward(x, params, pyramid_bins):
    F = x.shape[1]

    def conv1d(h, w, b, groups=1, padding=0):
        out = jax.lax.conv_general_dilated(
            h, w, (1,), [(padding, padding)],
            dimension_numbers=("NCH", "OIH", "NCH"),
            feature_group_count=groups)
        return out + b[None, :, None]

    h = conv1d(x, params["dw_w"], params["dw_b"], groups=F)
    h = conv1d(h, params["pw_w"], params["pw_b"])
    h = _leaky_relu(h)
    h = _maxpool1d_ref(h, 10, 2, True)
    h = conv1d(h, params["c2_w"], params["c2_b"])
    h = _leaky_relu(h)
    T2 = h.shape[-1]
    feats = []
    for i, bsz in enumerate(pyramid_bins):
        s = T2 // bsz
        ka = T2 - (bsz - 1) * s
        xp = _maxpool1d_ref(h, ka, s, False)            # (B, 64, bin)
        pw = params["pyr"][i]
        xc = conv1d(xp, pw["cw"], pw["cb"], padding=1)
        xc = jnp.maximum(xc, 0.0)                       # (B, 4, bin)
        gap = jnp.mean(xc, axis=1)                      # (B, bin)
        hh = gap @ pw["ae1_w"].T + pw["ae1_b"]
        ae = hh @ pw["ae2_w"].T + pw["ae2_b"]
        feats.append(gap + ae)
    feat = jnp.concatenate(feats, axis=1)
    z = jnp.tanh(feat @ params["l1_w"].T + params["l1_b"])
    logit = z @ params["l2_w"].T + params["l2_b"]
    return jax.nn.sigmoid(logit)                        # (B, 1)


# ----------------------------------------------------------------------------
if __name__ == "__main__":
    # small shapes consistent with the module:
    #   batch=16, _num_feats=4, input length=65, _pyramid_bins=[4, 2], mode='max'
    B, F, L = 16, 4, 65
    pyramid_bins = (4, 2)

    key = jax.random.PRNGKey(0)
    kx, kp = jax.random.split(key)
    x = jax.random.normal(kx, (B, F, L), dtype=jnp.float32)
    params = init_params(kp, F, list(pyramid_bins))

    fwd = jax.jit(functools.partial(cnn1d_linpool_forward,
                                    pyramid_bins=pyramid_bins, batch_tile=8))
    out = jax.block_until_ready(fwd(x, params))

    assert out.shape == (B, 1), out.shape
    assert bool(jnp.all(jnp.isfinite(out)))
    assert bool(jnp.all((out >= 0.0) & (out <= 1.0)))   # sigmoid output range

    ref = reference_forward(x, params, pyramid_bins)
    max_err = float(jnp.max(jnp.abs(out - ref)))
    assert max_err < 2e-2, f"kernel/reference mismatch: {max_err}"
    print("KERNEL_OK")
</pallas_src>

<mosaic_0001>
module attributes {stable_mosaic.version = 11 : i64} {
  func.func @kernel(%arg0: i32, %arg1: memref<1x8x264xbf16, #tpu.memory_space<vmem>>, %arg2: memref<1x8x256xbf16, #tpu.memory_space<vmem>>, %arg3: memref<32x240xbf16, #tpu.memory_space<vmem>>, %arg4: memref<32x1xf32, #tpu.memory_space<vmem>>, %arg5: memref<64x320xbf16, #tpu.memory_space<vmem>>, %arg6: memref<64x1xf32, #tpu.memory_space<vmem>>, %arg7: memref<4x192xbf16, #tpu.memory_space<vmem>>, %arg8: memref<4x1xf32, #tpu.memory_space<vmem>>, %arg9: memref<2x4xf32, #tpu.memory_space<vmem>>, %arg10: memref<2x1xf32, #tpu.memory_space<vmem>>, %arg11: memref<4x2xf32, #tpu.memory_space<vmem>>, %arg12: memref<4x1xf32, #tpu.memory_space<vmem>>, %arg13: memref<4x192xbf16, #tpu.memory_space<vmem>>, %arg14: memref<4x1xf32, #tpu.memory_space<vmem>>, %arg15: memref<1x2xf32, #tpu.memory_space<vmem>>, %arg16: memref<1x1xf32, #tpu.memory_space<vmem>>, %arg17: memref<2x1xf32, #tpu.memory_space<vmem>>, %arg18: memref<2x1xf32, #tpu.memory_space<vmem>>, %arg19: memref<400x6xf32, #tpu.memory_space<vmem>>, %arg20: memref<400x1xf32, #tpu.memory_space<vmem>>, %arg21: memref<1x400xf32, #tpu.memory_space<vmem>>, %arg22: memref<1x1xf32, #tpu.memory_space<vmem>>, %arg23: memref<1x1x8xf32, #tpu.memory_space<vmem>>) attributes {dimension_semantics = [#tpu.dimension_semantics<parallel>], iteration_bounds = array<i64: 2>, scalar_prefetch = 0 : i64, scratch_operands = 0 : i64, tpu.core_type = #tpu.core_type<tc>, window_params = [{transform_indices = @transform_0, window_bounds = array<i64: 1, 8, 264>}, {transform_indices = @transform_1, window_bounds = array<i64: 1, 8, 256>}, {pipeline_mode = #tpu.pipeline_mode<synchronous>, transform_indices = @transform_2, window_bounds = array<i64: 32, 240>}, {pipeline_mode = #tpu.pipeline_mode<synchronous>, transform_indices = @transform_3, window_bounds = array<i64: 32, 1>}, {pipeline_mode = #tpu.pipeline_mode<synchronous>, transform_indices = @transform_4, window_bounds = array<i64: 64, 320>}, {pipeline_mode = #tpu.pipeline_mode<synchronous>, transform_indices = @transform_5, window_bounds = array<i64: 64, 1>}, {pipeline_mode = #tpu.pipeline_mode<synchronous>, transform_indices = @transform_6, window_bounds = array<i64: 4, 192>}, {pipeline_mode = #tpu.pipeline_mode<synchronous>, transform_indices = @transform_7, window_bounds = array<i64: 4, 1>}, {pipeline_mode = #tpu.pipeline_mode<synchronous>, transform_indices = @transform_8, window_bounds = array<i64: 2, 4>}, {pipeline_mode = #tpu.pipeline_mode<synchronous>, transform_indices = @transform_9, window_bounds = array<i64: 2, 1>}, {pipeline_mode = #tpu.pipeline_mode<synchronous>, transform_indices = @transform_10, window_bounds = array<i64: 4, 2>}, {pipeline_mode = #tpu.pipeline_mode<synchronous>, transform_indices = @transform_11, window_bounds = array<i64: 4, 1>}, {pipeline_mode = #tpu.pipeline_mode<synchronous>, transform_indices = @transform_12, window_bounds = array<i64: 4, 192>}, {pipeline_mode = #tpu.pipeline_mode<synchronous>, transform_indices = @transform_13, window_bounds = array<i64: 4, 1>}, {pipeline_mode = #tpu.pipeline_mode<synchronous>, transform_indices = @transform_14, window_bounds = array<i64: 1, 2>}, {pipeline_mode = #tpu.pipeline_mode<synchronous>, transform_indices = @transform_15, window_bounds = array<i64: 1, 1>}, {pipeline_mode = #tpu.pipeline_mode<synchronous>, transform_indices = @transform_16, window_bounds = array<i64: 2, 1>}, {pipeline_mode = #tpu.pipeline_mode<synchronous>, transform_indices = @transform_17, window_bounds = array<i64: 2, 1>}, {pipeline_mode = #tpu.pipeline_mode<synchronous>, transform_indices = @transform_18, window_bounds = array<i64: 400, 6>}, {pipeline_mode = #tpu.pipeline_mode<synchronous>, transform_indices = @transform_19, window_bounds = array<i64: 400, 1>}, {pipeline_mode = #tpu.pipeline_mode<synchronous>, transform_indices = @transform_20, window_bounds = array<i64: 1, 400>}, {pipeline_mode = #tpu.pipeline_mode<synchronous>, transform_indices = @transform_21, window_bounds = array<i64: 1, 1>}, {transform_indices = @transform_22, window_bounds = array<i64: 1, 1, 8>}]} {
    %c0 = arith.constant 0 : index
    %c0_0 = arith.constant 0 : index
    %c0_1 = arith.constant 0 : index
    %0 = vector.load %arg1[%c0, %c0_0, %c0_1] : memref<1x8x264xbf16, #tpu.memory_space<vmem>>, vector<1x8x264xbf16>
    %1 = vector.shape_cast %0 : vector<1x8x264xbf16> to vector<8x264xbf16>
    %c0_2 = arith.constant 0 : index
    %c0_3 = arith.constant 0 : index
    %c0_4 = arith.constant 0 : index
    %2 = vector.load %arg2[%c0_2, %c0_3, %c0_4] : memref<1x8x256xbf16, #tpu.memory_space<vmem>>, vector<1x8x256xbf16>
    %3 = vector.shape_cast %2 : vector<1x8x256xbf16> to vector<8x256xbf16>
    %4 = vector.extract_strided_slice %1 {offsets = [0, 0], sizes = [8, 144], strides = [1, 1]} : vector<8x264xbf16> to vector<8x144xbf16>
    %5 = vector.extract_strided_slice %3 {offsets = [0, 0], sizes = [8, 144], strides = [1, 1]} : vector<8x256xbf16> to vector<8x144xbf16>
    %6 = vector.extract_strided_slice %3 {offsets = [0, 0], sizes = [8, 144], strides = [1, 1]} : vector<8x256xbf16> to vector<8x144xbf16>
    %7 = vector.extract_strided_slice %1 {offsets = [0, 8], sizes = [8, 144], strides = [1, 1]} : vector<8x264xbf16> to vector<8x144xbf16>
    %8 = vector.extract_strided_slice %1 {offsets = [0, 8], sizes = [8, 144], strides = [1, 1]} : vector<8x264xbf16> to vector<8x144xbf16>
    %9 = vector.extract_strided_slice %3 {offsets = [0, 8], sizes = [8, 144], strides = [1, 1]} : vector<8x256xbf16> to vector<8x144xbf16>
    %10 = vector.extract_strided_slice %3 {offsets = [0, 8], sizes = [8, 144], strides = [1, 1]} : vector<8x256xbf16> to vector<8x144xbf16>
    %11 = vector.extract_strided_slice %1 {offsets = [0, 16], sizes = [8, 144], strides = [1, 1]} : vector<8x264xbf16> to vector<8x144xbf16>
    %12 = vector.extract_strided_slice %1 {offsets = [0, 16], sizes = [8, 144], strides = [1, 1]} : vector<8x264xbf16> to vector<8x144xbf16>
    %13 = vector.extract_strided_slice %3 {offsets = [0, 16], sizes = [8, 144], strides = [1, 1]} : vector<8x256xbf16> to vector<8x144xbf16>
    %14 = vector.extract_strided_slice %3 {offsets = [0, 16], sizes = [8, 144], strides = [1, 1]} : vector<8x256xbf16> to vector<8x144xbf16>
    %15 = vector.extract_strided_slice %1 {offsets = [0, 24], sizes = [8, 144], strides = [1, 1]} : vector<8x264xbf16> to vector<8x144xbf16>
    %16 = vector.extract_strided_slice %1 {offsets = [0, 24], sizes = [8, 144], strides = [1, 1]} : vector<8x264xbf16> to vector<8x144xbf16>
    %17 = vector.extract_strided_slice %3 {offsets = [0, 24], sizes = [8, 144], strides = [1, 1]} : vector<8x256xbf16> to vector<8x144xbf16>
    %18 = vector.extract_strided_slice %3 {offsets = [0, 24], sizes = [8, 144], strides = [1, 1]} : vector<8x256xbf16> to vector<8x144xbf16>
    %19 = vector.extract_strided_slice %1 {offsets = [0, 32], sizes = [8, 144], strides = [1, 1]} : vector<8x264xbf16> to vector<8x144xbf16>
    %20 = vector.extract_strided_slice %1 {offsets = [0, 32], sizes = [8, 144], strides = [1, 1]} : vector<8x264xbf16> to vector<8x144xbf16>
    %21 = vector.extract_strided_slice %3 {offsets = [0, 32], sizes = [8, 144], strides = [1, 1]} : vector<8x256xbf16> to vector<8x144xbf16>
    %22 = vector.extract_strided_slice %3 {offsets = [0, 32], sizes = [8, 144], strides = [1, 1]} : vector<8x256xbf16> to vector<8x144xbf16>
    %23 = vector.extract_strided_slice %1 {offsets = [0, 40], sizes = [8, 144], strides = [1, 1]} : vector<8x264xbf16> to vector<8x144xbf16>
    %24 = vector.extract_strided_slice %1 {offsets = [0, 40], sizes = [8, 144], strides = [1, 1]} : vector<8x264xbf16> to vector<8x144xbf16>
    %25 = vector.extract_strided_slice %3 {offsets = [0, 40], sizes = [8, 144], strides = [1, 1]} : vector<8x256xbf16> to vector<8x144xbf16>
    %26 = vector.extract_strided_slice %3 {offsets = [0, 40], sizes = [8, 144], strides = [1, 1]} : vector<8x256xbf16> to vector<8x144xbf16>
    %27 = vector.extract_strided_slice %1 {offsets = [0, 48], sizes = [8, 144], strides = [1, 1]} : vector<8x264xbf16> to vector<8x144xbf16>
    %28 = vector.extract_strided_slice %1 {offsets = [0, 48], sizes = [8, 144], strides = [1, 1]} : vector<8x264xbf16> to vector<8x144xbf16>
    %29 = vector.extract_strided_slice %3 {offsets = [0, 48], sizes = [8, 144], strides = [1, 1]} : vector<8x256xbf16> to vector<8x144xbf16>
    %30 = vector.extract_strided_slice %3 {offsets = [0, 48], sizes = [8, 144], strides = [1, 1]} : vector<8x256xbf16> to vector<8x144xbf16>
    %31 = vector.extract_strided_slice %1 {offsets = [0, 56], sizes = [8, 144], strides = [1, 1]} : vector<8x264xbf16> to vector<8x144xbf16>
    %32 = vector.extract_strided_slice %1 {offsets = [0, 56], sizes = [8, 144], strides = [1, 1]} : vector<8x264xbf16> to vector<8x144xbf16>
    %33 = vector.extract_strided_slice %3 {offsets = [0, 56], sizes = [8, 144], strides = [1, 1]} : vector<8x256xbf16> to vector<8x144xbf16>
    %34 = vector.extract_strided_slice %3 {offsets = [0, 56], sizes = [8, 144], strides = [1, 1]} : vector<8x256xbf16> to vector<8x144xbf16>
    %35 = vector.extract_strided_slice %1 {offsets = [0, 64], sizes = [8, 144], strides = [1, 1]} : vector<8x264xbf16> to vector<8x144xbf16>
    %36 = vector.extract_strided_slice %1 {offsets = [0, 64], sizes = [8, 144], strides = [1, 1]} : vector<8x264xbf16> to vector<8x144xbf16>
    %37 = vector.extract_strided_slice %3 {offsets = [0, 64], sizes = [8, 144], strides = [1, 1]} : vector<8x256xbf16> to vector<8x144xbf16>
    %38 = vector.extract_strided_slice %3 {offsets = [0, 64], sizes = [8, 144], strides = [1, 1]} : vector<8x256xbf16> to vector<8x144xbf16>
    %39 = vector.extract_strided_slice %1 {offsets = [0, 72], sizes = [8, 144], strides = [1, 1]} : vector<8x264xbf16> to vector<8x144xbf16>
    %40 = vector.extract_strided_slice %1 {offsets = [0, 72], sizes = [8, 144], strides = [1, 1]} : vector<8x264xbf16> to vector<8x144xbf16>
    %41 = vector.extract_strided_slice %3 {offsets = [0, 72], sizes = [8, 144], strides = [1, 1]} : vector<8x256xbf16> to vector<8x144xbf16>
    %42 = vector.extract_strided_slice %3 {offsets = [0, 72], sizes = [8, 144], strides = [1, 1]} : vector<8x256xbf16> to vector<8x144xbf16>
    %43 = vector.extract_strided_slice %1 {offsets = [0, 80], sizes = [8, 144], strides = [1, 1]} : vector<8x264xbf16> to vector<8x144xbf16>
    %44 = vector.extract_strided_slice %1 {offsets = [0, 80], sizes = [8, 144], strides = [1, 1]} : vector<8x264xbf16> to vector<8x144xbf16>
    %45 = vector.extract_strided_slice %3 {offsets = [0, 80], sizes = [8, 144], strides = [1, 1]} : vector<8x256xbf16> to vector<8x144xbf16>
    %46 = vector.extract_strided_slice %3 {offsets = [0, 80], sizes = [8, 144], strides = [1, 1]} : vector<8x256xbf16> to vector<8x144xbf16>
    %47 = vector.extract_strided_slice %1 {offsets = [0, 88], sizes = [8, 144], strides = [1, 1]} : vector<8x264xbf16> to vector<8x144xbf16>
    %48 = vector.extract_strided_slice %1 {offsets = [0, 88], sizes = [8, 144], strides = [1, 1]} : vector<8x264xbf16> to vector<8x144xbf16>
    %49 = vector.extract_strided_slice %3 {offsets = [0, 88], sizes = [8, 144], strides = [1, 1]} : vector<8x256xbf16> to vector<8x144xbf16>
    %50 = vector.extract_strided_slice %3 {offsets = [0, 88], sizes = [8, 144], strides = [1, 1]} : vector<8x256xbf16> to vector<8x144xbf16>
    %51 = vector.extract_strided_slice %1 {offsets = [0, 96], sizes = [8, 144], strides = [1, 1]} : vector<8x264xbf16> to vector<8x144xbf16>
    %52 = vector.extract_strided_slice %1 {offsets = [0, 96], sizes = [8, 144], strides = [1, 1]} : vector<8x264xbf16> to vector<8x144xbf16>
    %53 = vector.extract_strided_slice %3 {offsets = [0, 96], sizes = [8, 144], strides = [1, 1]} : vector<8x256xbf16> to vector<8x144xbf16>
    %54 = vector.extract_strided_slice %3 {offsets = [0, 96], sizes = [8, 144], strides = [1, 1]} : vector<8x256xbf16> to vector<8x144xbf16>
    %55 = vector.extract_strided_slice %1 {offsets = [0, 104], sizes = [8, 144], strides = [1, 1]} : vector<8x264xbf16> to vector<8x144xbf16>
    %56 = vector.extract_strided_slice %1 {offsets = [0, 104], sizes = [8, 144], strides = [1, 1]} : vector<8x264xbf16> to vector<8x144xbf16>
    %57 = vector.extract_strided_slice %3 {offsets = [0, 104], sizes = [8, 144], strides = [1, 1]} : vector<8x256xbf16> to vector<8x144xbf16>
    %58 = vector.extract_strided_slice %3 {offsets = [0, 104], sizes = [8, 144], strides = [1, 1]} : vector<8x256xbf16> to vector<8x144xbf16>
    %59 = vector.extract_strided_slice %1 {offsets = [0, 112], sizes = [8, 144], strides = [1, 1]} : vector<8x264xbf16> to vector<8x144xbf16>
    %60 = vector.extract_strided_slice %1 {offsets = [0, 112], sizes = [8, 144], strides = [1, 1]} : vector<8x264xbf16> to vector<8x144xbf16>
    %61 = vector.extract_strided_slice %3 {offsets = [0, 112], sizes = [8, 144], strides = [1, 1]} : vector<8x256xbf16> to vector<8x144xbf16>
    %62 = vector.extract_strided_slice %3 {offsets = [0, 112], sizes = [8, 144], strides = [1, 1]} : vector<8x256xbf16> to vector<8x144xbf16>
    %63 = vector.extract_strided_slice %1 {offsets = [0, 120], sizes = [8, 144], strides = [1, 1]} : vector<8x264xbf16> to vector<8x144xbf16>
    %64 = tpu.concatenate %4, %5, %8, %9, %12, %13, %16, %17, %20, %21, %24, %25, %28, %29, %32, %33 in 0 : vector<8x144xbf16>, vector<8x144xbf16>, vector<8x144xbf16>, vector<8x144xbf16>, vector<8x144xbf16>, vector<8x144xbf16>, vector<8x144xbf16>, vector<8x144xbf16>, vector<8x144xbf16>, vector<8x144xbf16>, vector<8x144xbf16>, vector<8x144xbf16>, vector<8x144xbf16>, vector<8x144xbf16>, vector<8x144xbf16>, vector<8x144xbf16> -> vector<128x144xbf16>
    %65 = tpu.concatenate %36, %37, %40, %41, %44, %45, %48, %49, %52, %53, %56, %57, %60, %61 in 0 : vector<8x144xbf16>, vector<8x144xbf16>, vector<8x144xbf16>, vector<8x144xbf16>, vector<8x144xbf16>, vector<8x144xbf16>, vector<8x144xbf16>, vector<8x144xbf16>, vector<8x144xbf16>, vector<8x144xbf16>, vector<8x144xbf16>, vector<8x144xbf16>, vector<8x144xbf16>, vector<8x144xbf16> -> vector<112x144xbf16>
    %66 = tpu.concatenate %64, %65 in 0 : vector<128x144xbf16>, vector<112x144xbf16> -> vector<240x144xbf16>
    %67 = tpu.concatenate %6, %7, %10, %11, %14, %15, %18, %19, %22, %23, %26, %27, %30, %31, %34, %35 in 0 : vector<8x144xbf16>, vector<8x144xbf16>, vector<8x144xbf16>, vector<8x144xbf16>, vector<8x144xbf16>, vector<8x144xbf16>, vector<8x144xbf16>, vector<8x144xbf16>, vector<8x144xbf16>, vector<8x144xbf16>, vector<8x144xbf16>, vector<8x144xbf16>, vector<8x144xbf16>, vector<8x144xbf16>, vector<8x144xbf16>, vector<8x144xbf16> -> vector<128x144xbf16>
    %68 = tpu.concatenate %38, %39, %42, %43, %46, %47, %50, %51, %54, %55, %58, %59, %62, %63 in 0 : vector<8x144xbf16>, vector<8x144xbf16>, vector<8x144xbf16>, vector<8x144xbf16>, vector<8x144xbf16>, vector<8x144xbf16>, vector<8x144xbf16>, vector<8x144xbf16>, vector<8x144xbf16>, vector<8x144xbf16>, vector<8x144xbf16>, vector<8x144xbf16>, vector<8x144xbf16>, vector<8x144xbf16> -> vector<112x144xbf16>
    %69 = tpu.concatenate %67, %68 in 0 : vector<128x144xbf16>, vector<112x144xbf16> -> vector<240x144xbf16>
    %70 = tpu.concatenate %66, %69 in 1 : vector<240x144xbf16>, vector<240x144xbf16> -> vector<240x288xbf16>
    %c0_5 = arith.constant 0 : index
    %c0_6 = arith.constant 0 : index
    %71 = vector.load %arg3[%c0_5, %c0_6] : memref<32x240xbf16, #tpu.memory_space<vmem>>, vector<32x240xbf16>
    %cst = arith.constant dense<0.000000e+00> : vector<32x288xf32>
    %72 = tpu.matmul %71, %70, %cst {dimension_numbers = #tpu.dot_dimension_numbers<[1], [0], [0], [1], [0, 0, 1, 1], [], []>} : vector<32x240xbf16>, vector<240x288xbf16>, vector<32x288xf32> -> vector<32x288xf32>
    %c0_7 = arith.constant 0 : index
    %c0_8 = arith.constant 0 : index
    %73 = vector.load %arg4[%c0_7, %c0_8] : memref<32x1xf32, #tpu.memory_space<vmem>>, vector<32x1xf32>
    %74 = vector.broadcast %73 : vector<32x1xf32> to vector<32x288xf32>
    %75 = arith.addf %72, %74 : vector<32x288xf32>
    %cst_9 = arith.constant 0.000000e+00 : f32
    %76 = vector.broadcast %cst_9 : f32 to vector<32x288xf32>
    %77 = arith.cmpf ogt, %75, %76 : vector<32x288xf32>
    %cst_10 = arith.constant 0.00999999977 : f32
    %78 = vector.broadcast %cst_10 : f32 to vector<32x288xf32>
    %79 = arith.mulf %78, %75 : vector<32x288xf32>
    %80 = arith.select %77, %75, %79 : vector<32x288xi1>, vector<32x288xf32>
    %81 = vector.extract_strided_slice %80 {offsets = [0, 0], sizes = [32, 144], strides = [1, 1]} : vector<32x288xf32> to vector<32x144xf32>
    %82 = vector.extract_strided_slice %80 {offsets = [0, 144], sizes = [32, 144], strides = [1, 1]} : vector<32x288xf32> to vector<32x144xf32>
    %83 = vector.extract_strided_slice %81 {offsets = [0, 0], sizes = [32, 112], strides = [1, 1]} : vector<32x144xf32> to vector<32x112xf32>
    %84 = vector.extract_strided_slice %81 {offsets = [0, 8], sizes = [32, 112], strides = [1, 1]} : vector<32x144xf32> to vector<32x112xf32>
    %85 = vector.extract_strided_slice %81 {offsets = [0, 16], sizes = [32, 112], strides = [1, 1]} : vector<32x144xf32> to vector<32x112xf32>
    %86 = vector.extract_strided_slice %81 {offsets = [0, 24], sizes = [32, 112], strides = [1, 1]} : vector<32x144xf32> to vector<32x112xf32>
    %87 = vector.extract_strided_slice %81 {offsets = [0, 32], sizes = [32, 112], strides = [1, 1]} : vector<32x144xf32> to vector<32x112xf32>
    %88 = vector.extract_strided_slice %82 {offsets = [0, 0], sizes = [32, 112], strides = [1, 1]} : vector<32x144xf32> to vector<32x112xf32>
    %89 = vector.extract_strided_slice %82 {offsets = [0, 8], sizes = [32, 112], strides = [1, 1]} : vector<32x144xf32> to vector<32x112xf32>
    %90 = vector.extract_strided_slice %82 {offsets = [0, 16], sizes = [32, 112], strides = [1, 1]} : vector<32x144xf32> to vector<32x112xf32>
    %91 = vector.extract_strided_slice %82 {offsets = [0, 24], sizes = [32, 112], strides = [1, 1]} : vector<32x144xf32> to vector<32x112xf32>
    %92 = vector.extract_strided_slice %82 {offsets = [0, 32], sizes = [32, 112], strides = [1, 1]} : vector<32x144xf32> to vector<32x112xf32>
    %93 = arith.maximumf %83, %84 : vector<32x112xf32>
    %94 = arith.maximumf %85, %86 : vector<32x112xf32>
    %95 = arith.maximumf %87, %88 : vector<32x112xf32>
    %96 = arith.maximumf %89, %90 : vector<32x112xf32>
    %97 = arith.maximumf %91, %92 : vector<32x112xf32>
    %98 = arith.maximumf %93, %94 : vector<32x112xf32>
    %99 = arith.maximumf %95, %96 : vector<32x112xf32>
    %100 = arith.maximumf %98, %99 : vector<32x112xf32>
    %101 = arith.maximumf %100, %97 : vector<32x112xf32>
    %102 = arith.truncf %101 : vector<32x112xf32> to vector<32x112xbf16>
    %103 = vector.extract_strided_slice %102 {offsets = [0, 0], sizes = [32, 40], strides = [1, 1]} : vector<32x112xbf16> to vector<32x40xbf16>
    %104 = vector.extract_strided_slice %102 {offsets = [0, 8], sizes = [32, 40], strides = [1, 1]} : vector<32x112xbf16> to vector<32x40xbf16>
    %105 = vector.extract_strided_slice %102 {offsets = [0, 16], sizes = [32, 40], strides = [1, 1]} : vector<32x112xbf16> to vector<32x40xbf16>
    %106 = vector.extract_strided_slice %102 {offsets = [0, 24], sizes = [32, 40], strides = [1, 1]} : vector<32x112xbf16> to vector<32x40xbf16>
    %107 = vector.extract_strided_slice %102 {offsets = [0, 32], sizes = [32, 40], strides = [1, 1]} : vector<32x112xbf16> to vector<32x40xbf16>
    %108 = vector.extract_strided_slice %102 {offsets = [0, 40], sizes = [32, 40], strides = [1, 1]} : vector<32x112xbf16> to vector<32x40xbf16>
    %109 = vector.extract_strided_slice %102 {offsets = [0, 48], sizes = [32, 40], strides = [1, 1]} : vector<32x112xbf16> to vector<32x40xbf16>
    %110 = vector.extract_strided_slice %102 {offsets = [0, 56], sizes = [32, 40], strides = [1, 1]} : vector<32x112xbf16> to vector<32x40xbf16>
    %111 = vector.extract_strided_slice %102 {offsets = [0, 64], sizes = [32, 40], strides = [1, 1]} : vector<32x112xbf16> to vector<32x40xbf16>
    %112 = vector.extract_strided_slice %102 {offsets = [0, 72], sizes = [32, 40], strides = [1, 1]} : vector<32x112xbf16> to vector<32x40xbf16>
    %113 = tpu.concatenate %103, %104, %105, %106, %107, %108, %109, %110, %111, %112 in 0 : vector<32x40xbf16>, vector<32x40xbf16>, vector<32x40xbf16>, vector<32x40xbf16>, vector<32x40xbf16>, vector<32x40xbf16>, vector<32x40xbf16>, vector<32x40xbf16>, vector<32x40xbf16>, vector<32x40xbf16> -> vector<320x40xbf16>
    %c0_11 = arith.constant 0 : index
    %c0_12 = arith.constant 0 : index
    %114 = vector.load %arg5[%c0_11, %c0_12] : memref<64x320xbf16, #tpu.memory_space<vmem>>, vector<64x320xbf16>
    %cst_13 = arith.constant dense<0.000000e+00> : vector<64x40xf32>
    %115 = tpu.matmul %114, %113, %cst_13 {dimension_numbers = #tpu.dot_dimension_numbers<[1], [0], [0], [1], [0, 0, 1, 1], [], []>} : vector<64x320xbf16>, vector<320x40xbf16>, vector<64x40xf32> -> vector<64x40xf32>
    %c0_14 = arith.constant 0 : index
    %c0_15 = arith.constant 0 : index
    %116 = vector.load %arg6[%c0_14, %c0_15] : memref<64x1xf32, #tpu.memory_space<vmem>>, vector<64x1xf32>
    %117 = vector.broadcast %116 : vector<64x1xf32> to vector<64x40xf32>
    %118 = arith.addf %115, %117 : vector<64x40xf32>
    %cst_16 = arith.constant 0.000000e+00 : f32
    %119 = vector.broadcast %cst_16 : f32 to vector<64x40xf32>
    %120 = arith.cmpf ogt, %118, %119 : vector<64x40xf32>
    %cst_17 = arith.constant 0.00999999977 : f32
    %121 = vector.broadcast %cst_17 : f32 to vector<64x40xf32>
    %122 = arith.mulf %121, %118 : vector<64x40xf32>
    %123 = arith.select %120, %118, %122 : vector<64x40xi1>, vector<64x40xf32>
    %124 = vector.extract_strided_slice %123 {offsets = [0, 0], sizes = [64, 32], strides = [1, 1]} : vector<64x40xf32> to vector<64x32xf32>
    %125 = vector.extract_strided_slice %123 {offsets = [0, 8], sizes = [64, 32], strides = [1, 1]} : vector<64x40xf32> to vector<64x32xf32>
    %126 = arith.maximumf %124, %125 : vector<64x32xf32>
    %127 = arith.truncf %126 : vector<64x32xf32> to vector<64x32xbf16>
    %cst_18 = arith.constant 0.000000e+00 : bf16
    %128 = vector.broadcast %cst_18 : bf16 to vector<64x8xbf16>
    %129 = vector.extract_strided_slice %127 {offsets = [0, 0], sizes = [64, 8], strides = [1, 1]} : vector<64x32xbf16> to vector<64x8xbf16>
    %130 = vector.extract_strided_slice %127 {offsets = [0, 8], sizes = [64, 8], strides = [1, 1]} : vector<64x32xbf16> to vector<64x8xbf16>
    %131 = vector.extract_strided_slice %127 {offsets = [0, 16], sizes = [64, 8], strides = [1, 1]} : vector<64x32xbf16> to vector<64x8xbf16>
    %132 = vector.extract_strided_slice %127 {offsets = [0, 24], sizes = [64, 8], strides = [1, 1]} : vector<64x32xbf16> to vector<64x8xbf16>
    %133 = tpu.concatenate %128, %129, %130, %131, %132, %128 in 1 : vector<64x8xbf16>, vector<64x8xbf16>, vector<64x8xbf16>, vector<64x8xbf16>, vector<64x8xbf16>, vector<64x8xbf16> -> vector<64x48xbf16>
    %134 = vector.extract_strided_slice %133 {offsets = [0, 0], sizes = [64, 32], strides = [1, 1]} : vector<64x48xbf16> to vector<64x32xbf16>
    %135 = vector.extract_strided_slice %133 {offsets = [0, 8], sizes = [64, 32], strides = [1, 1]} : vector<64x48xbf16> to vector<64x32xbf16>
    %136 = vector.extract_strided_slice %133 {offsets = [0, 16], sizes = [64, 32], strides = [1, 1]} : vector<64x48xbf16> to vector<64x32xbf16>
    %137 = tpu.concatenate %134, %135, %136 in 0 : vector<64x32xbf16>, vector<64x32xbf16>, vector<64x32xbf16> -> vector<192x32xbf16>
    %c0_19 = arith.constant 0 : index
    %c0_20 = arith.constant 0 : index
    %138 = vector.load %arg7[%c0_19, %c0_20] : memref<4x192xbf16, #tpu.memory_space<vmem>>, vector<4x192xbf16>
    %cst_21 = arith.constant dense<0.000000e+00> : vector<4x32xf32>
    %139 = tpu.matmul %138, %137, %cst_21 {dimension_numbers = #tpu.dot_dimension_numbers<[1], [0], [0], [1], [0, 0, 1, 1], [], []>} : vector<4x192xbf16>, vector<192x32xbf16>, vector<4x32xf32> -> vector<4x32xf32>
    %c0_22 = arith.constant 0 : index
    %c0_23 = arith.constant 0 : index
    %140 = vector.load %arg8[%c0_22, %c0_23] : memref<4x1xf32, #tpu.memory_space<vmem>>, vector<4x1xf32>
    %141 = vector.broadcast %140 : vector<4x1xf32> to vector<4x32xf32>
    %142 = arith.addf %139, %141 : vector<4x32xf32>
    %cst_24 = arith.constant 0.000000e+00 : f32
    %143 = vector.broadcast %cst_24 : f32 to vector<4x32xf32>
    %144 = arith.maximumf %142, %143 : vector<4x32xf32>
    %cst_25 = arith.constant dense<0.000000e+00> : vector<32xf32>
    %145 = vector.multi_reduction <add>, %144, %cst_25 [0] : vector<4x32xf32> to vector<32xf32>
    %146 = vector.shape_cast %145 : vector<32xf32> to vector<1x32xf32>
    %cst_26 = arith.constant 4.000000e+00 : f32
    %147 = vector.broadcast %cst_26 : f32 to vector<1x32xf32>
    %148 = arith.divf %146, %147 : vector<1x32xf32>
    %149 = vector.extract_strided_slice %148 {offsets = [0, 0], sizes = [1, 8], strides = [1, 1]} : vector<1x32xf32> to vector<1x8xf32>
    %150 = vector.extract_strided_slice %148 {offsets = [0, 8], sizes = [1, 8], strides = [1, 1]} : vector<1x32xf32> to vector<1x8xf32>
    %151 = vector.extract_strided_slice %148 {offsets = [0, 16], sizes = [1, 8], strides = [1, 1]} : vector<1x32xf32> to vector<1x8xf32>
    %152 = vector.extract_strided_slice %148 {offsets = [0, 24], sizes = [1, 8], strides = [1, 1]} : vector<1x32xf32> to vector<1x8xf32>
    %153 = tpu.concatenate %149, %150, %151, %152 in 0 : vector<1x8xf32>, vector<1x8xf32>, vector<1x8xf32>, vector<1x8xf32> -> vector<4x8xf32>
    %c0_27 = arith.constant 0 : index
    %c0_28 = arith.constant 0 : index
    %154 = vector.load %arg9[%c0_27, %c0_28] : memref<2x4xf32, #tpu.memory_space<vmem>>, vector<2x4xf32>
    %cst_29 = arith.constant dense<0.000000e+00> : vector<2x8xf32>
    %155 = tpu.matmul %154, %153, %cst_29 {dimension_numbers = #tpu.dot_dimension_numbers<[1], [0], [0], [1], [0, 0, 1, 1], [], []>} : vector<2x4xf32>, vector<4x8xf32>, vector<2x8xf32> -> vector<2x8xf32>
    %c0_30 = arith.constant 0 : index
    %c0_31 = arith.constant 0 : index
    %156 = vector.load %arg10[%c0_30, %c0_31] : memref<2x1xf32, #tpu.memory_space<vmem>>, vector<2x1xf32>
    %157 = vector.broadcast %156 : vector<2x1xf32> to vector<2x8xf32>
    %158 = arith.addf %155, %157 : vector<2x8xf32>
    %c0_32 = arith.constant 0 : index
    %c0_33 = arith.constant 0 : index
    %159 = vector.load %arg11[%c0_32, %c0_33] : memref<4x2xf32, #tpu.memory_space<vmem>>, vector<4x2xf32>
    %cst_34 = arith.constant dense<0.000000e+00> : vector<4x8xf32>
    %160 = tpu.matmul %159, %158, %cst_34 {dimension_numbers = #tpu.dot_dimension_numbers<[1], [0], [0], [1], [0, 0, 1, 1], [], []>} : vector<4x2xf32>, vector<2x8xf32>, vector<4x8xf32> -> vector<4x8xf32>
    %c0_35 = arith.constant 0 : index
    %c0_36 = arith.constant 0 : index
    %161 = vector.load %arg12[%c0_35, %c0_36] : memref<4x1xf32, #tpu.memory_space<vmem>>, vector<4x1xf32>
    %162 = vector.broadcast %161 : vector<4x1xf32> to vector<4x8xf32>
    %163 = arith.addf %160, %162 : vector<4x8xf32>
    %164 = arith.addf %153, %163 : vector<4x8xf32>
    %165 = vector.extract_strided_slice %123 {offsets = [0, 0], sizes = [64, 24], strides = [1, 1]} : vector<64x40xf32> to vector<64x24xf32>
    %166 = vector.extract_strided_slice %123 {offsets = [0, 8], sizes = [64, 24], strides = [1, 1]} : vector<64x40xf32> to vector<64x24xf32>
    %167 = vector.extract_strided_slice %123 {offsets = [0, 16], sizes = [64, 24], strides = [1, 1]} : vector<64x40xf32> to vector<64x24xf32>
    %168 = arith.maximumf %165, %166 : vector<64x24xf32>
    %169 = arith.maximumf %168, %167 : vector<64x24xf32>
    %170 = arith.truncf %169 : vector<64x24xf32> to vector<64x24xbf16>
    %cst_37 = arith.constant 0.000000e+00 : bf16
    %171 = vector.broadcast %cst_37 : bf16 to vector<64x8xbf16>
    %172 = vector.extract_strided_slice %170 {offsets = [0, 0], sizes = [64, 8], strides = [1, 1]} : vector<64x24xbf16> to vector<64x8xbf16>
    %173 = vector.extract_strided_slice %170 {offsets = [0, 16], sizes = [64, 8], strides = [1, 1]} : vector<64x24xbf16> to vector<64x8xbf16>
    %174 = tpu.concatenate %171, %172, %173, %171 in 1 : vector<64x8xbf16>, vector<64x8xbf16>, vector<64x8xbf16>, vector<64x8xbf16> -> vector<64x32xbf16>
    %175 = vector.extract_strided_slice %174 {offsets = [0, 0], sizes = [64, 16], strides = [1, 1]} : vector<64x32xbf16> to vector<64x16xbf16>
    %176 = vector.extract_strided_slice %174 {offsets = [0, 8], sizes = [64, 16], strides = [1, 1]} : vector<64x32xbf16> to vector<64x16xbf16>
    %177 = vector.extract_strided_slice %174 {offsets = [0, 16], sizes = [64, 16], strides = [1, 1]} : vector<64x32xbf16> to vector<64x16xbf16>
    %178 = tpu.concatenate %175, %176, %177 in 0 : vector<64x16xbf16>, vector<64x16xbf16>, vector<64x16xbf16> -> vector<192x16xbf16>
    %c0_38 = arith.constant 0 : index
    %c0_39 = arith.constant 0 : index
    %179 = vector.load %arg13[%c0_38, %c0_39] : memref<4x192xbf16, #tpu.memory_space<vmem>>, vector<4x192xbf16>
    %cst_40 = arith.constant dense<0.000000e+00> : vector<4x16xf32>
    %180 = tpu.matmul %179, %178, %cst_40 {dimension_numbers = #tpu.dot_dimension_numbers<[1], [0], [0], [1], [0, 0, 1, 1], [], []>} : vector<4x192xbf16>, vector<192x16xbf16>, vector<4x16xf32> -> vector<4x16xf32>
    %c0_41 = arith.constant 0 : index
    %c0_42 = arith.constant 0 : index
    %181 = vector.load %arg14[%c0_41, %c0_42] : memref<4x1xf32, #tpu.memory_space<vmem>>, vector<4x1xf32>
    %182 = vector.broadcast %181 : vector<4x1xf32> to vector<4x16xf32>
    %183 = arith.addf %180, %182 : vector<4x16xf32>
    %cst_43 = arith.constant 0.000000e+00 : f32
    %184 = vector.broadcast %cst_43 : f32 to vector<4x16xf32>
    %185 = arith.maximumf %183, %184 : vector<4x16xf32>
    %cst_44 = arith.constant dense<0.000000e+00> : vector<16xf32>
    %186 = vector.multi_reduction <add>, %185, %cst_44 [0] : vector<4x16xf32> to vector<16xf32>
    %187 = vector.shape_cast %186 : vector<16xf32> to vector<1x16xf32>
    %cst_45 = arith.constant 4.000000e+00 : f32
    %188 = vector.broadcast %cst_45 : f32 to vector<1x16xf32>
    %189 = arith.divf %187, %188 : vector<1x16xf32>
    %190 = vector.extract_strided_slice %189 {offsets = [0, 0], sizes = [1, 8], strides = [1, 1]} : vector<1x16xf32> to vector<1x8xf32>
    %191 = vector.extract_strided_slice %189 {offsets = [0, 8], sizes = [1, 8], strides = [1, 1]} : vector<1x16xf32> to vector<1x8xf32>
    %192 = tpu.concatenate %190, %191 in 0 : vector<1x8xf32>, vector<1x8xf32> -> vector<2x8xf32>
    %c0_46 = arith.constant 0 : index
    %c0_47 = arith.constant 0 : index
    %193 = vector.load %arg15[%c0_46, %c0_47] : memref<1x2xf32, #tpu.memory_space<vmem>>, vector<1x2xf32>
    %cst_48 = arith.constant dense<0.000000e+00> : vector<1x8xf32>
    %194 = tpu.matmul %193, %192, %cst_48 {dimension_numbers = #tpu.dot_dimension_numbers<[1], [0], [0], [1], [0, 0, 1, 1], [], []>} : vector<1x2xf32>, vector<2x8xf32>, vector<1x8xf32> -> vector<1x8xf32>
    %c0_49 = arith.constant 0 : index
    %c0_50 = arith.constant 0 : index
    %195 = vector.load %arg16[%c0_49, %c0_50] : memref<1x1xf32, #tpu.memory_space<vmem>>, vector<1x1xf32>
    %196 = vector.broadcast %195 : vector<1x1xf32> to vector<1x8xf32>
    %197 = arith.addf %194, %196 : vector<1x8xf32>
    %c0_51 = arith.constant 0 : index
    %c0_52 = arith.constant 0 : index
    %198 = vector.load %arg17[%c0_51, %c0_52] : memref<2x1xf32, #tpu.memory_space<vmem>>, vector<2x1xf32>
    %cst_53 = arith.constant dense<0.000000e+00> : vector<2x8xf32>
    %199 = tpu.matmul %198, %197, %cst_53 {dimension_numbers = #tpu.dot_dimension_numbers<[1], [0], [0], [1], [0, 0, 1, 1], [], []>} : vector<2x1xf32>, vector<1x8xf32>, vector<2x8xf32> -> vector<2x8xf32>
    %c0_54 = arith.constant 0 : index
    %c0_55 = arith.constant 0 : index
    %200 = vector.load %arg18[%c0_54, %c0_55] : memref<2x1xf32, #tpu.memory_space<vmem>>, vector<2x1xf32>
    %201 = vector.broadcast %200 : vector<2x1xf32> to vector<2x8xf32>
    %202 = arith.addf %199, %201 : vector<2x8xf32>
    %203 = arith.addf %192, %202 : vector<2x8xf32>
    %204 = tpu.concatenate %164, %203 in 0 : vector<4x8xf32>, vector<2x8xf32> -> vector<6x8xf32>
    %c0_56 = arith.constant 0 : index
    %c0_57 = arith.constant 0 : index
    %205 = vector.load %arg19[%c0_56, %c0_57] : memref<400x6xf32, #tpu.memory_space<vmem>>, vector<400x6xf32>
    %cst_58 = arith.constant dense<0.000000e+00> : vector<400x8xf32>
    %206 = tpu.matmul %205, %204, %cst_58 {dimension_numbers = #tpu.dot_dimension_numbers<[1], [0], [0], [1], [0, 0, 1, 1], [], []>} : vector<400x6xf32>, vector<6x8xf32>, vector<400x8xf32> -> vector<400x8xf32>
    %c0_59 = arith.constant 0 : index
    %c0_60 = arith.constant 0 : index
    %207 = vector.load %arg20[%c0_59, %c0_60] : memref<400x1xf32, #tpu.memory_space<vmem>>, vector<400x1xf32>
    %208 = vector.broadcast %207 : vector<400x1xf32> to vector<400x8xf32>
    %209 = arith.addf %206, %208 : vector<400x8xf32>
    %210 = math.tanh %209 : vector<400x8xf32>
    %c0_61 = arith.constant 0 : index
    %c0_62 = arith.constant 0 : index
    %211 = vector.load %arg21[%c0_61, %c0_62] : memref<1x400xf32, #tpu.memory_space<vmem>>, vector<1x400xf32>
    %cst_63 = arith.constant dense<0.000000e+00> : vector<1x8xf32>
    %212 = tpu.matmul %211, %210, %cst_63 {dimension_numbers = #tpu.dot_dimension_numbers<[1], [0], [0], [1], [0, 0, 1, 1], [], []>} : vector<1x400xf32>, vector<400x8xf32>, vector<1x8xf32> -> vector<1x8xf32>
    %c0_64 = arith.constant 0 : index
    %c0_65 = arith.constant 0 : index
    %213 = vector.load %arg22[%c0_64, %c0_65] : memref<1x1xf32, #tpu.memory_space<vmem>>, vector<1x1xf32>
    %214 = vector.broadcast %213 : vector<1x1xf32> to vector<1x8xf32>
    %215 = arith.addf %212, %214 : vector<1x8xf32>
    %216 = arith.negf %215 : vector<1x8xf32>
    %217 = math.exp %216 : vector<1x8xf32>
    %cst_66 = arith.constant 1.000000e+00 : f32
    %218 = vector.broadcast %cst_66 : f32 to vector<1x8xf32>
    %219 = arith.addf %218, %217 : vector<1x8xf32>
    %220 = arith.divf %218, %219 : vector<1x8xf32>
    %221 = vector.shape_cast %220 : vector<1x8xf32> to vector<1x1x8xf32>
    %c0_67 = arith.constant 0 : index
    %c0_68 = arith.constant 0 : index
    %c0_69 = arith.constant 0 : index
    %222 = vector.load %arg23[%c0_67, %c0_68, %c0_69] : memref<1x1x8xf32, #tpu.memory_space<vmem>>, vector<1x1x8xf32>
    tpu.vector_store %arg23[%c0_67, %c0_68, %c0_69], %221 {strides = array<i32>} : memref<1x1x8xf32, #tpu.memory_space<vmem>>, vector<1x1x8xf32>,
    return
  }
  func.func @transform_0(%arg0: i32) -> (i32, i32, i32) {
    %c0_i32 = arith.constant 0 : i32
    %c0_i32_0 = arith.constant 0 : i32
    %c0_i32_1 = arith.constant 0 : i32
    return %arg0, %c0_i32, %c0_i32_0 : i32, i32, i32
  }
  func.func @transform_1(%arg0: i32) -> (i32, i32, i32) {
    %c0_i32 = arith.constant 0 : i32
    %c0_i32_0 = arith.constant 0 : i32
    %c0_i32_1 = arith.constant 0 : i32
    return %arg0, %c0_i32, %c0_i32_0 : i32, i32, i32
  }
  func.func @transform_2(%arg0: i32) -> (i32, i32) {
    %c0_i32 = arith.constant 0 : i32
    %c0_i32_0 = arith.constant 0 : i32
    %c0_i32_1 = arith.constant 0 : i32
    return %c0_i32, %c0_i32_0 : i32, i32
  }
  func.func @transform_3(%arg0: i32) -> (i32, i32) {
    %c0_i32 = arith.constant 0 : i32
    %c0_i32_0 = arith.constant 0 : i32
    %c0_i32_1 = arith.constant 0 : i32
    return %c0_i32, %c0_i32_0 : i32, i32
  }
  func.func @transform_4(%arg0: i32) -> (i32, i32) {
    %c0_i32 = arith.constant 0 : i32
    %c0_i32_0 = arith.constant 0 : i32
    %c0_i32_1 = arith.constant 0 : i32
    return %c0_i32, %c0_i32_0 : i32, i32
  }
  func.func @transform_5(%arg0: i32) -> (i32, i32) {
    %c0_i32 = arith.constant 0 : i32
    %c0_i32_0 = arith.constant 0 : i32
    %c0_i32_1 = arith.constant 0 : i32
    return %c0_i32, %c0_i32_0 : i32, i32
  }
  func.func @transform_6(%arg0: i32) -> (i32, i32) {
    %c0_i32 = arith.constant 0 : i32
    %c0_i32_0 = arith.constant 0 : i32
    %c0_i32_1 = arith.constant 0 : i32
    return %c0_i32, %c0_i32_0 : i32, i32
  }
  func.func @transform_7(%arg0: i32) -> (i32, i32) {
    %c0_i32 = arith.constant 0 : i32
    %c0_i32_0 = arith.constant 0 : i32
    %c0_i32_1 = arith.constant 0 : i32
    return %c0_i32, %c0_i32_0 : i32, i32
  }
  func.func @transform_8(%arg0: i32) -> (i32, i32) {
    %c0_i32 = arith.constant 0 : i32
    %c0_i32_0 = arith.constant 0 : i32
    %c0_i32_1 = arith.constant 0 : i32
    return %c0_i32, %c0_i32_0 : i32, i32
  }
  func.func @transform_9(%arg0: i32) -> (i32, i32) {
    %c0_i32 = arith.constant 0 : i32
    %c0_i32_0 = arith.constant 0 : i32
    %c0_i32_1 = arith.constant 0 : i32
    return %c0_i32, %c0_i32_0 : i32, i32
  }
  func.func @transform_10(%arg0: i32) -> (i32, i32) {
    %c0_i32 = arith.constant 0 : i32
    %c0_i32_0 = arith.constant 0 : i32
    %c0_i32_1 = arith.constant 0 : i32
    return %c0_i32, %c0_i32_0 : i32, i32
  }
  func.func @transform_11(%arg0: i32) -> (i32, i32) {
    %c0_i32 = arith.constant 0 : i32
    %c0_i32_0 = arith.constant 0 : i32
    %c0_i32_1 = arith.constant 0 : i32
    return %c0_i32, %c0_i32_0 : i32, i32
  }
  func.func @transform_12(%arg0: i32) -> (i32, i32) {
    %c0_i32 = arith.constant 0 : i32
    %c0_i32_0 = arith.constant 0 : i32
    %c0_i32_1 = arith.constant 0 : i32
    return %c0_i32, %c0_i32_0 : i32, i32
  }
  func.func @transform_13(%arg0: i32) -> (i32, i32) {
    %c0_i32 = arith.constant 0 : i32
    %c0_i32_0 = arith.constant 0 : i32
    %c0_i32_1 = arith.constant 0 : i32
    return %c0_i32, %c0_i32_0 : i32, i32
  }
  func.func @transform_14(%arg0: i32) -> (i32, i32) {
    %c0_i32 = arith.constant 0 : i32
    %c0_i32_0 = arith.constant 0 : i32
    %c0_i32_1 = arith.constant 0 : i32
    return %c0_i32, %c0_i32_0 : i32, i32
  }
  func.func @transform_15(%arg0: i32) -> (i32, i32) {
    %c0_i32 = arith.constant 0 : i32
    %c0_i32_0 = arith.constant 0 : i32
    %c0_i32_1 = arith.constant 0 : i32
    return %c0_i32, %c0_i32_0 : i32, i32
  }
  func.func @transform_16(%arg0: i32) -> (i32, i32) {
    %c0_i32 = arith.constant 0 : i32
    %c0_i32_0 = arith.constant 0 : i32
    %c0_i32_1 = arith.constant 0 : i32
    return %c0_i32, %c0_i32_0 : i32, i32
  }
  func.func @transform_17(%arg0: i32) -> (i32, i32) {
    %c0_i32 = arith.constant 0 : i32
    %c0_i32_0 = arith.constant 0 : i32
    %c0_i32_1 = arith.constant 0 : i32
    return %c0_i32, %c0_i32_0 : i32, i32
  }
  func.func @transform_18(%arg0: i32) -> (i32, i32) {
    %c0_i32 = arith.constant 0 : i32
    %c0_i32_0 = arith.constant 0 : i32
    %c0_i32_1 = arith.constant 0 : i32
    return %c0_i32, %c0_i32_0 : i32, i32
  }
  func.func @transform_19(%arg0: i32) -> (i32, i32) {
    %c0_i32 = arith.constant 0 : i32
    %c0_i32_0 = arith.constant 0 : i32
    %c0_i32_1 = arith.constant 0 : i32
    return %c0_i32, %c0_i32_0 : i32, i32
  }
  func.func @transform_20(%arg0: i32) -> (i32, i32) {
    %c0_i32 = arith.constant 0 : i32
    %c0_i32_0 = arith.constant 0 : i32
    %c0_i32_1 = arith.constant 0 : i32
    return %c0_i32, %c0_i32_0 : i32, i32
  }
  func.func @transform_21(%arg0: i32) -> (i32, i32) {
    %c0_i32 = arith.constant 0 : i32
    %c0_i32_0 = arith.constant 0 : i32
    %c0_i32_1 = arith.constant 0 : i32
    return %c0_i32, %c0_i32_0 : i32, i32
  }
  func.func @transform_22(%arg0: i32) -> (i32, i32, i32) {
    %c0_i32 = arith.constant 0 : i32
    %c0_i32_0 = arith.constant 0 : i32
    %c0_i32_1 = arith.constant 0 : i32
    return %arg0, %c0_i32, %c0_i32_0 : i32, i32, i32
  }
}

</mosaic_0001>

<bundles_post_ra>
// kernel: cnn1d_linpool_forward.1
= control target key start
LH: loop header
LB: loop body
LE: loop exit
PB: predicated region body
PF: predicated region fallthrough
CT: control target
= control target key end

     0   :  { %s6034_s0 = inlined_call_operand.vmem [shape: bf16[2,8,264], index: 0, kind: input, shape index: {}]   ;;  %s6035_s1 = inlined_call_operand.vmem [shape: bf16[2,8,256], index: 1, kind: input, shape index: {}]   ;;  %s6036_s2 = inlined_call_operand.vmem [shape: bf16[32,240], index: 2, kind: input, shape index: {}]   ;;  %s6037_s3 = inlined_call_operand.vmem [shape: f32[32,1], index: 3, kind: input, shape index: {}]   ;;  %s6038_s4 = inlined_call_operand.vmem [shape: bf16[64,320], index: 4, kind: input, shape index: {}]   ;;  %s6039_s5 = inlined_call_operand.vmem [shape: f32[64,1], index: 5, kind: input, shape index: {}]   ;;  %s6040_s6 = inlined_call_operand.vmem [shape: bf16[4,192], index: 6, kind: input, shape index: {}]   ;;  %s6041_s7 = inlined_call_operand.vmem [shape: f32[4,1], index: 7, kind: input, shape index: {}]   ;;  %s6042_s8 = inlined_call_operand.vmem [shape: f32[2,4], index: 8, kind: input, shape index: {}]   ;;  %s6043_s9 = inlined_call_operand.vmem [shape: f32[2,1], index: 9, kind: input, shape index: {}]   ;;  %s6044_s10 = inlined_call_operand.vmem [shape: f32[4,2], index: 10, kind: input, shape index: {}]   ;;  %s6045_s11 = inlined_call_operand.vmem [shape: f32[4,1], index: 11, kind: input, shape index: {}]   ;;  %s6046_s12 = inlined_call_operand.vmem [shape: bf16[4,192], index: 12, kind: input, shape index: {}]   ;;  %s6047_s13 = inlined_call_operand.vmem [shape: f32[4,1], index: 13, kind: input, shape index: {}]   ;;  %s6048_s14 = inlined_call_operand.vmem [shape: f32[1,2], index: 14, kind: input, shape index: {}]   ;;  %s6049_s15 = inlined_call_operand.<no memory space> [shape: f32[1,1], index: 15, kind: input, shape index: {}]   ;;  %s6050_s16 = inlined_call_operand.vmem [shape: f32[2,1], index: 16, kind: input, shape index: {}]   ;;  %s6051_s17 = inlined_call_operand.vmem [shape: f32[2,1], index: 17, kind: input, shape index: {}]   ;;  %s6052_s18 = inlined_call_operand.vmem [shape: f32[400,6], index: 18, kind: input, shape index: {}]   ;;  %s6053_s19 = inlined_call_operand.vmem [shape: f32[400,1], index: 19, kind: input, shape index: {}]   ;;  %s6054_s20 = inlined_call_operand.vmem [shape: f32[1,400], index: 20, kind: input, shape index: {}]   ;;  %s6055_s22 = inlined_call_operand.vmem [shape: f32[2,1,8], index: 22, kind: output, shape index: {}]   ;;  %s6056_s21 = inlined_call_operand.<no memory space> [shape: f32[1,1], index: 21, kind: input, shape index: {}]  }
   0x1   :  { %6074 = sst [smem:[#allocation4_spill]] %s6034_s0  ;;  %v27_v0 = vstv %s6049_s15  ;;  %v29_v1 = vstv %s6056_s21 }
   0x2   :  { %6075 = sst [smem:[#allocation5_spill]] %s6035_s1  ;;  %28 = vst [vmem:[#allocation2] sm:$0x1] %v27_v0  ;;  %30 = vst [vmem:[#allocation3] sm:$0x1] %v29_v1 }
   0x3   :  { %6076 = sst [smem:[#allocation6_spill]] %s6036_s2 }
   0x4   :  { %6077 = sst [smem:[#allocation7_spill]] %s6037_s3 }
   0x5   :  { %6078 = sst [smem:[#allocation8_spill]] %s6038_s4  ;;  %s4607_s4 = smov 0  }
   0x6   :  { %6079 = sst [smem:[#allocation9_spill]] %s6039_s5 }
   0x7   :  { %6080 = sst [smem:[#allocation10_spill]] %s6040_s6 }
   0x8 LB: > { %s3737_s0 = sadd.s32 4294967295, %s4469_s4   ;;  %p3741_p0 = scmp.ge.s32.totalorder %s4469_s4, 1  ;;  %s4469_s4 = sphi %s4607_s4, %s36_s4  }
   0x9   : > { %p626_p1 = scmp.lt.s32.totalorder %s4469_s4, 3 }
   0xb   : > { %p627_p2 = pnand %p3741_p0, %p626_p1 }
   0xc   : > { %p691_p3 = scmp.lt.s32.totalorder (!%p627_p2), %s3737_s0, 1  ;;  %s6081_s5 = sld [smem:[#allocation5_spill]] (!%p627_p2)  ;;  %vm722_vm0 = vcmask (!%p627_p2), 982016   ;;  %vm795_vm1 = vcmask (!%p627_p2), 1043456   ;;  %vm733_vm2 = vcmask (!%p627_p2), 916480   ;;  %vm744_vm3 = vcmask (!%p627_p2), 850944  }
   0xd   : > { %630 = sbr.rel (%p627_p2) target bundleno = 3790 (0xece), region = 108  ;;  %s6082_s26 = sld [smem:[#allocation4_spill]] (!%p627_p2)  ;;  %vm755_vm4 = vcmask (!%p627_p2), 785408   ;;  %vm766_vm5 = vcmask (!%p627_p2), 719872   ;;  %vm777_vm6 = vcmask (!%p627_p2), 654336   ;;  %vm788_vm7 = vcmask (!%p627_p2), 588800  }
   0xe   : > { %s6069_s27 = smov (!%p627_p2), 120   ;;  %s6065_s3 = smov (!%p627_p2), 112   ;;  %vm894_vm8 = vcmask (!%p627_p2), 523264   ;;  %vm1052_vm9 = vcmask (!%p627_p2), 130048  }
   0xf   : > { %s6063_s28 = smov (!%p627_p2), 104   ;;  %s4474_s29 = smov (!%p627_p2), 96  }
  0x10   : > { %s4475_s30 = smov (!%p627_p2), 88   ;;  %s6061_s23 = smov (!%p627_p2), 64  }
  0x11   : > { %s4479_s1 = smov (!%p627_p2), 16   ;;  %s6083_s6 = sld [smem:[#allocation6_spill]] (!%p627_p2) }
  0x14   : > { %s6095_s0 = smov (!%p691_p3, %s3737_s0), 1 }
  0x15   : > { %s3841_s15 = sshll.u32 %s6095_s0, 3  ;;  %s4156_s21 = smul.u32 12, %s6095_s0 }
  0x16   : > { %s700_s24 = scalar_lea.vmem %s6081_s5, %s3841_s15  ;;  %s4476_s15 = smov 80  }
  0x17   : > { %v707_v2 = vld [vmem:[%s700_s24] sm:$0xff]  ;;  %s4625_s2 = scalar_lea.vmem %s6082_s26, %s4156_s21  ;;  %s4477_s21 = smov 72  }
  0x18   : > { %v4627_v3 = vcombine.low %v707_v2, %v707_v2  ;;  %v705_v4 = vld [vmem:[%s4625_s2] sm:$0xff]  ;;  %v4634_v6 = vcombine.high %v707_v2, %v707_v2  ;;  %v4336_v8 = vld [vmem:[%s4625_s2 + $0x8] ss:$0 sps:$4 sm:$0xff]   ;;  %s6084_s2 = sld [smem:[#allocation7_spill]]  ;;  %s6087_s5 = smov 64  }
  0x19   : > { %v4630_v5 = vcombine.low %v705_v4, %v705_v4  ;;  %v4638_v7 = vcombine.high %v705_v4, %v705_v4  ;;  %v4480_v4 = vmov 0  }
  0x1a   : > { %724 = vrot.lane.b32.xlu1 %v4627_v3, %s6069_s27  ;;  %1242 = vmatprep.subr.bf16.mxu1 %v4480_v4 }
  0x1b   : > { %718 = vrot.lane.b32.xlu0 %v4630_v5, %s6069_s27  ;;  %4180 = vset.pattern.permute.xlu1 %v4480_v4 }
  0x1c   : > { %4181 = vset.pattern.permute.xlu0 %v4480_v4 }
  0x1e   : > { %726 = vrot.lane.b32.xlu1 %v4634_v6, %s6069_s27 }
  0x1f   : > { %720 = vrot.lane.b32.xlu0 %v4638_v7, %s6069_s27 }
  0x22   : > { %731 = vrot.lane.b32.xlu1 %v4638_v7, %s6065_s3 }
  0x23   : > { %729 = vrot.lane.b32.xlu0 %v4630_v5, %s6065_s3 }
  0x26   : > { %737 = vrot.lane.b32.xlu1 %v4634_v6, %s6065_s3 }
  0x27   : > { %735 = vrot.lane.b32.xlu0 %v4627_v3, %s6065_s3 }
  0x2a   : > { %742 = vrot.lane.b32.xlu1 %v4638_v7, %s6063_s28 }
  0x2b   : > { %740 = vrot.lane.b32.xlu0 %v4630_v5, %s6063_s28 }
  0x2e   : > { %748 = vrot.lane.b32.xlu1 %v4634_v6, %s6063_s28 }
  0x2f   : > { %746 = vrot.lane.b32.xlu0 %v4627_v3, %s6063_s28  ;;  %s6092_s28 = sld [smem:[#allocation10_spill]] }
  0x32   : > { %753 = vrot.lane.b32.xlu1 %v4638_v7, %s4474_s29 }
  0x33   : > { %751 = vrot.lane.b32.xlu0 %v4630_v5, %s4474_s29 }
  0x36   : > { %759 = vrot.lane.b32.xlu1 %v4634_v6, %s4474_s29 }
  0x37   : > { %757 = vrot.lane.b32.xlu0 %v4627_v3, %s4474_s29 }
  0x3a   : > { %764 = vrot.lane.b32.xlu1 %v4638_v7, %s4475_s30 }
  0x3b   : > { %762 = vrot.lane.b32.xlu0 %v4630_v5, %s4475_s30 }
  0x3e   : > { %770 = vrot.lane.b32.xlu1 %v4634_v6, %s4475_s30 }
  0x3f   : > { %768 = vrot.lane.b32.xlu0 %v4627_v3, %s4475_s30 }
  0x42   : > { %775 = vrot.lane.b32.xlu1 %v4638_v7, %s4476_s15 }
  0x43   : > { %773 = vrot.lane.b32.xlu0 %v4630_v5, %s4476_s15 }
  0x46   : > { %781 = vrot.lane.b32.xlu1 %v4634_v6, %s4476_s15 }
  0x47   : > { %779 = vrot.lane.b32.xlu0 %v4627_v3, %s4476_s15 }
  0x4a   : > { %786 = vrot.lane.b32.xlu1 %v4638_v7, %s4477_s21 }
  0x4b   : > { %784 = vrot.lane.b32.xlu0 %v4630_v5, %s4477_s21 }
  0x4e   : > { %790 = vrot.lane.b32.xlu1 %v4627_v3, %s4477_s21 }
  0x4f   : > { %935 = vrot.lane.b32.xlu0 %v4336_v8, %s4477_s21  ;;  %v4831_v8 = vsel %vm795_vm1, %v4638_v7, %v4634_v6 }
  0x52   : > { %909 = vrot.lane.b32.xlu1 %v4630_v5, %s6061_s23 }
  0x53   : > { %792 = vrot.lane.b32.xlu0 %v4634_v6, %s4477_s21 }
  0x57   : > { %911 = vrot.lane.b32.xlu0 %v4638_v7, %s6061_s23 }
  0x8c   : > { %v725_v9 = vpop.permute.xlu1 %724 }
  0x8d   : > { %v719_v10 = vpop.permute.xlu0 %718 }
  0x90   : > { %v4698_v11 = vpop.permute.xlu1 %726 }
  0x91   : > { %v4700_v12 = vpop.permute.xlu0 %720  ;;  %v728_v13 = vsel %vm722_vm0, %v725_v9, %v4698_v11 }
  0x92   : > { %v4707_v14 = vsel %vm795_vm1, %v4634_v6, %v4700_v12  ;;  %v723_v15 = vsel %vm722_vm0, %v719_v10, %v4700_v12 }
  0x93   : > { %956 = vrot.lane.b32.xlu0 %v4707_v14, %s6061_s23  ;;  %v4715_v16 = vsel %vm795_vm1, %v4627_v3, %v723_v15  ;;  %v4718_v17 = vsel %vm795_vm1, %v723_v15, %v728_v13 }
  0x94   : > { %v4720_v18 = vpop.permute.xlu1 %731  ;;  %954 = vrot.lane.b32.xlu1 %v4715_v16, %s6061_s23 }
  0x95   : > { %v730_v19 = vpop.permute.xlu0 %729  ;;  %v4727_v20 = vsel %vm795_vm1, %v4698_v11, %v4720_v18 }
  0x96   : > { %v734_v21 = vsel %vm733_vm2, %v730_v19, %v4720_v18 }
  0x97   : > { %960 = vrot.lane.b32.xlu0 %v4727_v20, %s6061_s23  ;;  %v4734_v22 = vsel %vm795_vm1, %v728_v13, %v734_v21  ;;  %v4839_v13 = vsel %vm795_vm1, %v4630_v5, %v4627_v3 }
  0x98   : > { %v4736_v23 = vpop.permute.xlu1 %737  ;;  %958 = vrot.lane.b32.xlu1 %v4734_v22, %s6061_s23 }
  0x99   : > { %v736_v24 = vpop.permute.xlu0 %735 }
  0x9a   : > { %v739_v25 = vsel %vm733_vm2, %v736_v24, %v4736_v23  ;;  %v4882_v24 = vsel %vm795_vm1, %v4700_v12, %v4698_v11 }
  0x9b   : > { %v4743_v26 = vsel %vm795_vm1, %v734_v21, %v739_v25 }
  0x9c   : > { %v4745_v27 = vpop.permute.xlu1 %742 }
  0x9d   : > { %v741_v28 = vpop.permute.xlu0 %740  ;;  %v919_v29 = vsel %vm795_vm1, %v4736_v23, %v4745_v27 }
  0x9e   : > { %v745_v30 = vsel %vm744_vm3, %v741_v28, %v4745_v27  ;;  %964 = vrot.lane.b32.xlu0 %v919_v29, %s6061_s23 }
  0x9f   : > { %v4753_v31 = vsel %vm795_vm1, %v739_v25, %v745_v30  ;;  %v4891_v25 = vsel %vm795_vm1, %v4720_v18, %v4736_v23 }
  0xa0   : > { %v4755_v32 = vpop.permute.xlu1 %748  ;;  %962 = vrot.lane.b32.xlu1 %v4753_v31, %s6061_s23 }
  0xa1   : > { %v747_v33 = vpop.permute.xlu0 %746  ;;  %v4900_v11 = vsel %vm795_vm1, %v4745_v27, %v4755_v32 }
  0xa2   : > { %v750_v34 = vsel %vm744_vm3, %v747_v33, %v4755_v32 }
  0xa3   : > { %v4761_v35 = vsel %vm795_vm1, %v745_v30, %v750_v34 }
  0xa4   : > { %v4763_v36 = vpop.permute.xlu1 %753 }
  0xa5   : > { %v752_v37 = vpop.permute.xlu0 %751  ;;  %v921_v38 = vsel %vm795_vm1, %v4755_v32, %v4763_v36 }
  0xa6   : > { %v756_v39 = vsel %vm755_vm4, %v752_v37, %v4763_v36  ;;  %968 = vrot.lane.b32.xlu0 %v921_v38, %s6061_s23 }
  0xa7   : > { %v4772_v40 = vsel %vm795_vm1, %v750_v34, %v756_v39 }
  0xa8   : > { %v4774_v41 = vpop.permute.xlu1 %759  ;;  %966 = vrot.lane.b32.xlu1 %v4772_v40, %s6061_s23 }
  0xa9   : > { %v758_v42 = vpop.permute.xlu0 %757  ;;  %v4909_v12 = vsel %vm795_vm1, %v4763_v36, %v4774_v41 }
  0xaa   : > { %v761_v43 = vsel %vm755_vm4, %v758_v42, %v4774_v41 }
  0xab   : > { %v4781_v44 = vsel %vm795_vm1, %v756_v39, %v761_v43 }
  0xac   : > { %v4783_v45 = vpop.permute.xlu1 %764 }
  0xad   : > { %v763_v46 = vpop.permute.xlu0 %762  ;;  %v923_v47 = vsel %vm795_vm1, %v4774_v41, %v4783_v45 }
  0xae   : > { %v767_v48 = vsel %vm766_vm5, %v763_v46, %v4783_v45  ;;  %972 = vrot.lane.b32.xlu0 %v923_v47, %s6061_s23 }
  0xaf   : > { %v922_v49 = vsel %vm795_vm1, %v761_v43, %v767_v48 }
  0xb0   : > { %v4792_v50 = vpop.permute.xlu1 %770  ;;  %970 = vrot.lane.b32.xlu1 %v922_v49, %s6061_s23 }
  0xb1   : > { %v769_v51 = vpop.permute.xlu0 %768  ;;  %v4920_v27 = vsel %vm795_vm1, %v4783_v45, %v4792_v50 }
  0xb2   : > { %v772_v52 = vsel %vm766_vm5, %v769_v51, %v4792_v50 }
  0xb3   : > { %v4798_v53 = vsel %vm795_vm1, %v767_v48, %v772_v52 }
  0xb4   : > { %v4800_v54 = vpop.permute.xlu1 %775 }
  0xb5   : > { %v774_v55 = vpop.permute.xlu0 %773  ;;  %v925_v56 = vsel %vm795_vm1, %v4792_v50, %v4800_v54 }
  0xb6   : > { %v778_v57 = vsel %vm777_vm6, %v774_v55, %v4800_v54  ;;  %976 = vrot.lane.b32.xlu0 %v925_v56, %s6061_s23 }
  0xb7   : > { %v924_v58 = vsel %vm795_vm1, %v772_v52, %v778_v57  ;;  %v4339_v52 = vld [vmem:[%s6083_s6 + $0x4] ss:$8 sps:$4 sm:$0xff]  }
  0xb8   : > { %v4808_v59 = vpop.permute.xlu1 %781  ;;  %974 = vrot.lane.b32.xlu1 %v924_v58, %s6061_s23  ;;  %3754 = vmatprep.mubr.msk.bf16.mxu0 %vm733_vm2, %v4339_v52 }
  0xb9   : > { %v780_v60 = vpop.permute.xlu0 %779  ;;  %3756 = vmatprep.mubr.msk.bf16.mxu1 %vm733_vm2, %v4339_v52 }
  0xba   : > { %v783_v61 = vsel %vm777_vm6, %v780_v60, %v4808_v59  ;;  %994 = vrot.lane.b32.xlu0 %v4707_v14, %s4479_s1 }
  0xbb   : > { %v4815_v62 = vsel %vm795_vm1, %v778_v57, %v783_v61 }
  0xbc   : > { %v4817_v63 = vpop.permute.xlu1 %786 }
  0xbd   : > { %v785_v0 = vpop.permute.xlu0 %784  ;;  %v927_v15 = vsel %vm795_vm1, %v4808_v59, %v4817_v63 }
  0xbe   : > { %v789_v1 = vsel %vm788_vm7, %v785_v0, %v4817_v63  ;;  %998 = vrot.lane.b32.xlu0 %v4727_v20, %s4479_s1 }
  0xbf   : > { %v926_v2 = vsel %vm795_vm1, %v783_v61, %v789_v1 }
  0xc0   : > { %978 = vrot.lane.b32.xlu1 %v926_v2, %s6061_s23  ;;  %v791_v10 = vpop.permute.xlu1 %790 }
  0xc1   : > { %v936_v9 = vpop.permute.xlu0 %935 }
  0xc2   : > { %1002 = vrot.lane.b32.xlu0 %v919_v29, %s4479_s1  ;;  %v937_v3 = vsel %vm788_vm7, %v4817_v63, %v936_v9  ;;  %v4930_v29 = vsel %vm795_vm1, %v4800_v54, %v4808_v59 }
  0xc3   : > { %v939_v5 = vsel %vm795_vm1, %v4808_v59, %v937_v3 }
  0xc4   : > { %868 = vrot.lane.b32.xlu1 %v4831_v8, %s6061_s23  ;;  %v910_v20 = vpop.permute.xlu1 %909 }
  0xc5   : > { %v4841_v14 = vpop.permute.xlu0 %792 }
  0xc6   : > { %1006 = vrot.lane.b32.xlu0 %v921_v38, %s4479_s1  ;;  %v794_v6 = vsel %vm788_vm7, %v791_v10, %v4841_v14 }
  0xc7   : > { %v4847_v7 = vsel %vm795_vm1, %v789_v1, %v794_v6 }
  0xc8   : > { %866 = vrot.lane.b32.xlu1 %v4839_v13, %s6061_s23 }
  0xca   : > { %1010 = vrot.lane.b32.xlu0 %v923_v47, %s4479_s1 }
  0xcc   : > { %992 = vrot.lane.b32.xlu1 %v4715_v16, %s4479_s1  ;;  %v912_v16 = vpop.permute.xlu0 %911 }
  0xcd   : > { %v931_v19 = vsel %vm795_vm1, %v4841_v14, %v912_v16  ;;  %v913_v21 = vsel %vm894_vm8, %v910_v20, %v912_v16 }
  0xce   : > { %1014 = vrot.lane.b32.xlu0 %v925_v56, %s4479_s1 }
  0xd0   : > { %996 = vrot.lane.b32.xlu1 %v4734_v22, %s4479_s1  ;;  %v929_v22 = vsel %vm795_vm1, %v794_v6, %v913_v21  ;;  %v1143_v21 = vld [vmem:[%s6084_s2 + $0x18] sm:$0xff] }
  0xd2   : > { %980 = vrot.lane.b32.xlu0 %v939_v5, %s6061_s23 }
  0xd4   : > { %1000 = vrot.lane.b32.xlu1 %v4753_v31, %s4479_s1 }
  0xd6   : > { %1018 = vrot.lane.b32.xlu0 %v927_v15, %s4479_s1  ;;  %v1142_v15 = vld [vmem:[%s6084_s2 + $0x10] sm:$0xff] }
  0xd8   : > { %1004 = vrot.lane.b32.xlu1 %v4772_v40, %s4479_s1 }
  0xda   : > { %1022 = vrot.lane.b32.xlu0 %v931_v19, %s4479_s1 }
  0xdc   : > { %1008 = vrot.lane.b32.xlu1 %v922_v49, %s4479_s1 }
  0xe0   : > { %1012 = vrot.lane.b32.xlu1 %v924_v58, %s4479_s1 }
  0xe4   : > { %1016 = vrot.lane.b32.xlu1 %v926_v2, %s4479_s1 }
  0xe8   : > { %1020 = vrot.lane.b32.xlu1 %v929_v22, %s4479_s1 }
  0xec   : > { %872 = vrot.lane.b32.xlu1 %v4882_v24, %s6061_s23 }
  0xf0   : > { %870 = vrot.lane.b32.xlu1 %v4718_v17, %s6061_s23 }
  0xf4   : > { %876 = vrot.lane.b32.xlu1 %v4891_v25, %s6061_s23 }
  0xf8   : > { %874 = vrot.lane.b32.xlu1 %v4743_v26, %s6061_s23 }
  0xfc   : > { %880 = vrot.lane.b32.xlu1 %v4900_v11, %s6061_s23 }
 0x100   : > { %878 = vrot.lane.b32.xlu1 %v4761_v35, %s6061_s23 }
 0x104   : > { %884 = vrot.lane.b32.xlu1 %v4909_v12, %s6061_s23 }
 0x105   : > { %v957_v18 = vpop.permute.xlu0 %956 }
 0x106   : > { %1026 = vrot.lane.b32.xlu0 %v957_v18, %s4479_s1  ;;  %v955_v30 = vpop.permute.xlu1 %954 }
 0x107   : > { %v982_v40 = vsel %vm894_vm8, %v955_v30, %v957_v18 }
 0x108   : > { %882 = vrot.lane.b32.xlu1 %v4781_v44, %s6061_s23 }
 0x109   : > { %v961_v23 = vpop.permute.xlu0 %960 }
 0x10a   : > { %1030 = vrot.lane.b32.xlu0 %v961_v23, %s4479_s1  ;;  %v959_v32 = vpop.permute.xlu1 %958 }
 0x10b   : > { %v983_v43 = vsel %vm894_vm8, %v959_v32, %v961_v23 }
 0x10c   : > { %888 = vrot.lane.b32.xlu1 %v4920_v27, %s6061_s23 }
 0x110   : > { %v965_v28 = vpop.permute.xlu0 %964  ;;  %886 = vrot.lane.b32.xlu1 %v4798_v53, %s6061_s23 }
 0x111   : > { %1034 = vrot.lane.b32.xlu0 %v965_v28, %s4479_s1 }
 0x112   : > { %v963_v34 = vpop.permute.xlu1 %962 }
 0x113   : > { %v984_v47 = vsel %vm894_vm8, %v963_v34, %v965_v28 }
 0x114   : > { %892 = vrot.lane.b32.xlu1 %v4930_v29, %s6061_s23 }
 0x118   : > { %v969_v31 = vpop.permute.xlu0 %968  ;;  %890 = vrot.lane.b32.xlu1 %v4815_v62, %s6061_s23  ;;  %s6085_s23 = sld [smem:[#allocation8_spill]] }
 0x119   : > { %1038 = vrot.lane.b32.xlu0 %v969_v31, %s4479_s1 }
 0x11a   : > { %v967_v36 = vpop.permute.xlu1 %966 }
 0x11b   : > { %v985_v50 = vsel %vm894_vm8, %v967_v36, %v969_v31 }
 0x120   : > { %v973_v33 = vpop.permute.xlu0 %972 }
 0x121   : > { %1042 = vrot.lane.b32.xlu0 %v973_v33, %s4479_s1 }
 0x122   : > { %v971_v38 = vpop.permute.xlu1 %970 }
 0x123   : > { %v986_v55 = vsel %vm894_vm8, %v971_v38, %v973_v33 }
 0x128   : > { %v977_v37 = vpop.permute.xlu0 %976 }
 0x129   : > { %1046 = vrot.lane.b32.xlu0 %v977_v37, %s4479_s1 }
 0x12a   : > { %v975_v41 = vpop.permute.xlu1 %974 }
 0x12b   : > { %v987_v60 = vsel %vm894_vm8, %v975_v41, %v977_v37 }
 0x12c   : > { %v995_v39 = vpop.permute.xlu0 %994 }
 0x12d   : > { %1024 = vrot.lane.b32.xlu0 %v982_v40, %s4479_s1 }
 0x130   : > { %v999_v42 = vpop.permute.xlu0 %998 }
 0x131   : > { %1028 = vrot.lane.b32.xlu0 %v983_v43, %s4479_s1 }
 0x132   : > { %v979_v45 = vpop.permute.xlu1 %978 }
 0x134   : > { %v1003_v46 = vpop.permute.xlu0 %1002 }
 0x135   : > { %1032 = vrot.lane.b32.xlu0 %v984_v47, %s4479_s1 }
 0x136   : > { %v4945_v48 = vpop.permute.xlu1 %868 }
 0x138   : > { %v1007_v49 = vpop.permute.xlu0 %1006 }
 0x139   : > { %1036 = vrot.lane.b32.xlu0 %v985_v50, %s4479_s1 }
 0x13a   : > { %v4949_v51 = vpop.permute.xlu1 %866 }
 0x13b   : > { %v895_v43 = vsel %vm894_vm8, %v4949_v51, %v4945_v48 }
 0x13c   : > { %v1011_v54 = vpop.permute.xlu0 %1010 }
 0x13d   : > { %1040 = vrot.lane.b32.xlu0 %v986_v55, %s4479_s1 }
 0x13e   : > { %v993_v56 = vpop.permute.xlu1 %992 }
 0x13f   : > { %v1085_v57 = vsel %vm1052_vm9, %v4831_v8, %v993_v56  ;;  %v1053_v58 = vsel %vm1052_vm9, %v993_v56, %v995_v39 }
 0x140   : > { %v1015_v59 = vpop.permute.xlu0 %1014  ;;  %1189 = vmatprep.subr.bf16.mxu0 %v1085_v57  ;;  %1243 = vmatpush1.bf16.msra.mxu1 %v1053_v58 }
 0x141   : > { %1044 = vrot.lane.b32.xlu0 %v987_v60, %s4479_s1  ;;  %1190 = vmatpush1.bf16.msra.mxu0 %v4839_v13 }
 0x142   : > { %v997_v61 = vpop.permute.xlu1 %996  ;;  %1244 = vmatprep.subr.bf16.mxu1 %v4480_v4 }
 0x143   : > { %v1088_v0 = vsel %vm1052_vm9, %v4882_v24, %v997_v61  ;;  %v1054_v1 = vsel %vm1052_vm9, %v997_v61, %v999_v42 }
 0x144   : > { %v981_v2 = vpop.permute.xlu0 %980  ;;  %1191 = vmatprep.subr.bf16.mxu0 %v1088_v0  ;;  %1245 = vmatpush1.bf16.msra.mxu1 %v1054_v1 }
 0x145   : > { %1192 = vmatpush1.bf16.msra.mxu0 %v4718_v17  ;;  %v988_v8 = vsel %vm894_vm8, %v979_v45, %v981_v2  ;;  %1246 = vmatprep.subr.bf16.mxu1 %v4480_v4  ;;  %v1140_v17 = vld [vmem:[%s6084_s2] sm:$0xff] }
 0x146   : > { %1048 = vrot.lane.b32.xlu0 %v988_v8, %s4479_s1  ;;  %v1001_v9 = vpop.permute.xlu1 %1000  ;;  %1146 = vperm.xlu1 %4180, %v1140_v17  }
 0x147   : > { %v1091_v10 = vsel %vm1052_vm9, %v4891_v25, %v1001_v9  ;;  %v1055_v13 = vsel %vm1052_vm9, %v1001_v9, %v1003_v46 }
 0x148   : > { %1193 = vmatprep.subr.bf16.mxu0 %v1091_v10  ;;  %1247 = vmatpush1.bf16.msra.mxu1 %v1055_v13  ;;  %v1019_v25 = vpop.permute.xlu0 %1018 }
 0x149   : > { %1194 = vmatpush1.bf16.msra.mxu0 %v4743_v26  ;;  %1248 = vmatprep.subr.bf16.mxu1 %v4480_v4  ;;  %v1141_v26 = vld [vmem:[%s6084_s2 + $0x8] sm:$0xff]  ;;  %s6091_s2 = smov 112  }
 0x14a   : > { %1050 = vrot.lane.b32.xlu0 %v981_v2, %s4479_s1  ;;  %v1005_v6 = vpop.permute.xlu1 %1004  ;;  %1156 = vperm.xlu1 %4180, %v1142_v15   ;;  %v4337_v15 = vld [vmem:[%s6083_s6] ss:$8 sps:$4 sm:$0xff]  }
 0x14b   : > { %v1094_v3 = vsel %vm1052_vm9, %v4900_v11, %v1005_v6  ;;  %v1056_v5 = vsel %vm1052_vm9, %v1005_v6, %v1007_v49 }
 0x14c   : > { %1195 = vmatprep.subr.bf16.mxu0 %v1094_v3  ;;  %1249 = vmatpush1.bf16.msra.mxu1 %v1056_v5  ;;  %v1023_v23 = vpop.permute.xlu0 %1022 }
 0x14d   : > { %1196 = vmatpush1.bf16.msra.mxu0 %v4761_v35  ;;  %1250 = vmatprep.subr.bf16.mxu1 %v4480_v4 }
 0x14e   : > { %v1009_v16 = vpop.permute.xlu1 %1008  ;;  %1151 = vperm.xlu0 %4181, %v1141_v26   ;;  %1161 = vperm.xlu1 %4180, %v1143_v21   ;;  %v4340_v26 = vld [vmem:[%s6083_s6 + $0x14] ss:$8 sps:$4 sm:$0xff]  }
 0x14f   : > { %v1097_v19 = vsel %vm1052_vm9, %v4909_v12, %v1009_v16  ;;  %v1057_v20 = vsel %vm1052_vm9, %v1009_v16, %v1011_v54 }
 0x150   : > { %1197 = vmatprep.subr.bf16.mxu0 %v1097_v19  ;;  %1251 = vmatpush1.bf16.msra.mxu1 %v1057_v20  ;;  %v4342_v20 = vld [vmem:[%s6083_s6 + $0x10] ss:$8 sps:$4 sm:$0xff]  }
 0x151   : > { %1198 = vmatpush1.bf16.msra.mxu0 %v4781_v44  ;;  %1252 = vmatprep.subr.bf16.mxu1 %v4480_v4 }
 0x152   : > { %v1013_v35 = vpop.permute.xlu1 %1012 }
 0x153   : > { %v1100_v22 = vsel %vm1052_vm9, %v4920_v27, %v1013_v35  ;;  %v1058_v24 = vsel %vm1052_vm9, %v1013_v35, %v1015_v59 }
 0x154   : > { %1199 = vmatprep.subr.bf16.mxu0 %v1100_v22  ;;  %1253 = vmatpush1.bf16.msra.mxu1 %v1058_v24 }
 0x155   : > { %1200 = vmatpush1.bf16.msra.mxu0 %v4798_v53  ;;  %1254 = vmatprep.subr.bf16.mxu1 %v4480_v4  ;;  %v851_v53 = vsel %vm795_vm1, %v4817_v63, %v4841_v14 }
 0x156   : > { %v1017_v11 = vpop.permute.xlu1 %1016 }
 0x157   : > { %v1103_v44 = vsel %vm1052_vm9, %v4930_v29, %v1017_v11  ;;  %v1059_v12 = vsel %vm1052_vm9, %v1017_v11, %v1019_v25 }
 0x158   : > { %1201 = vmatprep.subr.bf16.mxu0 %v1103_v44  ;;  %1255 = vmatpush1.bf16.msra.mxu1 %v1059_v12 }
 0x159   : > { %1202 = vmatpush1.bf16.msra.mxu0 %v4815_v62  ;;  %1256 = vmatprep.subr.bf16.mxu1 %v4480_v4 }
 0x15a   : > { %v1021_v18 = vpop.permute.xlu1 %1020 }
 0x15b   : > { %v1106_v27 = vsel %vm1052_vm9, %v851_v53, %v1021_v18  ;;  %v1060_v28 = vsel %vm1052_vm9, %v1021_v18, %v1023_v23 }
 0x15c   : > { %1203 = vmatprep.subr.bf16.mxu0 %v1106_v27  ;;  %1257 = vmatpush1.bf16.msra.mxu1 %v1060_v28 }
 0x15d   : > { %1204 = vmatpush1.bf16.msra.mxu0 %v4847_v7  ;;  %1258 = vmatprep.subr.bf16.mxu1 %v4480_v4 }
 0x15e   : > { %v873_v29 = vpop.permute.xlu1 %872 }
 0x162   : > { %v871_v62 = vpop.permute.xlu1 %870 }
 0x163   : > { %v896_v50 = vsel %vm894_vm8, %v871_v62, %v873_v29 }
 0x166   : > { %v877_v30 = vpop.permute.xlu1 %876 }
 0x16a   : > { %v875_v32 = vpop.permute.xlu1 %874 }
 0x16b   : > { %v897_v51 = vsel %vm894_vm8, %v875_v32, %v877_v30 }
 0x16e   : > { %v881_v34 = vpop.permute.xlu1 %880 }
 0x172   : > { %v879_v63 = vpop.permute.xlu1 %878 }
 0x173   : > { %v898_v59 = vsel %vm894_vm8, %v879_v63, %v881_v34 }
 0x176   : > { %v885_v38 = vpop.permute.xlu1 %884 }
 0x178   : > { %v1027_v31 = vpop.permute.xlu0 %1026 }
 0x17a   : > { %v883_v40 = vpop.permute.xlu1 %882 }
 0x17b   : > { %v899_v2 = vsel %vm894_vm8, %v883_v40, %v885_v38 }
 0x17c   : > { %v1031_v33 = vpop.permute.xlu0 %1030 }
 0x17e   : > { %v889_v49 = vpop.permute.xlu1 %888 }
 0x182   : > { %v887_v55 = vpop.permute.xlu1 %886 }
 0x183   : > { %v1035_v36 = vpop.permute.xlu0 %1034  ;;  %v900_v13 = vsel %vm894_vm8, %v887_v55, %v889_v49 }
 0x186   : > { %v893_v1 = vpop.permute.xlu1 %892 }
 0x18a   : > { %v891_v17 = vpop.permute.xlu1 %890 }
 0x18b   : > { %v1039_v14 = vpop.permute.xlu0 %1038  ;;  %v901_v5 = vsel %vm894_vm8, %v891_v17, %v893_v1 }
 0x193   : > { %v1043_v37 = vpop.permute.xlu0 %1042 }
 0x19b   : > { %v1047_v39 = vpop.permute.xlu0 %1046 }
 0x19f   : > { %v1025_v41 = vpop.permute.xlu0 %1024 }
 0x1a0   : > { %v1110_v7 = vsel %vm1052_vm9, %v4945_v48, %v1025_v41  ;;  %v1061_v42 = vsel %vm1052_vm9, %v1025_v41, %v1027_v31 }
 0x1a1   : > { %1205 = vmatprep.subr.bf16.mxu0 %v1110_v7  ;;  %1259 = vmatpush1.bf16.msra.mxu1 %v1061_v42 }
 0x1a2   : > { %1206 = vmatpush1.bf16.msra.mxu0 %v895_v43  ;;  %1260 = vmatprep.subr.bf16.mxu1 %v4480_v4 }
 0x1a3   : > { %v1029_v45 = vpop.permute.xlu0 %1028 }
 0x1a4   : > { %v1114_v46 = vsel %vm1052_vm9, %v873_v29, %v1029_v45  ;;  %v1062_v47 = vsel %vm1052_vm9, %v1029_v45, %v1031_v33 }
 0x1a5   : > { %1207 = vmatprep.subr.bf16.mxu0 %v1114_v46  ;;  %1261 = vmatpush1.bf16.msra.mxu1 %v1062_v47 }
 0x1a6   : > { %1208 = vmatpush1.bf16.msra.mxu0 %v896_v50  ;;  %1262 = vmatprep.subr.bf16.mxu1 %v4480_v4 }
 0x1a7   : > { %v1033_v52 = vpop.permute.xlu0 %1032 }
 0x1a8   : > { %v1118_v54 = vsel %vm1052_vm9, %v877_v30, %v1033_v52  ;;  %v1063_v48 = vsel %vm1052_vm9, %v1033_v52, %v1035_v36 }
 0x1a9   : > { %1209 = vmatprep.subr.bf16.mxu0 %v1118_v54  ;;  %1263 = vmatpush1.bf16.msra.mxu1 %v1063_v48 }
 0x1aa   : > { %1210 = vmatpush1.bf16.msra.mxu0 %v897_v51  ;;  %1264 = vmatprep.subr.bf16.mxu1 %v4480_v4 }
 0x1ab   : > { %v1037_v56 = vpop.permute.xlu0 %1036 }
 0x1ac   : > { %v1122_v57 = vsel %vm1052_vm9, %v881_v34, %v1037_v56  ;;  %v1064_v58 = vsel %vm1052_vm9, %v1037_v56, %v1039_v14 }
 0x1ad   : > { %1211 = vmatprep.subr.bf16.mxu0 %v1122_v57  ;;  %1265 = vmatpush1.bf16.msra.mxu1 %v1064_v58 }
 0x1ae   : > { %1212 = vmatpush1.bf16.msra.mxu0 %v898_v59  ;;  %1266 = vmatprep.subr.bf16.mxu1 %v4480_v4 }
 0x1af   : > { %v1041_v60 = vpop.permute.xlu0 %1040 }
 0x1b0   : > { %v1126_v61 = vsel %vm1052_vm9, %v885_v38, %v1041_v60  ;;  %v1065_v0 = vsel %vm1052_vm9, %v1041_v60, %v1043_v37 }
 0x1b1   : > { %1213 = vmatprep.subr.bf16.mxu0 %v1126_v61  ;;  %1267 = vmatpush1.bf16.msra.mxu1 %v1065_v0 }
 0x1b2   : > { %1214 = vmatpush1.bf16.msra.mxu0 %v899_v2  ;;  %1268 = vmatprep.subr.bf16.mxu1 %v4480_v4 }
 0x1b3   : > { %v1045_v8 = vpop.permute.xlu0 %1044 }
 0x1b4   : > { %v1130_v9 = vsel %vm1052_vm9, %v889_v49, %v1045_v8  ;;  %v1066_v10 = vsel %vm1052_vm9, %v1045_v8, %v1047_v39 }
 0x1b5   : > { %1215 = vmatprep.subr.bf16.mxu0 %v1130_v9  ;;  %1269 = vmatpush1.bf16.msra.mxu1 %v1066_v10 }
 0x1b6   : > { %1216 = vmatpush1.bf16.msra.mxu0 %v900_v13  ;;  %1270 = vmatprep.subr.bf16.mxu1 %v4480_v4 }
 0x1b8   : > { %v1049_v6 = vpop.permute.xlu0 %1048 }
 0x1b9   : > { %v1134_v3 = vsel %vm1052_vm9, %v893_v1, %v1049_v6 }
 0x1ba   : > { %1217 = vmatprep.subr.bf16.mxu0 %v1134_v3 }
 0x1bb   : > { %1218 = vmatpush1.bf16.msra.mxu0 %v901_v5 }
 0x1bc   : > { %v1051_v16 = vpop.permute.xlu0 %1050 }
 0x1bd   : > { %v1067_v19 = vsel %vm1052_vm9, %v1049_v6, %v1051_v16 }
 0x1be   : > { %1222 = vmatmul.mubr.bf16.vlgmr.msra.gmra.mrb[0].mxu0 %v4337_v15  ;;  %1271 = vmatpush1.bf16.msra.mxu1 %v1067_v19 }
 0x1bf   : > { %3755 = vmatprep.mubr.msk.bf16.mxu0 %vm733_vm2, %v4340_v26 }
 0x1c1   : > { %1275 = vmatmul.mubr.bf16.vlgmr.msra.gmra.mrb[0].mxu1 %v4337_v15 }
 0x1c2   : > { %3757 = vmatprep.mubr.msk.bf16.mxu1 %vm733_vm2, %v4340_v26 }
 0x1c5   : > { %v1147_v21 = vpop.permute.xlu1 %1146 }
 0x1c6   : > { %1232 = vmatmul.mubr.bf16.gmra.mrb[4].mxu0 %v4342_v20 }
 0x1c9   : > { %1283 = vmatmul.mubr.bf16.gmra.mrb[4].mxu1 %v4342_v20  ;;  %v1157_v53 = vpop.permute.xlu1 %1156 }
 0x1cd   : > { %v1152_v24 = vpop.permute.xlu0 %1151  ;;  %v1162_v39 = vpop.permute.xlu1 %1161 }
 0x291   : > { %v1223_v35 = vpop.f32.mrb[0].mxu0 }
 0x292   : > { %v1225_v22 = vpop.f32.mrb[1].mxu0  ;;  %v1224_v7 = vadd.f32 %v1223_v35, %v1147_v21 }
 0x293   : > { %v1226_v25 = vadd.f32 %v1225_v22, %v1147_v21  ;;  %v1227_v11 = vpop.f32.mrb[2].mxu0 }
 0x294   : > { %v1229_v44 = vpop.f32.mrb[3].mxu0  ;;  %v1276_v12 = vpop.f32.mrb[0].mxu1  ;;  %v1228_v38 = vadd.f32 %v1227_v11, %v1152_v24  ;;  %v1303_v58 = vmul.f32 0.01, %v1224_v7  ;;  %vm1291_vm6 = vcmp.gt.f32.partialorder %v1224_v7, 0.0 }
 0x295   : > { %v1304_v18 = vmul.f32 0.01, %v1226_v25  ;;  %v1230_v23 = vadd.f32 %v1229_v44, %v1152_v24  ;;  %v1277_v27 = vadd.f32 %v1276_v12, %v1147_v21  ;;  %v1278_v28 = vpop.f32.mrb[1].mxu1  ;;  %vm1292_vm10 = vcmp.gt.f32.partialorder %v1226_v25, 0.0 }
 0x296   : > { %v1279_v29 = vpop.f32.mrb[2].mxu1  ;;  %v1306_v51 = vmul.f32 0.01, %v1228_v38  ;;  %vm1294_vm2 = vcmp.gt.f32.partialorder %v1228_v38, 0.0  ;;  %v5076_v6 = vsel %vm1291_vm6, %v1224_v7, %v1303_v58  ;;  %vm1973_vm6 = vcmask 195584  }
 0x297   : > { %vm1295_vm11 = vcmp.gt.f32.partialorder %v1230_v23, 0.0  ;;  %v1307_v62 = vmul.f32 0.01, %v1230_v23  ;;  %v1281_v30 = vpop.f32.mrb[3].mxu1  ;;  %v1280_v31 = vadd.f32 %v1279_v29, %v1152_v24  ;;  %v5058_v32 = vsel %vm1292_vm10, %v1226_v25, %v1304_v18 }
 0x298   : > { %v1305_v34 = vmul.f32 0.01, %v1277_v27  ;;  %vm1293_vm12 = vcmp.gt.f32.partialorder %v1277_v27, 0.0  ;;  %v5073_v9 = vsel %vm1294_vm2, %v1228_v38, %v1306_v51 }
 0x299   : > { %v5060_v33 = vsel %vm1295_vm11, %v1230_v23, %v1307_v62  ;;  %v1233_v36 = vpop.f32.mrb[4].mxu0  ;;  %vm1296_vm13 = vcmp.gt.f32.partialorder %v1280_v31, 0.0  ;;  %v1308_v63 = vmul.f32 0.01, %v1280_v31  ;;  %v4202_v15 = vpack.i.bf16 %v5073_v9, %v5076_v6 }
 0x29a   : > { %v1235_v14 = vpop.f32.mrb[5].mxu0  ;;  %v4187_v37 = vpack.i.bf16 %v5060_v33, %v5058_v32  ;;  %v1317_v52 = vsel %vm1293_vm12, %v1277_v27, %v1305_v34  ;;  %v1234_v61 = vadd.f32 %v1233_v36, %v1157_v53 }
 0x29b   : > { %v1236_v40 = vadd.f32 %v1235_v14, %v1157_v53  ;;  %v1237_v41 = vpop.f32.mrb[6].mxu0  ;;  %v1320_v45 = vsel %vm1296_vm13, %v1280_v31, %v1308_v63 }
 0x29c   : > { %v1239_v42 = vpop.f32.mrb[7].mxu0  ;;  %v1284_v43 = vpop.f32.mrb[4].mxu1  ;;  %4188 = vrot.lane.b32.xlu0 %v4187_v37, %s6069_s27  ;;  %v4182_v48 = vpack.i.bf16 %v1320_v45, %v1317_v52  ;;  %v1238_v55 = vadd.f32 %v1237_v41, %v1162_v39  ;;  %v1309_v3 = vmul.f32 0.01, %v1234_v61  ;;  %vm1297_vm11 = vcmp.gt.f32.partialorder %v1234_v61, 0.0 }
 0x29d   : > { %v1310_v46 = vmul.f32 0.01, %v1236_v40  ;;  %v1240_v47 = vadd.f32 %v1239_v42, %v1162_v39  ;;  %v1285_v49 = vadd.f32 %v1284_v43, %v1157_v53  ;;  %v1286_v50 = vpop.f32.mrb[5].mxu1  ;;  %vm1298_vm14 = vcmp.gt.f32.partialorder %v1236_v40, 0.0 }
 0x29e   : > { %v1287_v54 = vpop.f32.mrb[6].mxu1  ;;  %4183 = vrot.lane.b32.xlu1 %v4182_v48, %s6069_s27  ;;  %v1312_v10 = vmul.f32 0.01, %v1238_v55  ;;  %vm1300_vm10 = vcmp.gt.f32.partialorder %v1238_v55, 0.0  ;;  %v5084_v16 = vsel %vm1297_vm11, %v1234_v61, %v1309_v3  ;;  %vm2081_vm11 = vcmask 257024  }
 0x29f   : > { %vm1301_vm15 = vcmp.gt.f32.partialorder %v1240_v47, 0.0  ;;  %v1313_v56 = vmul.f32 0.01, %v1240_v47  ;;  %v1289_v57 = vpop.f32.mrb[7].mxu1  ;;  %v1311_v59 = vmul.f32 0.01, %v1285_v49  ;;  %v1288_v60 = vadd.f32 %v1287_v54, %v1162_v39 }
 0x2a0   : > { %v5067_v0 = vsel %vm1298_vm14, %v1236_v40, %v1310_v46  ;;  %vm1299_vm3 = vcmp.gt.f32.partialorder %v1285_v49, 0.0  ;;  %v5080_v26 = vsel %vm1300_vm10, %v1238_v55, %v1312_v10  ;;  %vm1983_vm10 = vcmask 326656  }
 0x2a1   : > { %v5069_v1 = vsel %vm1301_vm15, %v1240_v47, %v1313_v56  ;;  %vm1302_vm7 = vcmp.gt.f32.partialorder %v1288_v60, 0.0  ;;  %v1314_v2 = vmul.f32 0.01, %v1288_v60  ;;  %v1323_v13 = vsel %vm1299_vm3, %v1285_v49, %v1311_v59 }
 0x2a2   : > { %v4192_v8 = vpack.i.bf16 %v5069_v1, %v5067_v0  ;;  %v4212_v19 = vpack.i.bf16 %v5080_v26, %v5084_v16 }
 0x2a3   : > { %v1326_v17 = vsel %vm1302_vm7, %v1288_v60, %v1314_v2  ;;  %vm1978_vm7 = vcmask 261120  }
 0x2a4   : > { %4193 = vrot.lane.b32.xlu0 %v4192_v8, %s6069_s27  ;;  %v4197_v5 = vpack.i.bf16 %v1326_v17, %v1323_v13 }
 0x2a6   : > { %4198 = vrot.lane.b32.xlu1 %v4197_v5, %s6069_s27 }
 0x2a8   : > { %4203 = vrot.lane.b32.xlu0 %v4202_v15, %s6069_s27 }
 0x2aa   : > { %4208 = vrot.lane.b32.xlu1 %v4187_v37, %s4479_s1 }
 0x2ac   : > { %4213 = vrot.lane.b32.xlu0 %v4212_v19, %s6069_s27 }
 0x2ae   : > { %4218 = vrot.lane.b32.xlu1 %v4192_v8, %s4479_s1  ;;  %s6067_s1 = smov 8  }
 0x30e   : > { %v4189_v20 = vpop.permute.xlu0 %4188 }
 0x30f   : > { %v4191_v35 = vunpack.i.h.bf16 %v4189_v20  ;;  %v4190_v22 = vunpack.i.l.bf16 %v4189_v20 }
 0x310   : > { %v4184_v21 = vpop.permute.xlu1 %4183 }
 0x311   : > { %v4186_v24 = vunpack.i.h.bf16 %v4184_v21  ;;  %v4185_v25 = vunpack.i.l.bf16 %v4184_v21 }
 0x313   : > { %v1405_v11 = vsel %vm722_vm0, %v4191_v35, %v4186_v24  ;;  %v1419_v44 = vmax.f32 %v1320_v45, %v4186_v24  ;;  %v1404_v12 = vsel %vm722_vm0, %v4190_v22, %v4185_v25  ;;  %v1417_v18 = vmax.f32 %v1317_v52, %v4185_v25 }
 0x314   : > { %v1418_v53 = vmax.f32 %v5060_v33, %v1405_v11  ;;  %v1416_v23 = vmax.f32 %v5058_v32, %v1404_v12 }
 0x316   : > { %v4194_v27 = vpop.permute.xlu0 %4193  ;;  %v4227_v28 = vpack.i.bf16 %v1419_v44, %v1418_v53  ;;  %v4222_v29 = vpack.i.bf16 %v1417_v18, %v1416_v23 }
 0x317   : > { %v4196_v30 = vunpack.i.h.bf16 %v4194_v27  ;;  %v4195_v31 = vunpack.i.l.bf16 %v4194_v27 }
 0x318   : > { %v4199_v62 = vpop.permute.xlu1 %4198  ;;  %4228 = vrot.lane.b32.xlu1 %v4227_v28, %s6067_s1  ;;  %4223 = vrot.lane.b32.xlu0 %v4222_v29, %s6067_s1 }
 0x319   : > { %v4201_v34 = vunpack.i.h.bf16 %v4199_v62  ;;  %v4200_v36 = vunpack.i.l.bf16 %v4199_v62 }
 0x31a   : > { %v5097_v63 = vpop.permute.xlu0 %4203 }
 0x31b   : > { %v4206_v14 = vunpack.i.h.bf16 %v5097_v63  ;;  %v4205_v37 = vunpack.i.l.bf16 %v5097_v63  ;;  %v1407_v38 = vsel %vm722_vm0, %v4196_v30, %v4201_v34  ;;  %v1423_v39 = vmax.f32 %v1326_v17, %v4201_v34 }
 0x31c   : > { %v1406_v40 = vsel %vm722_vm0, %v4195_v31, %v4200_v36  ;;  %v1421_v41 = vmax.f32 %v1323_v13, %v4200_v36  ;;  %v1422_v7 = vmax.f32 %v5069_v1, %v1407_v38  ;;  %v4209_v60 = vpop.permute.xlu1 %4208 }
 0x31d   : > { %v1420_v42 = vmax.f32 %v5067_v0, %v1406_v40  ;;  %v1361_v43 = vsel %vm722_vm0, %v4206_v14, %v4191_v35  ;;  %v1360_v45 = vsel %vm722_vm0, %v4205_v37, %v4190_v22  ;;  %v4211_v61 = vunpack.i.h.bf16 %v4209_v60 }
 0x31e   : > { %v5111_v46 = vpop.permute.xlu0 %4213  ;;  %v1369_v50 = vmax.f32 %v5073_v9, %v1361_v43  ;;  %v1368_v52 = vmax.f32 %v5076_v6, %v1360_v45  ;;  %v4237_v54 = vpack.i.bf16 %v1423_v39, %v1422_v7  ;;  %v4210_v2 = vunpack.i.l.bf16 %v4209_v60 }
 0x31f   : > { %v4216_v47 = vunpack.i.h.bf16 %v5111_v46  ;;  %v4215_v49 = vunpack.i.l.bf16 %v5111_v46  ;;  %v4232_v48 = vpack.i.bf16 %v1421_v41, %v1420_v42  ;;  %v1386_v10 = vmax.f32 %v5073_v9, %v4211_v61 }
 0x320   : > { %4238 = vrot.lane.b32.xlu1 %v4237_v54, %s6067_s1  ;;  %v4242_v58 = vpack.i.bf16 %v1369_v50, %v1368_v52  ;;  %v4219_v8 = vpop.permute.xlu1 %4218  ;;  %v1384_v13 = vmax.f32 %v5076_v6, %v4210_v2  ;;  %v1387_v21 = vmax.f32 %v5060_v33, %v4211_v61  ;;  %v1385_v35 = vmax.f32 %v5058_v32, %v4210_v2 }
 0x321   : > { %v1363_v51 = vsel %vm722_vm0, %v4216_v47, %v4196_v30  ;;  %v1362_v55 = vsel %vm722_vm0, %v4215_v49, %v4195_v31  ;;  %4233 = vrot.lane.b32.xlu0 %v4232_v48, %s6067_s1  ;;  %vm1468_vm0 = vcmask 64512   ;;  %v4221_v44 = vunpack.i.h.bf16 %v4219_v8  ;;  %s6090_s1 = smov 8  }
 0x322   : > { %v1371_v56 = vmax.f32 %v5080_v26, %v1363_v51  ;;  %v1370_v57 = vmax.f32 %v5084_v16, %v1362_v55  ;;  %v4220_v12 = vunpack.i.l.bf16 %v4219_v8 }
 0x323   : > { %v1391_v36 = vmax.f32 %v5069_v1, %v4221_v44 }
 0x324   : > { %4248 = vrot.lane.b32.xlu1 %v4222_v29, %s4475_s30  ;;  %v4257_v59 = vpack.i.bf16 %v1371_v56, %v1370_v57  ;;  %v1388_v29 = vmax.f32 %v5084_v16, %v4220_v12  ;;  %v1389_v38 = vmax.f32 %v5067_v0, %v4220_v12  ;;  %v1344_v57 = vmax.f32 %v5073_v9, %v4206_v14 }
 0x325   : > { %4243 = vrot.lane.b32.xlu0 %v4242_v58, %s6065_s3  ;;  %v1343_v58 = vmax.f32 %v5076_v6, %v4205_v37 }
 0x328   : > { %4258 = vrot.lane.b32.xlu1 %v4257_v59, %s6065_s3 }
 0x329   : > { %4253 = vrot.lane.b32.xlu0 %v4227_v28, %s4475_s30  ;;  %v1390_v28 = vmax.f32 %v5080_v26, %v4221_v44 }
 0x38a   : > { %v4229_v17 = vpop.permute.xlu1 %4228  ;;  %v4224_v3 = vpop.permute.xlu0 %4223 }
 0x38b   : > { %v4231_v5 = vunpack.i.h.bf16 %v4229_v17  ;;  %v4230_v15 = vunpack.i.l.bf16 %v4229_v17  ;;  %v4226_v19 = vunpack.i.h.bf16 %v4224_v3  ;;  %v4225_v20 = vunpack.i.l.bf16 %v4224_v3 }
 0x38d   : > { %v1470_v22 = vsel %vm1468_vm0, %v4230_v15, %v4231_v5  ;;  %v1483_v24 = vmax.f32 %v1386_v10, %v4230_v15  ;;  %v1469_v25 = vsel %vm1468_vm0, %v4225_v20, %v4226_v19  ;;  %v1481_v11 = vmax.f32 %v1384_v13, %v4225_v20 }
 0x38e   : > { %v1484_v18 = vmax.f32 %v1387_v21, %v1470_v22  ;;  %v1482_v53 = vmax.f32 %v1385_v35, %v1469_v25 }
 0x390   : > { %v4267_v23 = vpack.i.bf16 %v1484_v18, %v1483_v24  ;;  %v4262_v27 = vpack.i.bf16 %v1482_v53, %v1481_v11  ;;  %v1346_v53 = vmax.f32 %v5080_v26, %v4216_v47 }
 0x392   : > { %v4239_v62 = vpop.permute.xlu1 %4238  ;;  %4268 = vrot.lane.b32.xlu0 %v4267_v23, %s4474_s29  ;;  %4263 = vrot.lane.b32.xlu1 %v4262_v27, %s4474_s29  ;;  %v1345_v23 = vmax.f32 %v5084_v16, %v4215_v49 }
 0x393   : > { %v4234_v32 = vpop.permute.xlu0 %4233  ;;  %v4241_v33 = vunpack.i.h.bf16 %v4239_v62  ;;  %v4240_v30 = vunpack.i.l.bf16 %v4239_v62 }
 0x394   : > { %v4236_v31 = vunpack.i.h.bf16 %v4234_v32  ;;  %v4235_v34 = vunpack.i.l.bf16 %v4234_v32 }
 0x395   : > { %v1472_v39 = vsel %vm1468_vm0, %v4240_v30, %v4241_v33  ;;  %v1487_v40 = vmax.f32 %v1390_v28, %v4240_v30 }
 0x396   : > { %v1471_v41 = vsel %vm1468_vm0, %v4235_v34, %v4236_v31  ;;  %v1485_v7 = vmax.f32 %v1388_v29, %v4235_v34  ;;  %v1488_v42 = vmax.f32 %v1391_v36, %v1472_v39  ;;  %v4249_v1 = vpop.permute.xlu1 %4248 }
 0x397   : > { %v1486_v43 = vmax.f32 %v1389_v38, %v1471_v41  ;;  %v4244_v0 = vpop.permute.xlu0 %4243  ;;  %v4251_v59 = vunpack.i.h.bf16 %v4249_v1  ;;  %v4250_v60 = vunpack.i.l.bf16 %v4249_v1  ;;  %v4349_v41 = vld [vmem:[%s6085_s23 + $0x8] ss:$12 sps:$4 sm:$0xff]  }
 0x398   : > { %v4282_v50 = vpack.i.bf16 %v1488_v42, %v1487_v40  ;;  %v4246_v55 = vunpack.i.h.bf16 %v4244_v0  ;;  %v4245_v56 = vunpack.i.l.bf16 %v4244_v0  ;;  %v4345_v40 = vld [vmem:[%s6085_s23 + $0x4] ss:$12 sps:$4 sm:$0xff]   ;;  %3992 = vmatprep.mubr.msk.bf16.mxu1 %vm894_vm8, %v4349_v41 }
 0x399   : > { %v4272_v45 = vpack.i.bf16 %v1486_v43, %v1485_v7  ;;  %v1543_v6 = vsel %vm766_vm5, %v4250_v60, %v4251_v59  ;;  %1782 = vmatprep.mubr.bf16.mxu0 %v4345_v40 }
 0x39a   : > { %4283 = vrot.lane.b32.xlu1 %v4282_v50, %s4474_s29  ;;  %v4259_v52 = vpop.permute.xlu1 %4258  ;;  %v1441_v3 = vmax.f32 %v1344_v57, %v4246_v55  ;;  %v1440_v5 = vmax.f32 %v1343_v58, %v4245_v56 }
 0x39b   : > { %4273 = vrot.lane.b32.xlu0 %v4272_v45, %s4474_s29  ;;  %v4254_v51 = vpop.permute.xlu0 %4253  ;;  %v4261_v21 = vunpack.i.h.bf16 %v4259_v52  ;;  %v4260_v35 = vunpack.i.l.bf16 %v4259_v52 }
 0x39c   : > { %v4256_v61 = vunpack.i.h.bf16 %v4254_v51 }
 0x39d   : > { %v1443_v29 = vmax.f32 %v1346_v53, %v4261_v21  ;;  %v1442_v62 = vmax.f32 %v1345_v23, %v4260_v35  ;;  %v4356_v21 = vld [vmem:[%s6085_s23 + $0x4c] ss:$12 sps:$4 sm:$0xff]   ;;  %v4355_v35 = vld [vmem:[%s6085_s23 + $0x50] ss:$12 sps:$4 sm:$0xff]  }
 0x39e   : > { %4288 = vrot.lane.b32.xlu1 %v4237_v54, %s4475_s30 }
 0x39f   : > { %4278 = vrot.lane.b32.xlu0 %v4232_v48, %s4475_s30  ;;  %v4255_v48 = vunpack.i.l.bf16 %v4254_v51 }
 0x3a1   : > { %v1544_v37 = vsel %vm766_vm5, %v4255_v48, %v4256_v61 }
 0x404   : > { %v4269_v2 = vpop.permute.xlu0 %4268  ;;  %v4264_v54 = vpop.permute.xlu1 %4263 }
 0x405   : > { %v4271_v8 = vunpack.i.h.bf16 %v4269_v2  ;;  %v4270_v10 = vunpack.i.l.bf16 %v4269_v2  ;;  %v4266_v13 = vunpack.i.h.bf16 %v4264_v54  ;;  %v4265_v17 = vunpack.i.l.bf16 %v4264_v54 }
 0x407   : > { %v1515_v15 = vsel %vm755_vm4, %v4270_v10, %v4271_v8  ;;  %v1514_v9 = vsel %vm755_vm4, %v4265_v17, %v4266_v13 }
 0x408   : > { %v1523_v14 = vmax.f32 %v1441_v3, %v1515_v15  ;;  %v1522_v63 = vmax.f32 %v1440_v5, %v1514_v9  ;;  %v4343_v3 = vld [vmem:[%s6085_s23] ss:$12 sps:$4 sm:$0xff]   ;;  %v4346_v5 = vld [vmem:[%s6085_s23 + $0x1c] ss:$12 sps:$4 sm:$0xff]  }
 0x40a   : > { %v1552_v19 = vmax.f32 %v1523_v14, %v1544_v37  ;;  %v1551_v20 = vmax.f32 %v1522_v63, %v1543_v6  ;;  %v4348_v14 = vld [vmem:[%s6085_s23 + $0x18] ss:$12 sps:$4 sm:$0xff]   ;;  %v4351_v6 = vld [vmem:[%s6085_s23 + $0x34] ss:$12 sps:$4 sm:$0xff]  }
 0x40b   : > { %v4350_v37 = vld [vmem:[%s6085_s23 + $0x20] ss:$12 sps:$4 sm:$0xff]  }
 0x40c   : > { %v5159_v22 = vpack.c.bf16 %v1552_v19, %v1551_v20  ;;  %v4284_v25 = vpop.permute.xlu1 %4283  ;;  %v4354_v19 = vld [vmem:[%s6085_s23 + $0x38] ss:$12 sps:$4 sm:$0xff]   ;;  %v4353_v20 = vld [vmem:[%s6085_s23 + $0x30] ss:$12 sps:$4 sm:$0xff]  }
 0x40d   : > { %v4274_v24 = vpop.permute.xlu0 %4273  ;;  %v4286_v12 = vunpack.i.h.bf16 %v4284_v25  ;;  %v4285_v18 = vunpack.i.l.bf16 %v4284_v25 }
 0x40e   : > { %v4276_v11 = vunpack.i.h.bf16 %v4274_v24  ;;  %v4275_v44 = vunpack.i.l.bf16 %v4274_v24  ;;  %1577 = vrot.lane.b32.xlu0 %v5159_v22, %s4474_s29 }
 0x40f   : > { %v1517_v28 = vsel %vm755_vm4, %v4285_v18, %v4286_v12 }
 0x410   : > { %v1516_v27 = vsel %vm755_vm4, %v4275_v44, %v4276_v11  ;;  %v4289_v33 = vpop.permute.xlu1 %4288  ;;  %v1525_v47 = vmax.f32 %v1443_v29, %v1517_v28 }
 0x411   : > { %v4279_v32 = vpop.permute.xlu0 %4278  ;;  %v4291_v34 = vunpack.i.h.bf16 %v4289_v33  ;;  %v4290_v36 = vunpack.i.l.bf16 %v4289_v33  ;;  %v1524_v26 = vmax.f32 %v1442_v62, %v1516_v27 }
 0x412   : > { %v4281_v30 = vunpack.i.h.bf16 %v4279_v32  ;;  %v4280_v31 = vunpack.i.l.bf16 %v4279_v32  ;;  %1583 = vrot.lane.b32.xlu0 %v5159_v22, %s4475_s30 }
 0x413   : > { %v1546_v46 = vsel %vm766_vm5, %v4290_v36, %v4291_v34 }
 0x414   : > { %v1545_v16 = vsel %vm766_vm5, %v4280_v31, %v4281_v30  ;;  %v1554_v38 = vmax.f32 %v1525_v47, %v1546_v46 }
 0x415   : > { %v1553_v49 = vmax.f32 %v1524_v26, %v1545_v16 }
 0x417   : > { %v1556_v39 = vpack.c.bf16 %v1554_v38, %v1553_v49 }
 0x419   : > { %1579 = vrot.lane.b32.xlu1 %v1556_v39, %s4474_s29  ;;  %1585 = vrot.lane.b32.xlu0 %v1556_v39, %s4475_s30  ;;  %s6086_s30 = smov 104   ;;  %s6088_s29 = sld [smem:[#allocation9_spill]] }
 0x41d   : > { %1559 = vrot.lane.b32.xlu1 %v5159_v22, %s6069_s27  ;;  %1589 = vrot.lane.b32.xlu0 %v5159_v22, %s4476_s15 }
 0x41f   : > { %v1629_v7 = vld [vmem:[%s6088_s29] sm:$0xff]  ;;  %v1631_v42 = vld [vmem:[%s6088_s29 + $0x10] sm:$0xff]  ;;  %v1630_v43 = vld [vmem:[%s6088_s29 + $0x8] sm:$0xff] }
 0x420   : > { %v1633_v45 = vld [vmem:[%s6088_s29 + $0x20] sm:$0xff]  ;;  %v1632_v50 = vld [vmem:[%s6088_s29 + $0x18] sm:$0xff]  ;;  %v1635_v1 = vld [vmem:[%s6088_s29 + $0x30] sm:$0xff] }
 0x421   : > { %1561 = vrot.lane.b32.xlu1 %v1556_v39, %s6069_s27  ;;  %1591 = vrot.lane.b32.xlu0 %v1556_v39, %s4476_s15  ;;  %s4482_s15 = smov 56   ;;  %v1634_v0 = vld [vmem:[%s6088_s29 + $0x28] sm:$0xff]  ;;  %v1636_v52 = vld [vmem:[%s6088_s29 + $0x38] sm:$0xff]  ;;  %s6089_s27 = smov 120  }
 0x425   : > { %1565 = vrot.lane.b32.xlu1 %v5159_v22, %s6065_s3  ;;  %1595 = vrot.lane.b32.xlu0 %v5159_v22, %s4477_s21 }
 0x429   : > { %1567 = vrot.lane.b32.xlu1 %v1556_v39, %s6065_s3  ;;  %1597 = vrot.lane.b32.xlu0 %v1556_v39, %s4477_s21 }
 0x42d   : > { %1571 = vrot.lane.b32.xlu1 %v5159_v22, %s6086_s30  ;;  %1601 = vrot.lane.b32.xlu0 %v5159_v22, %s6087_s5 }
 0x431   : > { %1573 = vrot.lane.b32.xlu1 %v1556_v39, %s6086_s30  ;;  %1607 = vrot.lane.b32.xlu0 %v5159_v22, %s4482_s15 }
 0x435   : > { %1603 = vrot.lane.b32.xlu1 %v1556_v39, %s6087_s5  ;;  %1639 = vperm.xlu0 %4181, %v1629_v7   ;;  %s703_s5 = scalar_lea.vmem %s6055_s22, %s6095_s0 }
 0x439   : > { %1609 = vrot.lane.b32.xlu1 %v1556_v39, %s4482_s15  ;;  %1649 = vperm.xlu0 %4181, %v1631_v42  }
 0x43d   : > { %1644 = vperm.xlu1 %4180, %v1630_v43   ;;  %1659 = vperm.xlu0 %4181, %v1633_v45  }
 0x441   : > { %1654 = vperm.xlu1 %4180, %v1632_v50   ;;  %1669 = vperm.xlu0 %4181, %v1635_v1  }
 0x445   : > { %1664 = vperm.xlu1 %4180, %v1634_v0  }
 0x449   : > { %1674 = vperm.xlu1 %4180, %v1636_v52  }
 0x480   : > { %v1578_v51 = vpop.permute.xlu0 %1577 }
 0x481   : > { %3842 = vmatprep.subr.bf16.mxu0 %v1578_v51 }
 0x482   : > { %3843 = vmatpush3.bf16.msra.mxu0 %v5159_v22  ;;  %v4358_v22 = vld [vmem:[%s6085_s23 + $0x48] ss:$12 sps:$4 sm:$0xff]  }
 0x484   : > { %v1584_v55 = vpop.permute.xlu0 %1583 }
 0x48b   : > { %v1580_v56 = vpop.permute.xlu1 %1579  ;;  %v1586_v57 = vpop.permute.xlu0 %1585 }
 0x48c   : > { %3844 = vmatprep.subr.bf16.mxu0 %v1580_v56 }
 0x48d   : > { %3845 = vmatpush3.bf16.msra.mxu0 %v1556_v39 }
 0x48e   : > { %3846 = vmatprep.subr.bf16.mxu0 %v1584_v55 }
 0x48f   : > { %v1560_v58 = vpop.permute.xlu1 %1559  ;;  %v1590_v59 = vpop.permute.xlu0 %1589 }
 0x491   : > { %3847 = vmatpush3.bf16.msra.mxu0 %v1560_v58 }
 0x492   : > { %3848 = vmatprep.subr.bf16.mxu0 %v1586_v57 }
 0x493   : > { %v1562_v60 = vpop.permute.xlu1 %1561  ;;  %v1592_v61 = vpop.permute.xlu0 %1591 }
 0x495   : > { %3849 = vmatpush3.bf16.msra.mxu0 %v1562_v60 }
 0x496   : > { %3850 = vmatprep.subr.bf16.mxu0 %v1590_v59 }
 0x497   : > { %v1566_v48 = vpop.permute.xlu1 %1565  ;;  %v1596_v2 = vpop.permute.xlu0 %1595 }
 0x499   : > { %3851 = vmatpush3.bf16.msra.mxu0 %v1566_v48 }
 0x49a   : > { %3852 = vmatprep.subr.bf16.mxu0 %v1592_v61 }
 0x49b   : > { %v1568_v54 = vpop.permute.xlu1 %1567  ;;  %v1598_v8 = vpop.permute.xlu0 %1597 }
 0x49d   : > { %3853 = vmatpush3.bf16.msra.mxu0 %v1568_v54 }
 0x49e   : > { %3854 = vmatprep.subr.bf16.mxu0 %v1596_v2 }
 0x49f   : > { %v1572_v10 = vpop.permute.xlu1 %1571  ;;  %v1602_v13 = vpop.permute.xlu0 %1601 }
 0x4a0   : > { %3984 = vmatprep.subr.bf16.mxu1 %v1602_v13 }
 0x4a1   : > { %3855 = vmatpush3.bf16.msra.mxu0 %v1572_v10  ;;  %3985 = vmatpush3.bf16.msra.mxu1 %v1602_v13 }
 0x4a2   : > { %3856 = vmatprep.subr.bf16.mxu0 %v1598_v8 }
 0x4a3   : > { %v1574_v17 = vpop.permute.xlu1 %1573  ;;  %v1608_v9 = vpop.permute.xlu0 %1607 }
 0x4a5   : > { %3857 = vmatpush3.bf16.msra.mxu0 %v1574_v17 }
 0x4a7   : > { %v1604_v15 = vpop.permute.xlu1 %1603 }
 0x4a8   : > { %1783 = vmatmul.mubr.bf16.vlgmr.msra.gmra.mrb[8].mxu0 %v4343_v3  ;;  %3986 = vmatprep.subr.bf16.mxu1 %v1604_v15 }
 0x4a9   : > { %3987 = vmatpush3.bf16.msra.mxu1 %v1604_v15  ;;  %1790 = vmatprep.mubr.bf16.mxu0 %v4346_v5 }
 0x4aa   : > { %3988 = vmatprep.subr.bf16.mxu1 %v1608_v9 }
 0x4ab   : > { %v1610_v63 = vpop.permute.xlu1 %1609 }
 0x4ad   : > { %3989 = vmatpush3.bf16.msra.mxu1 %v1608_v9 }
 0x4ae   : > { %3990 = vmatprep.subr.bf16.mxu1 %v1610_v63 }
 0x4b0   : > { %1791 = vmatmul.mubr.bf16.gmra.mrb[12].mxu0 %v4348_v14 }
 0x4b1   : > { %3991 = vmatpush3.bf16.msra.mxu1 %v1610_v63  ;;  %1798 = vmatprep.mubr.bf16.mxu0 %v4351_v6 }
 0x4b2   : > { %2040 = vmatprep.subr.bf16.mxu1 %v4480_v4 }
 0x4b4   : > { %3993 = vmatmul.mubr.msk.bf16.vlgmr.msra.gmra.mrb[8].mxu1 %vm894_vm8, %v4350_v37  ;;  %v1640_v53 = vpop.permute.xlu0 %1639 }
 0x4b5   : > { %3996 = vmatprep.mubr.msk.bf16.mxu1 %vm894_vm8, %v4354_v19 }
 0x4b8   : > { %1799 = vmatmul.mubr.bf16.gmra.mrb[16].mxu0 %v4353_v20  ;;  %v1650_v32 = vpop.permute.xlu0 %1649 }
 0x4b9   : > { %1806 = vmatprep.mubr.bf16.mxu0 %v4356_v21 }
 0x4bc   : > { %3997 = vmatmul.mubr.msk.bf16.gmra.mrb[12].mxu1 %vm894_vm8, %v4355_v35  ;;  %v1645_v23 = vpop.permute.xlu1 %1644  ;;  %v1660_v1 = vpop.permute.xlu0 %1659 }
 0x4c0   : > { %1807 = vmatmul.mubr.bf16.gmra.mrb[20].mxu0 %v4358_v22  ;;  %v1655_v26 = vpop.permute.xlu1 %1654  ;;  %v1670_v37 = vpop.permute.xlu0 %1669 }
 0x4c4   : > { %v1665_v10 = vpop.permute.xlu1 %1664 }
 0x57b   : > { %v3858_v24 = vpop.f32.mrb[8].mxu0 }
 0x57c   : > { %v3859_v25 = vpop.f32.mrb[9].mxu0 }
 0x57d   : > { %v3860_v11 = vadd.f32 %v3859_v25, %v3858_v24  ;;  %v3861_v44 = vpop.f32.mrb[10].mxu0  ;;  %v1675_v24 = vpop.permute.xlu1 %1674 }
 0x57e   : > { %v3862_v12 = vpop.f32.mrb[11].mxu0 }
 0x57f   : > { %v3863_v18 = vadd.f32 %v3862_v12, %v3861_v44  ;;  %v1785_v36 = vadd.f32 %v3860_v11, %v1640_v53 }
 0x581   : > { %v1788_v39 = vadd.f32 %v3863_v18, %v1645_v23 }
 0x583   : > { %v3864_v27 = vpop.f32.mrb[12].mxu0 }
 0x584   : > { %v3865_v28 = vpop.f32.mrb[13].mxu0 }
 0x585   : > { %v3866_v29 = vadd.f32 %v3865_v28, %v3864_v27  ;;  %v3867_v62 = vpop.f32.mrb[14].mxu0 }
 0x586   : > { %v3868_v33 = vpop.f32.mrb[15].mxu0 }
 0x587   : > { %v3869_v30 = vadd.f32 %v3868_v33, %v3867_v62  ;;  %v1793_v31 = vadd.f32 %v3866_v29, %v1650_v32  ;;  %v3994_v34 = vpop.f32.mrb[8].mxu1 }
 0x588   : > { %v1849_v47 = vpop.f32.mrb[9].mxu1 }
 0x589   : > { %v1858_v16 = vadd.f32 %v3994_v34, %v1793_v31  ;;  %v1850_v46 = vadd.f32 %v1849_v47, %v1785_v36  ;;  %v1796_v49 = vadd.f32 %v3869_v30, %v1655_v26  ;;  %v3995_v38 = vpop.f32.mrb[10].mxu1 }
 0x58a   : > { %v1852_v40 = vpop.f32.mrb[11].mxu1 }
 0x58b   : > { %v1890_v41 = vmul.f32 0.01, %v1858_v16  ;;  %v1888_v7 = vmul.f32 0.01, %v1850_v46  ;;  %v1861_v42 = vadd.f32 %v3995_v38, %v1796_v49  ;;  %v1853_v43 = vadd.f32 %v1852_v40, %v1788_v39  ;;  %v3870_v45 = vpop.f32.mrb[16].mxu0 }
 0x58c   : > { %vm1882_vm4 = vcmp.gt.f32.partialorder %v1858_v16, 0.0  ;;  %vm1880_vm5 = vcmp.gt.f32.partialorder %v1850_v46, 0.0  ;;  %v3871_v50 = vpop.f32.mrb[17].mxu0 }
 0x58d   : > { %vm1883_vm12 = vcmp.gt.f32.partialorder %v1861_v42, 0.0  ;;  %v1891_v0 = vmul.f32 0.01, %v1861_v42  ;;  %vm1881_vm13 = vcmp.gt.f32.partialorder %v1853_v43, 0.0  ;;  %v1889_v52 = vmul.f32 0.01, %v1853_v43 }
 0x58e   : > { %v3872_v51 = vadd.f32 %v3871_v50, %v3870_v45  ;;  %v3873_v55 = vpop.f32.mrb[18].mxu0  ;;  %v1898_v57 = vsel %vm1882_vm4, %v1858_v16, %v1890_v41  ;;  %v1896_v58 = vsel %vm1880_vm5, %v1850_v46, %v1888_v7  ;;  %vm4484_vm4 = vmmov 0  }
 0x58f   : > { %v3998_v56 = vpop.f32.mrb[12].mxu1  ;;  %v1899_v59 = vsel %vm1883_vm12, %v1861_v42, %v1891_v0  ;;  %v1897_v60 = vsel %vm1881_vm13, %v1853_v43, %v1889_v52  ;;  %v3874_v61 = vpop.f32.mrb[19].mxu0  ;;  %vm2101_vm5 = vcmask 1040384   ;;  %vm2103_vm12 = vcmask 1041408  }
 0x590   : > { %v1865_v48 = vpop.f32.mrb[13].mxu1  ;;  %v5262_v2 = vpack.i.bf16 %v1899_v59, %v1898_v57  ;;  %v5264_v54 = vpack.i.bf16 %v1897_v60, %v1896_v58  ;;  %v3875_v13 = vadd.f32 %v3874_v61, %v3873_v55  ;;  %v1801_v17 = vadd.f32 %v3872_v51, %v1660_v1 }
 0x591   : > { %v3999_v8 = vpop.f32.mrb[14].mxu1  ;;  %vm2105_vm13 = vcmask 1042432  }
 0x592   : > { %v1868_v3 = vpop.f32.mrb[15].mxu1  ;;  %4293 = vrot.lane.b32.xlu0 %v5264_v54, %s6089_s27  ;;  %4298 = vrot.lane.b32.xlu1 %v5262_v2, %s6089_s27  ;;  %v1866_v15 = vadd.f32 %v1865_v48, %v1801_v17  ;;  %v1804_v9 = vadd.f32 %v3875_v13, %v1665_v10 }
 0x593   : > { %v3876_v5 = vpop.f32.mrb[20].mxu0 }
 0x594   : > { %v3877_v14 = vpop.f32.mrb[21].mxu0  ;;  %v1892_v19 = vmul.f32 0.01, %v1866_v15  ;;  %v1869_v20 = vadd.f32 %v1868_v3, %v1804_v9  ;;  %vm1884_vm14 = vcmp.gt.f32.partialorder %v1866_v15, 0.0 }
 0x595   : > { %v3878_v63 = vadd.f32 %v3877_v14, %v3876_v5  ;;  %v3879_v6 = vpop.f32.mrb[22].mxu0 }
 0x596   : > { %v3880_v21 = vpop.f32.mrb[23].mxu0  ;;  %vm1885_vm15 = vcmp.gt.f32.partialorder %v1869_v20, 0.0  ;;  %v1893_v25 = vmul.f32 0.01, %v1869_v20  ;;  %v1900_v12 = vsel %vm1884_vm14, %v1866_v15, %v1892_v19  ;;  %vm2114_vm14 = vcmask 31744  }
 0x597   : > { %v1809_v35 = vadd.f32 %v3878_v63, %v1670_v37  ;;  %v3881_v22 = vadd.f32 %v3880_v21, %v3879_v6 }
 0x598   : > { %v1901_v18 = vsel %vm1885_vm15, %v1869_v20, %v1893_v25  ;;  %v3774_v25 = vld.sshfl [vmem:[%s6092_s28] sm:$0x33 pattern:$0x76325410]  ;;  %vm2545_vm15 = vcmask 7168  }
 0x599   : > { %v1874_v11 = vadd.f32 %v3998_v56, %v1809_v35  ;;  %v1812_v44 = vadd.f32 %v3881_v22, %v1675_v24  ;;  %v5270_v53 = vpack.i.bf16 %v1901_v18, %v1900_v12  ;;  %v2021_v24 = vld [vmem:[%s6041_s7] sm:$0xf] }
 0x59b   : > { %v1894_v23 = vmul.f32 0.01, %v1874_v11  ;;  %v1877_v27 = vadd.f32 %v3999_v8, %v1812_v44  ;;  %vm1886_vm2 = vcmp.gt.f32.partialorder %v1874_v11, 0.0  ;;  %4303 = vrot.lane.b32.xlu0 %v5270_v53, %s6089_s27 }
 0x59d   : > { %vm1887_vm3 = vcmp.gt.f32.partialorder %v1877_v27, 0.0  ;;  %v1895_v28 = vmul.f32 0.01, %v1877_v27  ;;  %v1902_v29 = vsel %vm1886_vm2, %v1874_v11, %v1894_v23  ;;  %v2035_v11 = vcombine.high %v3774_v25, %v3774_v25 }
 0x59e   : > { %vm2977_vm2 = vcmask 48128  }
 0x59f   : > { %v1903_v62 = vsel %vm1887_vm3, %v1877_v27, %v1895_v28  ;;  %3775 = vmatprep.mubr.msk.bf16.mxu1 %vm894_vm8, %v2035_v11  ;;  %vm3128_vm3 = vcmask 1045504  }
 0x5a0   : > { %v5274_v32 = vpack.i.bf16 %v1903_v62, %v1902_v29 }
 0x5a2   : > { %4308 = vrot.lane.b32.xlu1 %v5274_v32, %s6089_s27 }
 0x604   : > { %v4299_v33 = vpop.permute.xlu1 %4298  ;;  %v4294_v30 = vpop.permute.xlu0 %4293 }
 0x605   : > { %v4301_v31 = vunpack.i.h.bf16 %v4299_v33  ;;  %v4300_v34 = vunpack.i.l.bf16 %v4299_v33  ;;  %v4296_v36 = vunpack.i.h.bf16 %v4294_v30  ;;  %v4295_v26 = vunpack.i.l.bf16 %v4294_v30 }
 0x607   : > { %v5278_v47 = vmax.f32 %v1899_v59, %v4301_v31  ;;  %v5280_v16 = vmax.f32 %v1898_v57, %v4300_v34  ;;  %v5282_v46 = vmax.f32 %v1897_v60, %v4296_v36  ;;  %v5284_v49 = vmax.f32 %v1896_v58, %v4295_v26 }
 0x609   : > { %v1945_v38 = vpack.c.bf16 %v5278_v47, %v5280_v16  ;;  %v1944_v39 = vpack.c.bf16 %v5282_v46, %v5284_v49 }
 0x60b   : > { %1954 = vrot.lane.b32.xlu1 %v1945_v38, %s6090_s1  ;;  %1952 = vrot.lane.b32.xlu0 %v1944_v39, %s6090_s1 }
 0x60d   : > { %v4304_v40 = vpop.permute.xlu0 %4303 }
 0x60e   : > { %v4306_v41 = vunpack.i.h.bf16 %v4304_v40  ;;  %v4305_v7 = vunpack.i.l.bf16 %v4304_v40 }
 0x610   : > { %v5292_v42 = vmax.f32 %v1901_v18, %v4306_v41  ;;  %v5294_v43 = vmax.f32 %v1900_v12, %v4305_v7 }
 0x612   : > { %v1946_v45 = vpack.c.bf16 %v5292_v42, %v5294_v43 }
 0x614   : > { %v4309_v50 = vpop.permute.xlu1 %4308  ;;  %1956 = vrot.lane.b32.xlu0 %v1946_v45, %s6090_s1 }
 0x615   : > { %v4311_v1 = vunpack.i.h.bf16 %v4309_v50  ;;  %v4310_v0 = vunpack.i.l.bf16 %v4309_v50 }
 0x617   : > { %v5299_v52 = vmax.f32 %v1903_v62, %v4311_v1  ;;  %v5301_v51 = vmax.f32 %v1902_v29, %v4310_v0  ;;  %v4483_v1 = vmov 0.0  }
 0x618   : > { %4015 = vmatprep.subr.mxu0 %v4483_v1  ;;  %4017 = vmatprep.mubr.msk.f32.mxu0 %vm4484_vm4, %v4483_v1 }
 0x619   : > { %v1947_v55 = vpack.c.bf16 %v5299_v52, %v5301_v51 }
 0x61b   : > { %1958 = vrot.lane.b32.xlu1 %v1947_v55, %s6090_s1 }
 0x67d   : > { %v1955_v56 = vpop.permute.xlu1 %1954  ;;  %v1953_v57 = vpop.permute.xlu0 %1952 }
 0x67e   : > { %v1964_v58 = vsel %vm1468_vm0, 0, %v1955_v56  ;;  %v1962_v59 = vsel %vm1468_vm0, 0, %v1953_v57 }
 0x67f   : > { %v1970_v60 = vsel %vm1052_vm9, %v1964_v58, %v1955_v56  ;;  %v1969_v61 = vsel %vm1052_vm9, %v1962_v59, %v1953_v57 }
 0x680   : > { %v1975_v48 = vsel %vm1973_vm6, %v1970_v60, %v1955_v56  ;;  %v1974_v8 = vsel %vm1973_vm6, %v1969_v61, %v1953_v57 }
 0x681   : > { %v1980_v10 = vsel %vm1978_vm7, %v1975_v48, %v1955_v56  ;;  %v1979_v13 = vsel %vm1978_vm7, %v1974_v8, %v1953_v57 }
 0x682   : > { %v1986_v17 = vsel %vm1983_vm10, %v1980_v10, 0  ;;  %v1984_v3 = vsel %vm1983_vm10, %v1979_v13, 0 }
 0x683   : > { %1998 = vrot.lane.b32.xlu1 %v1986_v17, %s6089_s27  ;;  %1996 = vrot.lane.b32.xlu0 %v1984_v3, %s6089_s27 }
 0x684   : > { %2041 = vmatpush1.bf16.msra.mxu1 %v1984_v3 }
 0x685   : > { %2042 = vmatprep.subr.bf16.mxu1 %v4480_v4 }
 0x686   : > { %v1957_v5 = vpop.permute.xlu0 %1956 }
 0x687   : > { %v1966_v15 = vsel %vm1468_vm0, 0, %v1957_v5 }
 0x688   : > { %2043 = vmatpush1.bf16.msra.mxu1 %v1986_v17  ;;  %v1971_v9 = vsel %vm1052_vm9, %v1966_v15, %v1957_v5 }
 0x689   : > { %2044 = vmatprep.subr.bf16.mxu1 %v4480_v4  ;;  %v1976_v14 = vsel %vm1973_vm6, %v1971_v9, %v1957_v5 }
 0x68a   : > { %v1981_v63 = vsel %vm1978_vm7, %v1976_v14, %v1957_v5 }
 0x68b   : > { %v1988_v6 = vsel %vm1983_vm10, %v1981_v63, 0 }
 0x68c   : > { %2000 = vrot.lane.b32.xlu0 %v1988_v6, %s6089_s27  ;;  %2045 = vmatpush1.bf16.msra.mxu1 %v1988_v6 }
 0x68d   : > { %v1959_v37 = vpop.permute.xlu1 %1958  ;;  %2046 = vmatprep.subr.bf16.mxu1 %v4480_v4 }
 0x68e   : > { %v1968_v19 = vsel %vm1468_vm0, 0, %v1959_v37 }
 0x68f   : > { %v1972_v20 = vsel %vm1052_vm9, %v1968_v19, %v1959_v37 }
 0x690   : > { %v1977_v21 = vsel %vm1973_vm6, %v1972_v20, %v1959_v37  ;;  %2008 = vrot.lane.b32.xlu0 %v1984_v3, %s6091_s2 }
 0x691   : > { %v1982_v35 = vsel %vm1978_vm7, %v1977_v21, %v1959_v37 }
 0x692   : > { %v1990_v22 = vsel %vm1983_vm10, %v1982_v35, 0 }
 0x693   : > { %2002 = vrot.lane.b32.xlu1 %v1990_v22, %s6089_s27  ;;  %2047 = vmatpush1.bf16.msra.mxu1 %v1990_v22 }
 0x694   : > { %2048 = vmatprep.subr.bf16.mxu1 %v4480_v4  ;;  %2012 = vrot.lane.b32.xlu0 %v1988_v6, %s6091_s2 }
 0x697   : > { %2010 = vrot.lane.b32.xlu1 %v1986_v17, %s6091_s2 }
 0x698   : > { %2024 = vperm.xlu0 %4181, %v2021_v24  }
 0x69b   : > { %2014 = vrot.lane.b32.xlu1 %v1990_v22, %s6091_s2 }
 0x6f5   : > { %v1997_v44 = vpop.permute.xlu0 %1996  ;;  %v1999_v12 = vpop.permute.xlu1 %1998 }
 0x6f6   : > { %2049 = vmatpush1.bf16.msra.mxu1 %v1997_v44 }
 0x6f7   : > { %2050 = vmatprep.subr.bf16.mxu1 %v4480_v4 }
 0x6fa   : > { %2051 = vmatpush1.bf16.msra.mxu1 %v1999_v12 }
 0x6fb   : > { %2052 = vmatprep.subr.bf16.mxu1 %v4480_v4 }
 0x6fe   : > { %v2001_v18 = vpop.permute.xlu0 %2000 }
 0x6ff   : > { %2053 = vmatpush1.bf16.msra.mxu1 %v2001_v18 }
 0x700   : > { %2054 = vmatprep.subr.bf16.mxu1 %v4480_v4 }
 0x702   : > { %v2009_v27 = vpop.permute.xlu0 %2008 }
 0x705   : > { %v2003_v23 = vpop.permute.xlu1 %2002 }
 0x706   : > { %2055 = vmatpush1.bf16.msra.mxu1 %v2003_v23  ;;  %v2013_v29 = vpop.permute.xlu0 %2012 }
 0x707   : > { %2056 = vmatprep.subr.bf16.mxu1 %v4480_v4 }
 0x709   : > { %v2011_v28 = vpop.permute.xlu1 %2010 }
 0x70a   : > { %2057 = vmatpush1.bf16.msra.mxu1 %v2009_v27 }
 0x70b   : > { %2058 = vmatprep.subr.bf16.mxu1 %v4480_v4 }
 0x70d   : > { %v2015_v62 = vpop.permute.xlu1 %2014 }
 0x70e   : > { %2059 = vmatpush1.bf16.msra.mxu1 %v2011_v28 }
 0x70f   : > { %2060 = vmatprep.subr.bf16.mxu1 %v4480_v4 }
 0x712   : > { %2061 = vmatpush1.bf16.msra.mxu1 %v2013_v29 }
 0x713   : > { %2062 = vmatprep.subr.bf16.mxu1 %v4480_v4 }
 0x716   : > { %2063 = vmatpush1.bf16.msra.mxu1 %v2015_v62 }
 0x717   : > { %v2025_v33 = vpop.permute.xlu0 %2024  ;;  %4000 = vmatprep.subr.mxu1 %v4483_v1 }
 0x719   : > { %2073 = vmatmul.mubr.bf16.vlgmr.msra.gmra.mrb[16].mxu1 %v3774_v25 }
 0x71a   : > { %4002 = vmatprep.mubr.msk.f32.mxu1 %vm4484_vm4, %v4483_v1 }
 0x7ec   : > { %v2074_v30 = vpop.f32.mrb[16].mxu1 }
 0x7ed   : > { %v2075_v31 = vadd.f32 %v2074_v30, %v2025_v33  ;;  %v2076_v34 = vpop.f32.mrb[17].mxu1  ;;  %v2377_v30 = vld [vmem:[%s6047_s13] sm:$0xf] }
 0x7ee   : > { %v2077_v36 = vpop.f32.mrb[18].mxu1  ;;  %v2192_v34 = vld [vmem:[%s6045_s11] sm:$0xf] }
 0x7ef   : > { %v2080_v26 = vmax.f32 %v2075_v31, 0.0  ;;  %v2078_v38 = vpop.f32.mrb[19].mxu1  ;;  %v2452_v31 = vld [vmem:[#allocation2] sm:$0x1]  ;;  %v2694_v36 = vld [vmem:[%s6053_s19 + $0x88] sm:$0xff] }
 0x7f0   : > { %v2710_v38 = vld [vmem:[%s6053_s19 + $0x108] sm:$0xff] }
 0x7f1   : > { %v2082_v39 = vsel %vm2081_vm11, %v2080_v26, 0.0  ;;  %v2678_v26 = vld [vmem:[%s6053_s19 + $0x8] sm:$0xff] }
 0x7f2   : > { %v2083_v40 = vrot.slane %v2082_v39, 4 }
 0x7f4   : > { %v2084_v41 = vadd.f32 %v2083_v40, %v2082_v39  ;;  %v2696_v39 = vld [vmem:[%s6053_s19 + $0x98] sm:$0xff] }
 0x7f5   : > { %v2680_v40 = vld [vmem:[%s6053_s19 + $0x18] sm:$0xff] }
 0x7f6   : > { %v2085_v7 = vrot.slane %v2084_v41, 2 }
 0x7f8   : > { %v2086_v45 = vadd.f32 %v2085_v7, %v2084_v41  ;;  %v2712_v41 = vld [vmem:[%s6053_s19 + $0x118] sm:$0xff]  ;;  %v2698_v7 = vld [vmem:[%s6053_s19 + $0xa8] sm:$0xff] }
 0x7fa   : > { %v2087_v50 = vrot.slane %v2086_v45, 1 }
 0x7fc   : > { %v2088_v0 = vadd.f32 %v2087_v50, %v2086_v45  ;;  %v2682_v45 = vld [vmem:[%s6053_s19 + $0x28] sm:$0xff] }
 0x7fd   : > { %v2714_v50 = vld [vmem:[%s6053_s19 + $0x128] sm:$0xff] }
 0x7fe   : > { %v2090_v55 = vmul.f32 0.25, %v2088_v0  ;;  %v2700_v0 = vld [vmem:[%s6053_s19 + $0xb8] sm:$0xff] }
 0x800   : > { %2095 = vrot.lane.b32.xlu0 %v2090_v55, %s6091_s2  ;;  %2092 = vrot.lane.b32.xlu1 %v2090_v55, %s6089_s27 }
 0x804   : > { %4313 = vrot.lane.b32.xlu0 %v5264_v54, %s6091_s2  ;;  %2098 = vrot.lane.b32.xlu1 %v2090_v55, %s6086_s30 }
 0x808   : > { %4323 = vrot.lane.b32.xlu0 %v5270_v53, %s6091_s2  ;;  %4318 = vrot.lane.b32.xlu1 %v5262_v2, %s6091_s2  ;;  %v2107_v53 = vld [vmem:[%s6042_s8] sm:$0x3] }
 0x80c   : > { %4328 = vrot.lane.b32.xlu1 %v5274_v32, %s6091_s2 }
 0x872   : > { %v2096_v56 = vpop.permute.xlu0 %2095  ;;  %v2093_v57 = vpop.permute.xlu1 %2092 }
 0x873   : > { %v2102_v58 = vsel %vm2101_vm5, %v2090_v55, %v2093_v57  ;;  %v2684_v55 = vld [vmem:[%s6053_s19 + $0x38] sm:$0xff]  ;;  %v2702_v57 = vld [vmem:[%s6053_s19 + $0xc8] sm:$0xff] }
 0x874   : > { %v2104_v54 = vsel %vm2103_vm12, %v2102_v58, %v2096_v56  ;;  %v2716_v56 = vld [vmem:[%s6053_s19 + $0x138] sm:$0xff]  ;;  %v2686_v58 = vld [vmem:[%s6053_s19 + $0x48] sm:$0xff] }
 0x876   : > { %v4314_v59 = vpop.permute.xlu0 %4313  ;;  %v2099_v60 = vpop.permute.xlu1 %2098 }
 0x877   : > { %v4316_v2 = vunpack.i.h.bf16 %v4314_v59  ;;  %v4315_v61 = vunpack.i.l.bf16 %v4314_v59  ;;  %v5374_v48 = vsel %vm2105_vm13, %v2104_v54, %v2099_v60  ;;  %v2718_v59 = vld [vmem:[%s6053_s19 + $0x148] sm:$0xff]  ;;  %v2704_v54 = vld [vmem:[%s6053_s19 + $0xd8] sm:$0xff]  ;;  %v3780_v60 = vld.sshfl [vmem:[%s6046_s12] sm:$0x33 pattern:$0x76325410] }
 0x878   : > { %4001 = vmatpush3.msk.msra.mxu1 %vm795_vm1, %v5374_v48 }
 0x879   : > { %v2301_v32 = vmax.f32 %v5282_v46, %v4316_v2  ;;  %v2300_v8 = vmax.f32 %v5284_v49, %v4315_v61  ;;  %4003 = vmatmul.mubr.msk.f32.vlgmr.msra.gmra.mrb[20].mxu1 %vm2114_vm14, %v2107_v53  ;;  %4005 = vmatprep.subr.mxu1 %v4483_v1  ;;  %v2688_v61 = vld [vmem:[%s6053_s19 + $0x58] sm:$0xff] }
 0x87a   : > { %v4324_v10 = vpop.permute.xlu0 %4323  ;;  %v4319_v13 = vpop.permute.xlu1 %4318  ;;  %4007 = vmatprep.mubr.msk.f32.mxu1 %vm4484_vm4, %v4483_v1 }
 0x87b   : > { %v2308_v17 = vpack.c.bf16 %v2301_v32, %v2300_v8  ;;  %v4326_v3 = vunpack.i.h.bf16 %v4324_v10  ;;  %v4325_v5 = vunpack.i.l.bf16 %v4324_v10  ;;  %v4321_v15 = vunpack.i.h.bf16 %v4319_v13  ;;  %v2191_v8 = vld [vmem:[%s6044_s10] sm:$0xf] }
 0x87c   : > { %v4320_v9 = vunpack.i.l.bf16 %v4319_v13  ;;  %v2391_v13 = vcombine.high %v3780_v60, %v3780_v60 }
 0x87d   : > { %v2305_v14 = vmax.f32 %v5292_v42, %v4326_v3  ;;  %v2304_v63 = vmax.f32 %v5294_v43, %v4325_v5  ;;  %v2303_v46 = vmax.f32 %v5278_v47, %v4321_v15  ;;  %2316 = vrot.lane.b32.xlu0 %v2308_v17, %s6090_s1  ;;  %v2108_v47 = vld [vmem:[%s6043_s9] sm:$0x3]  ;;  %v2706_v3 = vld [vmem:[%s6053_s19 + $0xe8] sm:$0xff] }
 0x87e   : > { %v2302_v49 = vmax.f32 %v5280_v16, %v4320_v9  ;;  %v4329_v6 = vpop.permute.xlu1 %4328  ;;  %v2690_v5 = vld [vmem:[%s6053_s19 + $0x68] sm:$0xff]  ;;  %v2708_v9 = vld [vmem:[%s6053_s19 + $0xf8] sm:$0xff] }
 0x87f   : > { %v2310_v37 = vpack.c.bf16 %v2305_v14, %v2304_v63  ;;  %v4331_v19 = vunpack.i.h.bf16 %v4329_v6  ;;  %v4330_v20 = vunpack.i.l.bf16 %v4329_v6  ;;  %v2722_v15 = vld [vmem:[%s6053_s19 + $0x168] sm:$0xff]  ;;  %v2692_v14 = vld [vmem:[%s6053_s19 + $0x78] sm:$0xff] }
 0x880   : > { %v2309_v21 = vpack.c.bf16 %v2303_v46, %v2302_v49  ;;  %v2724_v46 = vld [vmem:[%s6053_s19 + $0x178] sm:$0xff]  ;;  %v2726_v6 = vld [vmem:[%s6053_s19 + $0x188] sm:$0xff] }
 0x881   : > { %v2307_v35 = vmax.f32 %v5299_v52, %v4331_v19  ;;  %v2306_v22 = vmax.f32 %v5301_v51, %v4330_v20  ;;  %2320 = vrot.lane.b32.xlu0 %v2310_v37, %s6090_s1 }
 0x882   : > { %2318 = vrot.lane.b32.xlu1 %v2309_v21, %s6090_s1 }
 0x883   : > { %v2311_v42 = vpack.c.bf16 %v2307_v35, %v2306_v22 }
 0x885   : > { %2111 = vperm.xlu0 %4181, %v2108_v47  }
 0x886   : > { %2322 = vrot.lane.b32.xlu1 %v2311_v42, %s6090_s1 }
 0x8ef   : > { %v2317_v16 = vpop.permute.xlu0 %2316 }
 0x8f0   : > { %v2325_v43 = vsel %vm1468_vm0, 0, %v2317_v16 }
 0x8f1   : > { %v2333_v24 = vsel %vm1052_vm9, %v2325_v43, %v2308_v17  ;;  %v2720_v17 = vld [vmem:[%s6053_s19 + $0x158] sm:$0xff] }
 0x8f2   : > { %v5399_v52 = vsel %vm1973_vm6, %v2333_v24, 0 }
 0x8f3   : > { %v2321_v51 = vpop.permute.xlu0 %2320  ;;  %2352 = vrot.lane.b32.xlu1 %v5399_v52, %s6089_s27 }
 0x8f4   : > { %v2329_v25 = vsel %vm1468_vm0, 0, %v2321_v51  ;;  %v2319_v11 = vpop.permute.xlu1 %2318 }
 0x8f5   : > { %v2337_v44 = vsel %vm1052_vm9, %v2329_v25, %v2310_v37  ;;  %v2327_v12 = vsel %vm1468_vm0, 0, %v2319_v11 }
 0x8f6   : > { %v2335_v18 = vsel %vm1052_vm9, %v2327_v12, %v2309_v21  ;;  %v5408_v23 = vsel %vm1973_vm6, %v2337_v44, 0 }
 0x8f7   : > { %2356 = vrot.lane.b32.xlu1 %v5408_v23, %s6089_s27  ;;  %v5413_v27 = vsel %vm1973_vm6, %v2335_v18, 0 }
 0x8f8   : > { %2354 = vrot.lane.b32.xlu0 %v5413_v27, %s6089_s27  ;;  %v2323_v28 = vpop.permute.xlu1 %2322 }
 0x8f9   : > { %v2331_v29 = vsel %vm1468_vm0, 0, %v2323_v28  ;;  %vm2198_vm0 = vcmask 15360  }
 0x8fa   : > { %v2339_v62 = vsel %vm1052_vm9, %v2331_v29, %v2311_v42 }
 0x8fb   : > { %2364 = vrot.lane.b32.xlu1 %v5399_v52, %s6091_s2  ;;  %v5422_v33 = vsel %vm1973_vm6, %v2339_v62, 0  ;;  %v2693_v62 = vld [vmem:[%s6053_s19 + $0x80] sm:$0xff] }
 0x8fc   : > { %2358 = vrot.lane.b32.xlu0 %v5422_v33, %s6089_s27 }
 0x8ff   : > { %2368 = vrot.lane.b32.xlu1 %v5408_v23, %s6091_s2 }
 0x900   : > { %2366 = vrot.lane.b32.xlu0 %v5413_v27, %s6091_s2 }
 0x903   : > { %2380 = vperm.xlu1 %4180, %v2377_v30   ;;  %v2709_v30 = vld [vmem:[%s6053_s19 + $0x100] sm:$0xff] }
 0x904   : > { %2370 = vrot.lane.b32.xlu0 %v5422_v33, %s6091_s2  ;;  %v2112_v53 = vpop.permute.xlu0 %2111 }
 0x907   : > { %2455 = vperm.xlu1 %4180, %v2452_v31   ;;  %v2695_v31 = vld [vmem:[%s6053_s19 + $0x90] sm:$0xff] }
 0x90b   : > { %2195 = vperm.xlu1 %4180, %v2192_v34   ;;  %v2679_v34 = vld [vmem:[%s6053_s19 + $0x10] sm:$0xff] }
 0x90f   : > { %2814 = vperm.xlu1 %4180, %v2694_v36   ;;  %v2711_v36 = vld [vmem:[%s6053_s19 + $0x110] sm:$0xff] }
 0x913   : > { %2734 = vperm.xlu1 %4180, %v2678_v26   ;;  %v2697_v26 = vld [vmem:[%s6053_s19 + $0xa0] sm:$0xff] }
 0x917   : > { %2894 = vperm.xlu1 %4180, %v2710_v38   ;;  %v2681_v38 = vld [vmem:[%s6053_s19 + $0x20] sm:$0xff] }
 0x91b   : > { %2824 = vperm.xlu1 %4180, %v2696_v39   ;;  %v2713_v39 = vld [vmem:[%s6053_s19 + $0x120] sm:$0xff] }
 0x91f   : > { %2744 = vperm.xlu1 %4180, %v2680_v40   ;;  %v2699_v40 = vld [vmem:[%s6053_s19 + $0xb0] sm:$0xff] }
 0x923   : > { %2904 = vperm.xlu1 %4180, %v2712_v41   ;;  %v2683_v41 = vld [vmem:[%s6053_s19 + $0x30] sm:$0xff] }
 0x927   : > { %2834 = vperm.xlu1 %4180, %v2698_v7   ;;  %v2715_v7 = vld [vmem:[%s6053_s19 + $0x130] sm:$0xff] }
 0x92b   : > { %2754 = vperm.xlu1 %4180, %v2682_v45   ;;  %v2701_v45 = vld [vmem:[%s6053_s19 + $0xc0] sm:$0xff] }
 0x92f   : > { %2914 = vperm.xlu1 %4180, %v2714_v50   ;;  %v2685_v50 = vld [vmem:[%s6053_s19 + $0x40] sm:$0xff] }
 0x933   : > { %2844 = vperm.xlu1 %4180, %v2700_v0   ;;  %v2717_v0 = vld [vmem:[%s6053_s19 + $0x140] sm:$0xff] }
 0x937   : > { %2764 = vperm.xlu1 %4180, %v2684_v55   ;;  %v2703_v55 = vld [vmem:[%s6053_s19 + $0xd0] sm:$0xff] }
 0x93b   : > { %2924 = vperm.xlu1 %4180, %v2716_v56   ;;  %v2687_v56 = vld [vmem:[%s6053_s19 + $0x50] sm:$0xff] }
 0x93f   : > { %2854 = vperm.xlu1 %4180, %v2702_v57   ;;  %v2719_v57 = vld [vmem:[%s6053_s19 + $0x150] sm:$0xff] }
 0x943   : > { %2774 = vperm.xlu1 %4180, %v2686_v58   ;;  %v2705_v58 = vld [vmem:[%s6053_s19 + $0xe0] sm:$0xff] }
 0x947   : > { %2934 = vperm.xlu1 %4180, %v2718_v59   ;;  %v2689_v59 = vld [vmem:[%s6053_s19 + $0x60] sm:$0xff] }
 0x94b   : > { %2864 = vperm.xlu1 %4180, %v2704_v54   ;;  %v2721_v54 = vld [vmem:[%s6053_s19 + $0x160] sm:$0xff] }
 0x94c   : > { %v2187_v2 = vpop.f32.mrb[20].mxu1 }
 0x94d   : > { %v2188_v32 = vadd.f32 %v2187_v2, %v2112_v53  ;;  %v4004_v10 = vpop.f32.mrb[21].mxu1  ;;  %v2691_v53 = vld [vmem:[%s6053_s19 + $0x70] sm:$0xff] }
 0x94e   : > { %v2723_v2 = vld [vmem:[%s6053_s19 + $0x170] sm:$0xff]  ;;  %v2451_v10 = vld [vmem:[%s6048_s14] sm:$0x1] }
 0x94f   : > { %4006 = vmatpush3.msk.msra.mxu1 %vm2103_vm12, %v2188_v32  ;;  %2784 = vperm.xlu1 %4180, %v2688_v61   ;;  %v2725_v61 = vld [vmem:[%s6053_s19 + $0x180] sm:$0xff] }
 0x950   : > { %4008 = vmatmul.mubr.msk.f32.vlgmr.msra.gmra.mrb[22].mxu1 %vm2198_vm0, %v2191_v8  ;;  %2396 = vmatprep.subr.bf16.mxu1 %v4480_v4  ;;  %v3498_v32 = vld [vmem:[#allocation3] sm:$0x1] }
 0x951   : > { %2397 = vmatpush1.bf16.msra.mxu1 %v5399_v52  ;;  %3781 = vmatprep.mubr.msk.bf16.mxu1 %vm894_vm8, %v2391_v13  ;;  %vm2437_vm8 = vcmask 125952  }
 0x952   : > { %2398 = vmatprep.subr.bf16.mxu1 %v4480_v4 }
 0x953   : > { %2944 = vperm.xlu1 %4180, %v2720_v17   ;;  %v2458_v17 = vlaneseq }
 0x955   : > { %2399 = vmatpush1.bf16.msra.mxu1 %v5413_v27 }
 0x956   : > { %2400 = vmatprep.subr.bf16.mxu1 %v4480_v4 }
 0x957   : > { %2874 = vperm.xlu1 %4180, %v2706_v3   ;;  %v5628_v3 = vshrl.u32 %v2458_v17, 7  ;;  %v2672_v17 = vld [vmem:[%s6052_s18 + $0x168] sm:$0xff] }
 0x959   : > { %2401 = vmatpush1.bf16.msra.mxu1 %v5408_v23 }
 0x95a   : > { %2402 = vmatprep.subr.bf16.mxu1 %v4480_v4 }
 0x95b   : > { %2794 = vperm.xlu1 %4180, %v2690_v5   ;;  %v5631_v5 = vsub.s32 0, %v5628_v3 }
 0x95d   : > { %2403 = vmatpush1.bf16.msra.mxu1 %v5422_v33  ;;  %v2677_v33 = vld [vmem:[%s6053_s19] sm:$0xff] }
 0x95e   : > { %2404 = vmatprep.subr.bf16.mxu1 %v4480_v4 }
 0x95f   : > { %2954 = vperm.xlu1 %4180, %v2722_v15  }
 0x963   : > { %2884 = vperm.xlu1 %4180, %v2708_v9  }
 0x965   : > { %v2353_v63 = vpop.permute.xlu1 %2352 }
 0x966   : > { %2405 = vmatpush1.bf16.msra.mxu1 %v2353_v63 }
 0x967   : > { %2804 = vperm.xlu1 %4180, %v2692_v14   ;;  %2406 = vmatprep.subr.bf16.mxu1 %v4480_v4 }
 0x969   : > { %v2357_v37 = vpop.permute.xlu1 %2356 }
 0x96a   : > { %v2355_v49 = vpop.permute.xlu0 %2354 }
 0x96b   : > { %2407 = vmatpush1.bf16.msra.mxu1 %v2355_v49  ;;  %2964 = vperm.xlu1 %4180, %v2724_v46   ;;  %v2538_v49 = vld [vmem:[%s6050_s16] sm:$0x3] }
 0x96c   : > { %2408 = vmatprep.subr.bf16.mxu1 %v4480_v4 }
 0x96d   : > { %v2365_v20 = vpop.permute.xlu1 %2364 }
 0x96e   : > { %v2359_v19 = vpop.permute.xlu0 %2358 }
 0x96f   : > { %2409 = vmatpush1.bf16.msra.mxu1 %v2357_v37  ;;  %2974 = vperm.xlu1 %4180, %v2726_v6   ;;  %v2627_v6 = vld [vmem:[%s6052_s18] sm:$0xff] }
 0x970   : > { %2410 = vmatprep.subr.bf16.mxu1 %v4480_v4 }
 0x971   : > { %v2369_v35 = vpop.permute.xlu1 %2368 }
 0x972   : > { %v2367_v21 = vpop.permute.xlu0 %2366 }
 0x973   : > { %2411 = vmatpush1.bf16.msra.mxu1 %v2359_v19 }
 0x974   : > { %2412 = vmatprep.subr.bf16.mxu1 %v4480_v4 }
 0x976   : > { %v2371_v22 = vpop.permute.xlu0 %2370 }
 0x977   : > { %2413 = vmatpush1.bf16.msra.mxu1 %v2365_v20 }
 0x978   : > { %2414 = vmatprep.subr.bf16.mxu1 %v4480_v4 }
 0x97b   : > { %2415 = vmatpush1.bf16.msra.mxu1 %v2367_v21 }
 0x97c   : > { %2416 = vmatprep.subr.bf16.mxu1 %v4480_v4 }
 0x97f   : > { %2417 = vmatpush1.bf16.msra.mxu1 %v2369_v35 }
 0x980   : > { %2418 = vmatprep.subr.bf16.mxu1 %v4480_v4 }
 0x982   : > { %v2381_v16 = vpop.permute.xlu1 %2380 }
 0x983   : > { %2419 = vmatpush1.bf16.msra.mxu1 %v2371_v22 }
 0x984   : > { %4010 = vmatprep.subr.mxu1 %v4483_v1 }
 0x986   : > { %2429 = vmatmul.mubr.bf16.vlgmr.msra.gmra.mrb[24].mxu1 %v3780_v60  ;;  %v2707_v60 = vld [vmem:[%s6053_s19 + $0xf0] sm:$0xff]  ;;  %v2456_v15 = vpop.permute.xlu1 %2455 }
 0x987   : > { %4012 = vmatprep.mubr.msk.f32.mxu1 %vm4484_vm4, %v4483_v1  ;;  %v2539_v1 = vld [vmem:[%s6051_s17] sm:$0x3]  ;;  %v2461_v9 = vrot.slane %v2456_v15, %v5631_v5  ;;  %v2673_v15 = vld [vmem:[%s6052_s18 + $0x170] sm:$0xff] }
 0x98a   : > { %v2196_v37 = vpop.permute.xlu1 %2195 }
 0xa23   : > { %v5541_v47 = vpop.f32.mrb[22].mxu1 }
 0xa24   : > { %v4009_v42 = vpop.f32.mrb[23].mxu1  ;;  %v2272_v21 = vadd.f32 %v5541_v47, %v2196_v37  ;;  %v2631_v47 = vld [vmem:[%s6052_s18 + $0x20] sm:$0xff] }
 0xa59   : > { %v2430_v43 = vpop.f32.mrb[24].mxu1 }
 0xa5a   : > { %v2431_v24 = vadd.f32 %v2430_v43, %v2381_v16  ;;  %v2432_v52 = vpop.f32.mrb[25].mxu1  ;;  %v2275_v16 = vadd.f32 %v2272_v21, %v5374_v48  ;;  %v2630_v48 = vld [vmem:[%s6052_s18 + $0x18] sm:$0xff] }
 0xa5b   : > { %v2433_v51 = vpop.f32.mrb[26].mxu1  ;;  %v2628_v52 = vld [vmem:[%s6052_s18 + $0x8] sm:$0xff] }
 0xa5c   : > { %v2436_v25 = vmax.f32 %v2431_v24, 0.0  ;;  %v2434_v11 = vpop.f32.mrb[27].mxu1  ;;  %v2629_v51 = vld [vmem:[%s6052_s18 + $0x10] sm:$0xff] }
 0xa5d   : > { %v2633_v11 = vld [vmem:[%s6052_s18 + $0x30] sm:$0xff] }
 0xa5e   : > { %v2438_v4 = vsel %vm2437_vm8, %v2436_v25, 0.0  ;;  %v2632_v25 = vld [vmem:[%s6052_s18 + $0x28] sm:$0xff] }
 0xa5f   : > { %v2439_v44 = vrot.slane %v2438_v4, 4 }
 0xa61   : > { %v2440_v12 = vadd.f32 %v2439_v44, %v2438_v4  ;;  %v2634_v4 = vld [vmem:[%s6052_s18 + $0x38] sm:$0xff]  ;;  %v2635_v44 = vld [vmem:[%s6052_s18 + $0x40] sm:$0xff] }
 0xa63   : > { %v2441_v18 = vrot.slane %v2440_v12, 2 }
 0xa65   : > { %v2442_v23 = vadd.f32 %v2441_v18, %v2440_v12  ;;  %v2636_v12 = vld [vmem:[%s6052_s18 + $0x48] sm:$0xff]  ;;  %v2637_v18 = vld [vmem:[%s6052_s18 + $0x50] sm:$0xff] }
 0xa67   : > { %v2443_v27 = vrot.slane %v2442_v23, 1 }
 0xa69   : > { %v2444_v28 = vadd.f32 %v2443_v27, %v2442_v23  ;;  %v2638_v23 = vld [vmem:[%s6052_s18 + $0x58] sm:$0xff]  ;;  %v2639_v27 = vld [vmem:[%s6052_s18 + $0x60] sm:$0xff] }
 0xa6b   : > { %v2445_v29 = vmul.f32 0.25, %v2444_v28  ;;  %v2640_v28 = vld [vmem:[%s6052_s18 + $0x68] sm:$0xff] }
 0xa6d   : > { %2447 = vrot.lane.b32.xlu0 %v2445_v29, %s6089_s27 }
 0xa71   : > { %2542 = vperm.xlu0 %4181, %v2539_v1   ;;  %v2642_v1 = vld [vmem:[%s6052_s18 + $0x78] sm:$0xff] }
 0xa75   : > { %2809 = vperm.xlu0 %4181, %v2693_v62   ;;  %v2643_v62 = vld [vmem:[%s6052_s18 + $0x80] sm:$0xff] }
 0xa79   : > { %2729 = vperm.xlu0 %4181, %v2677_v33   ;;  %v2644_v33 = vld [vmem:[%s6052_s18 + $0x88] sm:$0xff] }
 0xa7d   : > { %2889 = vperm.xlu0 %4181, %v2709_v30   ;;  %v2645_v30 = vld [vmem:[%s6052_s18 + $0x90] sm:$0xff] }
 0xa81   : > { %2819 = vperm.xlu0 %4181, %v2695_v31   ;;  %v2646_v31 = vld [vmem:[%s6052_s18 + $0x98] sm:$0xff] }
 0xa85   : > { %2739 = vperm.xlu0 %4181, %v2679_v34   ;;  %v2647_v34 = vld [vmem:[%s6052_s18 + $0xa0] sm:$0xff] }
 0xa89   : > { %2899 = vperm.xlu0 %4181, %v2711_v36   ;;  %v2648_v36 = vld [vmem:[%s6052_s18 + $0xa8] sm:$0xff] }
 0xa8d   : > { %2829 = vperm.xlu0 %4181, %v2697_v26   ;;  %v2649_v26 = vld [vmem:[%s6052_s18 + $0xb0] sm:$0xff] }
 0xa91   : > { %2749 = vperm.xlu0 %4181, %v2681_v38   ;;  %v2650_v38 = vld [vmem:[%s6052_s18 + $0xb8] sm:$0xff] }
 0xa95   : > { %2909 = vperm.xlu0 %4181, %v2713_v39   ;;  %v2651_v39 = vld [vmem:[%s6052_s18 + $0xc0] sm:$0xff] }
 0xa99   : > { %2839 = vperm.xlu0 %4181, %v2699_v40   ;;  %v2652_v40 = vld [vmem:[%s6052_s18 + $0xc8] sm:$0xff] }
 0xa9d   : > { %2759 = vperm.xlu0 %4181, %v2683_v41   ;;  %v2653_v41 = vld [vmem:[%s6052_s18 + $0xd0] sm:$0xff] }
 0xaa1   : > { %2919 = vperm.xlu0 %4181, %v2715_v7   ;;  %v2654_v7 = vld [vmem:[%s6052_s18 + $0xd8] sm:$0xff] }
 0xaa5   : > { %2849 = vperm.xlu0 %4181, %v2701_v45   ;;  %v2655_v45 = vld [vmem:[%s6052_s18 + $0xe0] sm:$0xff] }
 0xaa9   : > { %2769 = vperm.xlu0 %4181, %v2685_v50   ;;  %v2656_v50 = vld [vmem:[%s6052_s18 + $0xe8] sm:$0xff] }
 0xaad   : > { %2929 = vperm.xlu0 %4181, %v2717_v0   ;;  %v2657_v0 = vld [vmem:[%s6052_s18 + $0xf0] sm:$0xff] }
 0xab1   : > { %2859 = vperm.xlu0 %4181, %v2703_v55   ;;  %v2658_v55 = vld [vmem:[%s6052_s18 + $0xf8] sm:$0xff] }
 0xab5   : > { %2779 = vperm.xlu0 %4181, %v2687_v56   ;;  %v2659_v56 = vld [vmem:[%s6052_s18 + $0x100] sm:$0xff] }
 0xab9   : > { %2939 = vperm.xlu0 %4181, %v2719_v57   ;;  %v2660_v57 = vld [vmem:[%s6052_s18 + $0x108] sm:$0xff] }
 0xabd   : > { %2869 = vperm.xlu0 %4181, %v2705_v58   ;;  %v2661_v58 = vld [vmem:[%s6052_s18 + $0x110] sm:$0xff] }
 0xac1   : > { %2789 = vperm.xlu0 %4181, %v2689_v59   ;;  %v2662_v59 = vld [vmem:[%s6052_s18 + $0x118] sm:$0xff] }
 0xac5   : > { %2949 = vperm.xlu0 %4181, %v2721_v54   ;;  %v2663_v54 = vld [vmem:[%s6052_s18 + $0x120] sm:$0xff] }
 0xac9   : > { %2879 = vperm.xlu0 %4181, %v2707_v60   ;;  %v2664_v60 = vld [vmem:[%s6052_s18 + $0x128] sm:$0xff] }
 0xacd   : > { %2799 = vperm.xlu0 %4181, %v2691_v53   ;;  %v2665_v53 = vld [vmem:[%s6052_s18 + $0x130] sm:$0xff] }
 0xad1   : > { %2959 = vperm.xlu0 %4181, %v2723_v2   ;;  %v2666_v2 = vld [vmem:[%s6052_s18 + $0x138] sm:$0xff] }
 0xad5   : > { %2969 = vperm.xlu0 %4181, %v2725_v61   ;;  %v2667_v61 = vld [vmem:[%s6052_s18 + $0x140] sm:$0xff] }
 0xad9   : > { %3501 = vperm.xlu0 %4181, %v3498_v32   ;;  %v2668_v32 = vld [vmem:[%s6052_s18 + $0x148] sm:$0xff] }
 0xadf   : > { %v2448_v8 = vpop.permute.xlu0 %2447 }
 0xae0   : > { %v2450_v13 = vsel %vm2101_vm5, %v2445_v29, %v2448_v8  ;;  %v2641_v29 = vld [vmem:[%s6052_s18 + $0x70] sm:$0xff] }
 0xae1   : > { %4011 = vmatpush3.msk.msra.mxu1 %vm2103_vm12, %v2450_v13  ;;  %v2669_v8 = vld [vmem:[%s6052_s18 + $0x150] sm:$0xff] }
 0xae2   : > { %4013 = vmatmul.mubr.msk.f32.vlgmr.msra.gmra.mrb[28].mxu1 %vm2198_vm0, %v2451_v10  ;;  %v2670_v10 = vld [vmem:[%s6052_s18 + $0x158] sm:$0xff] }
 0xaf0   : > { %v2543_v19 = vpop.permute.xlu0 %2542 }
 0xbb5   : > { %v2534_v14 = vpop.f32.mrb[28].mxu1 }
 0xbb6   : > { %v2535_v63 = vadd.f32 %v2534_v14, %v2461_v9  ;;  %v4014_v46 = vpop.f32.mrb[29].mxu1  ;;  %v2674_v9 = vld [vmem:[%s6052_s18 + $0x178] sm:$0xff]  ;;  %v2675_v14 = vld [vmem:[%s6052_s18 + $0x180] sm:$0xff] }
 0xbb7   : > { %v5841_v46 = vpop.permute.xlu1 %2814 }
 0xbb8   : > { %4016 = vmatpush3.msk.msra.mxu0 %vm2101_vm5, %v2535_v63  ;;  %v2676_v63 = vld [vmem:[%s6052_s18 + $0x188] sm:$0xff] }
 0xbb9   : > { %4018 = vmatmul.mubr.msk.f32.vlgmr.msra.gmra.mrb[24].mxu0 %vm2545_vm15, %v2538_v49  ;;  %v5843_v49 = vpop.permute.xlu0 %2809 }
 0xbba   : > { %4022 = vmatprep.mubr.msk.f32.mxu0 %vm2977_vm2, %v2627_v6 }
 0xbbb   : > { %v2735_v6 = vpop.permute.xlu1 %2734 }
 0xbbd   : > { %v2730_v37 = vpop.permute.xlu0 %2729 }
 0xc8c   : > { %v2618_v20 = vpop.f32.mrb[24].mxu0 }
 0xc8d   : > { %v2619_v35 = vadd.f32 %v2618_v20, %v2543_v19  ;;  %v4019_v22 = vpop.f32.mrb[25].mxu0  ;;  %v5845_v19 = vpop.permute.xlu1 %2894 }
 0xc8e   : > { %v5847_v20 = vpop.permute.xlu0 %2889 }
 0xc8f   : > { %v2622_v42 = vadd.f32 %v2619_v35, %v2450_v13  ;;  %v2671_v13 = vld [vmem:[%s6052_s18 + $0x160] sm:$0xff] }
 0xc91   : > { %v2624_v43 = vrot.slane %v2622_v42, 4  ;;  %v5849_v21 = vpop.permute.xlu1 %2824 }
 0xc92   : > { %v5851_v35 = vpop.permute.xlu0 %2819 }
 0xc93   : > { %v2626_v24 = vsel %vm795_vm1, %v2275_v16, %v2624_v43  ;;  %vm3676_vm1 = vcmask 57344  }
 0xc94   : > { %4020 = vmatprep.subr.msk.mxu0 %vm3128_vm3, %v2626_v24 }
 0xc95   : > { %4021 = vmatpush3.msk.msra.mxu0 %vm3128_vm3, %v2626_v24  ;;  %v2745_v22 = vpop.permute.xlu1 %2744 }
 0xc96   : > { %4023 = vmatmul.mubr.msk.f32.vlgmr.msra.gmra.mrb[26].mxu0 %vm2977_vm2, %v2628_v52  ;;  %v2740_v42 = vpop.permute.xlu0 %2739 }
 0xc97   : > { %4025 = vmatprep.mubr.msk.f32.mxu0 %vm2977_vm2, %v2629_v51 }
 0xc99   : > { %v5853_v16 = vpop.permute.xlu1 %2904 }
 0xc9a   : > { %4026 = vmatmul.mubr.msk.f32.gmra.mrb[28].mxu0 %vm2977_vm2, %v2630_v48  ;;  %v5855_v43 = vpop.permute.xlu0 %2899 }
 0xc9b   : > { %4028 = vmatprep.mubr.msk.f32.mxu0 %vm2977_vm2, %v2631_v47 }
 0xc9d   : > { %v5857_v24 = vpop.permute.xlu1 %2834 }
 0xc9e   : > { %4029 = vmatmul.mubr.msk.f32.gmra.mrb[30].mxu0 %vm2977_vm2, %v2632_v25  ;;  %v5859_v52 = vpop.permute.xlu0 %2829 }
 0xc9f   : > { %4031 = vmatprep.mubr.msk.f32.mxu0 %vm2977_vm2, %v2633_v11 }
 0xca1   : > { %v2755_v51 = vpop.permute.xlu1 %2754 }
 0xca2   : > { %4032 = vmatmul.mubr.msk.f32.gmra.mrb[32].mxu0 %vm2977_vm2, %v2634_v4  ;;  %v2750_v48 = vpop.permute.xlu0 %2749  ;;  %v3515_v4 = vsub.s32 1, %v5628_v3 }
 0xca3   : > { %4034 = vmatprep.mubr.msk.f32.mxu0 %vm2977_vm2, %v2635_v44 }
 0xca5   : > { %v5861_v47 = vpop.permute.xlu1 %2914 }
 0xca6   : > { %4035 = vmatmul.mubr.msk.f32.gmra.mrb[34].mxu0 %vm2977_vm2, %v2636_v12  ;;  %v5863_v25 = vpop.permute.xlu0 %2909  ;;  %v5873_v12 = vld [vmem:[%s6054_s20] sm:$0xf] }
 0xca7   : > { %4037 = vmatprep.mubr.msk.f32.mxu0 %vm2977_vm2, %v2637_v18  ;;  %v3516_v18 = vrot.slane %v5873_v12, %v3515_v4 }
 0xca9   : > { %v5865_v11 = vpop.permute.xlu1 %2844  ;;  %3594 = vmatprep.mubr.f32.mxu1 %v3516_v18 }
 0xcaa   : > { %4038 = vmatmul.mubr.msk.f32.gmra.mrb[36].mxu0 %vm2977_vm2, %v2638_v23  ;;  %v5868_v44 = vpop.permute.xlu0 %2839  ;;  %v6072_v23 = vmov 0.0|0.0  }
 0xcab   : > { %4040 = vmatprep.mubr.msk.f32.mxu0 %vm2977_vm2, %v2639_v27  ;;  %4129 = vmatprep.subr.bf16.mxu0 %v6072_v23 }
 0xcad   : > { %v2765_v27 = vpop.permute.xlu1 %2764 }
 0xcae   : > { %4041 = vmatmul.mubr.msk.f32.gmra.mrb[38].mxu0 %vm2977_vm2, %v2640_v28  ;;  %v2760_v28 = vpop.permute.xlu0 %2759 }
 0xcaf   : > { %4043 = vmatprep.mubr.msk.f32.mxu0 %vm2977_vm2, %v2641_v29 }
 0xcb1   : > { %v5877_v29 = vpop.permute.xlu1 %2924 }
 0xcb2   : > { %4044 = vmatmul.mubr.msk.f32.gmra.mrb[40].mxu0 %vm2977_vm2, %v2642_v1  ;;  %v5879_v1 = vpop.permute.xlu0 %2919 }
 0xcb3   : > { %4046 = vmatprep.mubr.msk.f32.mxu0 %vm2977_vm2, %v2643_v62 }
 0xcb5   : > { %v5881_v62 = vpop.permute.xlu1 %2854 }
 0xcb6   : > { %4047 = vmatmul.mubr.msk.f32.gmra.mrb[42].mxu0 %vm2977_vm2, %v2644_v33  ;;  %v5883_v33 = vpop.permute.xlu0 %2849 }
 0xcb7   : > { %4049 = vmatprep.mubr.msk.f32.mxu0 %vm2977_vm2, %v2645_v30 }
 0xcb9   : > { %v2775_v30 = vpop.permute.xlu1 %2774 }
 0xcba   : > { %4050 = vmatmul.mubr.msk.f32.gmra.mrb[44].mxu0 %vm2977_vm2, %v2646_v31  ;;  %v2770_v31 = vpop.permute.xlu0 %2769 }
 0xcbb   : > { %4052 = vmatprep.mubr.msk.f32.mxu0 %vm2977_vm2, %v2647_v34 }
 0xcbd   : > { %v5885_v34 = vpop.permute.xlu1 %2934 }
 0xcbe   : > { %4053 = vmatmul.mubr.msk.f32.gmra.mrb[46].mxu0 %vm2977_vm2, %v2648_v36  ;;  %v5887_v36 = vpop.permute.xlu0 %2929 }
 0xcbf   : > { %4055 = vmatprep.mubr.msk.f32.mxu0 %vm2977_vm2, %v2649_v26  ;;  %v3523_v26 = vsub.s32 3, %v5628_v3 }
 0xcc2   : > { %4056 = vmatmul.mubr.msk.f32.gmra.mrb[48].mxu0 %vm2977_vm2, %v2650_v38  ;;  %v5890_v38 = vpop.permute.xlu1 %2864 }
 0xcc3   : > { %4058 = vmatprep.mubr.msk.f32.mxu0 %vm2977_vm2, %v2651_v39  ;;  %v5892_v39 = vpop.permute.xlu0 %2859 }
 0xcc6   : > { %4059 = vmatmul.mubr.msk.f32.gmra.mrb[50].mxu0 %vm2977_vm2, %v2652_v40  ;;  %v3524_v40 = vrot.slane %v5873_v12, %v3523_v26 }
 0xcc7   : > { %4061 = vmatprep.mubr.msk.f32.mxu0 %vm2977_vm2, %v2653_v41  ;;  %v2785_v41 = vpop.permute.xlu1 %2784 }
 0xcca   : > { %4062 = vmatmul.mubr.msk.f32.gmra.mrb[52].mxu0 %vm2977_vm2, %v2654_v7  ;;  %v2780_v7 = vpop.permute.xlu0 %2779 }
 0xccb   : > { %4064 = vmatprep.mubr.msk.f32.mxu0 %vm2977_vm2, %v2655_v45  ;;  %v5896_v45 = vpop.permute.xlu1 %2944 }
 0xcce   : > { %4065 = vmatmul.mubr.msk.f32.gmra.mrb[54].mxu0 %vm2977_vm2, %v2656_v50  ;;  %v5898_v50 = vpop.permute.xlu0 %2939 }
 0xccf   : > { %4067 = vmatprep.mubr.msk.f32.mxu0 %vm2977_vm2, %v2657_v0 }
 0xcd2   : > { %4068 = vmatmul.mubr.msk.f32.gmra.mrb[56].mxu0 %vm2977_vm2, %v2658_v55 }
 0xcd3   : > { %4070 = vmatprep.mubr.msk.f32.mxu0 %vm2977_vm2, %v2659_v56 }
 0xcd6   : > { %4071 = vmatmul.mubr.msk.f32.gmra.mrb[58].mxu0 %vm2977_vm2, %v2660_v57 }
 0xcd7   : > { %4073 = vmatprep.mubr.msk.f32.mxu0 %vm2977_vm2, %v2661_v58  ;;  %v5900_v58 = vpop.permute.xlu1 %2874 }
 0xcda   : > { %4074 = vmatmul.mubr.msk.f32.gmra.mrb[60].mxu0 %vm2977_vm2, %v2662_v59 }
 0xcdb   : > { %4076 = vmatprep.mubr.msk.f32.mxu0 %vm2977_vm2, %v2663_v54  ;;  %v5902_v54 = vpop.permute.xlu0 %2869 }
 0xcde   : > { %4077 = vmatmul.mubr.msk.f32.gmra.mrb[62].mxu0 %vm2977_vm2, %v2664_v60 }
 0xcdf   : > { %4079 = vmatprep.mubr.msk.f32.mxu0 %vm2977_vm2, %v2665_v53 }
 0xce2   : > { %4080 = vmatmul.mubr.msk.f32.gmra.mrb[64].mxu0 %vm2977_vm2, %v2666_v2 }
 0xce3   : > { %4082 = vmatprep.mubr.msk.f32.mxu0 %vm2977_vm2, %v2667_v61 }
 0xce6   : > { %4083 = vmatmul.mubr.msk.f32.gmra.mrb[66].mxu0 %vm2977_vm2, %v2668_v32 }
 0xce7   : > { %4085 = vmatprep.mubr.msk.f32.mxu0 %vm2977_vm2, %v2669_v8 }
 0xcea   : > { %4086 = vmatmul.mubr.msk.f32.gmra.mrb[68].mxu0 %vm2977_vm2, %v2670_v10  ;;  %v2795_v10 = vpop.permute.xlu1 %2794 }
 0xceb   : > { %4088 = vmatprep.mubr.msk.f32.mxu0 %vm2977_vm2, %v2671_v13 }
 0xcee   : > { %4089 = vmatmul.mubr.msk.f32.gmra.mrb[70].mxu0 %vm2977_vm2, %v2672_v17  ;;  %v2790_v17 = vpop.permute.xlu0 %2789 }
 0xcef   : > { %4091 = vmatprep.mubr.msk.f32.mxu0 %vm2977_vm2, %v2673_v15 }
 0xcf2   : > { %4092 = vmatmul.mubr.msk.f32.gmra.mrb[72].mxu0 %vm2977_vm2, %v2674_v9  ;;  %v5914_v4 = vpop.permute.xlu0 %2949 }
 0xcf3   : > { %4094 = vmatprep.mubr.msk.f32.mxu0 %vm2977_vm2, %v2675_v14 }
 0xcf6   : > { %4095 = vmatmul.mubr.msk.f32.gmra.mrb[74].mxu0 %vm2977_vm2, %v2676_v63 }
 0xcf7   : > { %3837 = vmatprep.mubr.msk.f32.mxu0 %vm1052_vm9, %v3524_v40 }
 0xd69   : > { %v4024_v0 = vpop.f32.mrb[26].mxu0 }
 0xd6a   : > { %v3204_v55 = vadd.f32 %v4024_v0, %v2735_v6  ;;  %v3198_v56 = vpop.f32.mrb[27].mxu0 }
 0xd6b   : > { %v3199_v57 = vadd.f32 %v3198_v56, %v2730_v37 }
 0xd6c   : > { %4359 = vtanh.f32 %v3204_v55 }
 0xd6d   : > { %4361 = vtanh.f32 %v3199_v57  ;;  %v4027_v59 = vpop.f32.mrb[28].mxu0 }
 0xd6e   : > { %v3214_v60 = vadd.f32 %v4027_v59, %v2745_v22  ;;  %v3208_v53 = vpop.f32.mrb[29].mxu0 }
 0xd6f   : > { %v3209_v2 = vadd.f32 %v3208_v53, %v2740_v42  ;;  %v5910_v42 = vpop.permute.xlu1 %2954 }
 0xd70   : > { %4363 = vtanh.f32 %v3214_v60 }
 0xd71   : > { %4365 = vtanh.f32 %v3209_v2  ;;  %v4030_v61 = vpop.f32.mrb[30].mxu0 }
 0xd72   : > { %v3224_v32 = vadd.f32 %v4030_v61, %v2755_v51  ;;  %v3218_v8 = vpop.f32.mrb[31].mxu0 }
 0xd73   : > { %v3219_v13 = vadd.f32 %v3218_v8, %v2750_v48  ;;  %v5924_v60 = vpop.permute.xlu1 %2884 }
 0xd74   : > { %4367 = vtanh.f32 %v3224_v32 }
 0xd75   : > { %4369 = vtanh.f32 %v3219_v13  ;;  %v4033_v15 = vpop.f32.mrb[32].mxu0 }
 0xd76   : > { %v5904_v9 = vpop.eup %4359  ;;  %v3234_v14 = vadd.f32 %v4033_v15, %v2765_v27  ;;  %v3228_v63 = vpop.f32.mrb[33].mxu0 }
 0xd77   : > { %v5906_v6 = vpop.eup %4361  ;;  %v3229_v37 = vadd.f32 %v3228_v63, %v2760_v28 }
 0xd78   : > { %4371 = vtanh.f32 %v3234_v14  ;;  %v4099_v22 = vpack.c.bf16 %v5904_v9, %v5906_v6 }
 0xd79   : > { %4373 = vtanh.f32 %v3229_v37  ;;  %v4036_v51 = vpop.f32.mrb[34].mxu0 }
 0xd7a   : > { %v5912_v48 = vpop.eup %4363  ;;  %v3244_v18 = vadd.f32 %v4036_v51, %v2775_v30  ;;  %v3238_v26 = vpop.f32.mrb[35].mxu0 }
 0xd7b   : > { %v5916_v40 = vpop.eup %4365  ;;  %v3239_v27 = vadd.f32 %v3238_v26, %v2770_v31  ;;  %v5926_v30 = vpop.permute.xlu0 %2879 }
 0xd7c   : > { %4375 = vtanh.f32 %v3244_v18  ;;  %v4103_v28 = vpack.c.bf16 %v5912_v48, %v5916_v40 }
 0xd7d   : > { %4377 = vtanh.f32 %v3239_v27  ;;  %v4039_v0 = vpop.f32.mrb[36].mxu0 }
 0xd7e   : > { %v5920_v55 = vpop.eup %4367  ;;  %v3254_v56 = vadd.f32 %v4039_v0, %v2785_v41  ;;  %v3248_v57 = vpop.f32.mrb[37].mxu0 }
 0xd7f   : > { %v5922_v59 = vpop.eup %4369  ;;  %v3249_v53 = vadd.f32 %v3248_v57, %v2780_v7  ;;  %v2805_v7 = vpop.permute.xlu1 %2804 }
 0xd80   : > { %4379 = vtanh.f32 %v3254_v56  ;;  %v4107_v31 = vpack.c.bf16 %v5920_v55, %v5922_v59  ;;  %v2800_v37 = vpop.permute.xlu0 %2799 }
 0xd81   : > { %4381 = vtanh.f32 %v3249_v53  ;;  %v4042_v2 = vpop.f32.mrb[38].mxu0 }
 0xd82   : > { %v5930_v61 = vpop.eup %4371  ;;  %v3264_v32 = vadd.f32 %v4042_v2, %v2795_v10  ;;  %v3258_v8 = vpop.f32.mrb[39].mxu0 }
 0xd83   : > { %v5932_v13 = vpop.eup %4373  ;;  %v3259_v41 = vadd.f32 %v3258_v8, %v2790_v17 }
 0xd84   : > { %4383 = vtanh.f32 %v3264_v32  ;;  %v4111_v15 = vpack.c.bf16 %v5930_v61, %v5932_v13 }
 0xd85   : > { %4385 = vtanh.f32 %v3259_v41  ;;  %v4045_v14 = vpop.f32.mrb[40].mxu0 }
 0xd86   : > { %v5936_v63 = vpop.eup %4375  ;;  %v3274_v51 = vadd.f32 %v4045_v14, %v2805_v7  ;;  %v3268_v18 = vpop.f32.mrb[41].mxu0 }
 0xd87   : > { %v5938_v26 = vpop.eup %4377  ;;  %v3269_v27 = vadd.f32 %v3268_v18, %v2800_v37 }
 0xd88   : > { %4387 = vtanh.f32 %v3274_v51  ;;  %v4115_v10 = vpack.c.bf16 %v5936_v63, %v5938_v26 }
 0xd89   : > { %4389 = vtanh.f32 %v3269_v27  ;;  %v4048_v17 = vpop.f32.mrb[42].mxu0 }
 0xd8a   : > { %v5942_v0 = vpop.eup %4379  ;;  %v3284_v56 = vadd.f32 %v4048_v17, %v5841_v46  ;;  %v3278_v57 = vpop.f32.mrb[43].mxu0 }
 0xd8b   : > { %v5945_v53 = vpop.eup %4381  ;;  %v3279_v2 = vadd.f32 %v3278_v57, %v5843_v49 }
 0xd8c   : > { %4391 = vtanh.f32 %v3284_v56  ;;  %v4119_v32 = vpack.c.bf16 %v5942_v0, %v5945_v53 }
 0xd8d   : > { %4393 = vtanh.f32 %v3279_v2  ;;  %v4051_v8 = vpop.f32.mrb[44].mxu0 }
 0xd8e   : > { %v5950_v41 = vpop.eup %4383  ;;  %v3294_v7 = vadd.f32 %v4051_v8, %v5849_v21  ;;  %v3288_v14 = vpop.f32.mrb[45].mxu0 }
 0xd8f   : > { %v5953_v37 = vpop.eup %4385  ;;  %v3289_v46 = vadd.f32 %v3288_v14, %v5851_v35 }
 0xd90   : > { %4395 = vtanh.f32 %v3294_v7  ;;  %v4123_v51 = vpack.c.bf16 %v5950_v41, %v5953_v37 }
 0xd91   : > { %4397 = vtanh.f32 %v3289_v46  ;;  %v4054_v49 = vpop.f32.mrb[46].mxu0 }
 0xd92   : > { %v5958_v18 = vpop.eup %4387  ;;  %v3304_v27 = vadd.f32 %v4054_v49, %v5857_v24  ;;  %v3298_v17 = vpop.f32.mrb[47].mxu0 }
 0xd93   : > { %v5961_v56 = vpop.eup %4389  ;;  %v3299_v21 = vadd.f32 %v3298_v17, %v5859_v52 }
 0xd94   : > { %4399 = vtanh.f32 %v3304_v27  ;;  %v4127_v57 = vpack.c.bf16 %v5958_v18, %v5961_v56 }
 0xd95   : > { %4401 = vtanh.f32 %v3299_v21  ;;  %v4057_v35 = vpop.f32.mrb[48].mxu0 }
 0xd96   : > { %v4392_v2 = vpop.eup %4391  ;;  %v3314_v8 = vadd.f32 %v4057_v35, %v5865_v11  ;;  %v3308_v7 = vpop.f32.mrb[49].mxu0 }
 0xd97   : > { %v4394_v14 = vpop.eup %4393  ;;  %v3309_v46 = vadd.f32 %v3308_v7, %v5868_v44 }
 0xd98   : > { %4403 = vtanh.f32 %v3314_v8  ;;  %v4097_v24 = vpack.c.bf16 %v4392_v2, %v4394_v14 }
 0xd99   : > { %4405 = vtanh.f32 %v3309_v46  ;;  %v4060_v49 = vpop.f32.mrb[50].mxu0 }
 0xd9a   : > { %v4396_v23 = vpop.eup %4395  ;;  %v3324_v52 = vadd.f32 %v4060_v49, %v5881_v62  ;;  %v3318_v27 = vpop.f32.mrb[51].mxu0  ;;  %4098 = vmatprep.subr.bf16.mxu1 %v4097_v24 }
 0xd9b   : > { %v4398_v17 = vpop.eup %4397  ;;  %v3319_v21 = vadd.f32 %v3318_v27, %v5883_v33  ;;  %4100 = vmatpush3.bf16.msra.mxu1 %v4099_v22 }
 0xd9c   : > { %4407 = vtanh.f32 %v3324_v52  ;;  %v4101_v11 = vpack.c.bf16 %v4396_v23, %v4398_v17 }
 0xd9d   : > { %4409 = vtanh.f32 %v3319_v21  ;;  %v4063_v44 = vpop.f32.mrb[52].mxu0 }
 0xd9e   : > { %v4400_v35 = vpop.eup %4399  ;;  %v3334_v2 = vadd.f32 %v4063_v44, %v5890_v38  ;;  %v3328_v8 = vpop.f32.mrb[53].mxu0  ;;  %4102 = vmatprep.subr.bf16.mxu1 %v4101_v11 }
 0xd9f   : > { %v4402_v7 = vpop.eup %4401  ;;  %v3329_v62 = vadd.f32 %v3328_v8, %v5892_v39  ;;  %4104 = vmatpush3.bf16.msra.mxu1 %v4103_v28 }
 0xda0   : > { %4411 = vtanh.f32 %v3334_v2  ;;  %v4105_v33 = vpack.c.bf16 %v4400_v35, %v4402_v7 }
 0xda1   : > { %4413 = vtanh.f32 %v3329_v62  ;;  %v4066_v9 = vpop.f32.mrb[54].mxu0  ;;  %v6093_v62 = vmov 0.0|0.0  }
 0xda2   : > { %v4404_v6 = vpop.eup %4403  ;;  %v3344_v23 = vadd.f32 %v4066_v9, %v5900_v58  ;;  %v3338_v22 = vpop.f32.mrb[55].mxu0  ;;  %4106 = vmatprep.subr.bf16.mxu1 %v4105_v33 }
 0xda3   : > { %v4406_v14 = vpop.eup %4405  ;;  %v3339_v38 = vadd.f32 %v3338_v22, %v5902_v54  ;;  %4108 = vmatpush3.bf16.msra.mxu1 %v4107_v31 }
 0xda4   : > { %4415 = vtanh.f32 %v3344_v23  ;;  %v4109_v39 = vpack.c.bf16 %v4404_v6, %v4406_v14 }
 0xda5   : > { %4417 = vtanh.f32 %v3339_v38  ;;  %v4069_v48 = vpop.f32.mrb[56].mxu0 }
 0xda6   : > { %v4408_v40 = vpop.eup %4407  ;;  %v3354_v28 = vadd.f32 %v4069_v48, %v5924_v60  ;;  %v3348_v46 = vpop.f32.mrb[57].mxu0  ;;  %4110 = vmatprep.subr.bf16.mxu1 %v4109_v39 }
 0xda7   : > { %v4410_v24 = vpop.eup %4409  ;;  %v3349_v58 = vadd.f32 %v3348_v46, %v5926_v30  ;;  %4112 = vmatpush3.bf16.msra.mxu1 %v4111_v15  ;;  %v2965_v39 = vpop.permute.xlu1 %2964 }
 0xda8   : > { %4419 = vtanh.f32 %v3354_v28  ;;  %v4113_v54 = vpack.c.bf16 %v4408_v40, %v4410_v24  ;;  %v2960_v48 = vpop.permute.xlu0 %2959 }
 0xda9   : > { %4421 = vtanh.f32 %v3349_v58  ;;  %v4072_v55 = vpop.f32.mrb[58].mxu0 }
 0xdaa   : > { %v4412_v59 = vpop.eup %4411  ;;  %v3364_v31 = vadd.f32 %v4072_v55, %v5845_v19  ;;  %v3358_v49 = vpop.f32.mrb[59].mxu0  ;;  %4114 = vmatprep.subr.bf16.mxu1 %v4113_v54 }
 0xdab   : > { %v4414_v52 = vpop.eup %4413  ;;  %v3359_v60 = vadd.f32 %v3358_v49, %v5847_v20  ;;  %4116 = vmatpush3.bf16.msra.mxu1 %v4115_v10  ;;  %v2975_v55 = vpop.permute.xlu1 %2974 }
 0xdac   : > { %4423 = vtanh.f32 %v3364_v31  ;;  %v4117_v30 = vpack.c.bf16 %v4412_v59, %v4414_v52  ;;  %v2970_v31 = vpop.permute.xlu0 %2969 }
 0xdad   : > { %4425 = vtanh.f32 %v3359_v60  ;;  %v4075_v61 = vpop.f32.mrb[60].mxu0 }
 0xdae   : > { %v4416_v13 = vpop.eup %4415  ;;  %v3374_v15 = vadd.f32 %v4075_v61, %v5853_v16  ;;  %v3368_v27 = vpop.f32.mrb[61].mxu0  ;;  %4118 = vmatprep.subr.bf16.mxu1 %v4117_v30 }
 0xdaf   : > { %v4418_v17 = vpop.eup %4417  ;;  %v3369_v19 = vadd.f32 %v3368_v27, %v5855_v43  ;;  %4120 = vmatpush3.bf16.msra.mxu1 %v4119_v32 }
 0xdb0   : > { %4427 = vtanh.f32 %v3374_v15  ;;  %v4121_v20 = vpack.c.bf16 %v4416_v13, %v4418_v17 }
 0xdb1   : > { %4429 = vtanh.f32 %v3369_v19  ;;  %v4078_v63 = vpop.f32.mrb[62].mxu0 }
 0xdb2   : > { %v4420_v26 = vpop.eup %4419  ;;  %v3384_v10 = vadd.f32 %v4078_v63, %v5861_v47  ;;  %v3378_v21 = vpop.f32.mrb[63].mxu0  ;;  %4122 = vmatprep.subr.bf16.mxu1 %v4121_v20  ;;  %v3512_v47 = vrot.slane %v5873_v12, %v5631_v5  ;;  %v3519_v63 = vsub.s32 2, %v5628_v3 }
 0xdb3   : > { %v4422_v11 = vpop.eup %4421  ;;  %v3379_v16 = vadd.f32 %v3378_v21, %v5863_v25  ;;  %4124 = vmatpush3.bf16.msra.mxu1 %v4123_v51 }
 0xdb4   : > { %4431 = vtanh.f32 %v3384_v10  ;;  %v4125_v43 = vpack.c.bf16 %v4420_v26, %v4422_v11  ;;  %v3520_v11 = vrot.slane %v5873_v12, %v3519_v63 }
 0xdb5   : > { %4433 = vtanh.f32 %v3379_v16  ;;  %v4081_v0 = vpop.f32.mrb[64].mxu0 }
 0xdb6   : > { %v4424_v53 = vpop.eup %4423  ;;  %v3394_v32 = vadd.f32 %v4081_v0, %v5877_v29  ;;  %v3388_v44 = vpop.f32.mrb[65].mxu0  ;;  %4126 = vmatprep.subr.bf16.mxu1 %v4125_v43 }
 0xdb7   : > { %v4426_v35 = vpop.eup %4425  ;;  %v3389_v2 = vadd.f32 %v3388_v44, %v5879_v1  ;;  %4128 = vmatpush3.bf16.msra.mxu1 %v4127_v57 }
 0xdb8   : > { %4435 = vtanh.f32 %v3394_v32  ;;  %v4130_v25 = vpack.c.bf16 %v4424_v53, %v4426_v35  ;;  %v3502_v53 = vpop.permute.xlu0 %3501 }
 0xdb9   : > { %4437 = vtanh.f32 %v3389_v2  ;;  %v4084_v41 = vpop.f32.mrb[66].mxu0  ;;  %v3507_v32 = vrot.slane %v3502_v53, %v5631_v5 }
 0xdba   : > { %v4428_v37 = vpop.eup %4427  ;;  %v3404_v51 = vadd.f32 %v4084_v41, %v5885_v34  ;;  %v3398_v29 = vpop.f32.mrb[67].mxu0  ;;  %3595 = vmatmul.mubr.f32.vlgmr.msra.gmra.mrb[30].mxu1 %v3512_v47  ;;  %4131 = vmatpush1.bf16.msra.mxu0 %v4130_v25 }
 0xdbb   : > { %v4430_v8 = vpop.eup %4429  ;;  %v3399_v7 = vadd.f32 %v3398_v29, %v5887_v36  ;;  %4132 = vmatprep.subr.bf16.mxu0 %v6093_v62 }
 0xdbc   : > { %4439 = vtanh.f32 %v3404_v51  ;;  %v4133_v1 = vpack.c.bf16 %v4428_v37, %v4430_v8 }
 0xdbd   : > { %4441 = vtanh.f32 %v3399_v7  ;;  %v4087_v18 = vpop.f32.mrb[68].mxu0 }
 0xdbe   : > { %v4432_v56 = vpop.eup %4431  ;;  %v3414_v57 = vadd.f32 %v4087_v18, %v5896_v45  ;;  %v3408_v33 = vpop.f32.mrb[69].mxu0  ;;  %4134 = vmatpush1.bf16.msra.mxu0 %v4133_v1 }
 0xdbf   : > { %v4434_v9 = vpop.eup %4433  ;;  %v3409_v34 = vadd.f32 %v3408_v33, %v5898_v50  ;;  %4135 = vmatprep.subr.bf16.mxu0 %v6093_v62 }
 0xdc0   : > { %4443 = vtanh.f32 %v3414_v57  ;;  %v4136_v6 = vpack.c.bf16 %v4432_v56, %v4434_v9 }
 0xdc1   : > { %4445 = vtanh.f32 %v3409_v34  ;;  %v4090_v36 = vpop.f32.mrb[70].mxu0 }
 0xdc2   : > { %v4436_v23 = vpop.eup %4435  ;;  %v3424_v22 = vadd.f32 %v4090_v36, %v5910_v42  ;;  %v3418_v14 = vpop.f32.mrb[71].mxu0  ;;  %4137 = vmatpush1.bf16.msra.mxu0 %v4136_v6 }
 0xdc3   : > { %v4438_v38 = vpop.eup %4437  ;;  %v3419_v45 = vadd.f32 %v3418_v14, %v5914_v4  ;;  %4138 = vmatprep.subr.bf16.mxu0 %v6093_v62 }
 0xdc4   : > { %4447 = vtanh.f32 %v3424_v22  ;;  %v4139_v50 = vpack.c.bf16 %v4436_v23, %v4438_v38 }
 0xdc5   : > { %4449 = vtanh.f32 %v3419_v45  ;;  %v4093_v40 = vpop.f32.mrb[72].mxu0 }
 0xdc6   : > { %v4440_v28 = vpop.eup %4439  ;;  %v3434_v46 = vadd.f32 %v4093_v40, %v2965_v39  ;;  %v3428_v24 = vpop.f32.mrb[73].mxu0  ;;  %4140 = vmatpush1.bf16.msra.mxu0 %v4139_v50 }
 0xdc7   : > { %v4442_v58 = vpop.eup %4441  ;;  %v3429_v54 = vadd.f32 %v3428_v24, %v2960_v48  ;;  %4141 = vmatprep.subr.bf16.mxu0 %v6093_v62 }
 0xdc8   : > { %4451 = vtanh.f32 %v3434_v46  ;;  %v4142_v42 = vpack.c.bf16 %v4440_v28, %v4442_v58 }
 0xdc9   : > { %4453 = vtanh.f32 %v3429_v54  ;;  %v4096_v4 = vpop.f32.mrb[74].mxu0 }
 0xdca   : > { %v4444_v59 = vpop.eup %4443  ;;  %v3444_v49 = vadd.f32 %v4096_v4, %v2975_v55  ;;  %v3438_v52 = vpop.f32.mrb[75].mxu0  ;;  %4143 = vmatpush1.bf16.msra.mxu0 %v4142_v42 }
 0xdcb   : > { %v4446_v60 = vpop.eup %4445  ;;  %v3439_v30 = vadd.f32 %v3438_v52, %v2970_v31  ;;  %4144 = vmatprep.subr.bf16.mxu0 %v6093_v62 }
 0xdcc   : > { %4455 = vtanh.f32 %v3444_v49  ;;  %v4145_v61 = vpack.c.bf16 %v4444_v59, %v4446_v60 }
 0xdcd   : > { %4457 = vtanh.f32 %v3439_v30 }
 0xdce   : > { %v4448_v13 = vpop.eup %4447  ;;  %4146 = vmatpush1.bf16.msra.mxu0 %v4145_v61 }
 0xdcf   : > { %v4450_v15 = vpop.eup %4449  ;;  %4147 = vmatprep.subr.bf16.mxu0 %v6093_v62 }
 0xdd0   : > { %v4148_v27 = vpack.c.bf16 %v4448_v13, %v4450_v15 }
 0xdd2   : > { %v4452_v17 = vpop.eup %4451  ;;  %4149 = vmatpush1.bf16.msra.mxu0 %v4148_v27 }
 0xdd3   : > { %v4454_v19 = vpop.eup %4453  ;;  %4150 = vmatprep.subr.bf16.mxu0 %v6093_v62 }
 0xdd4   : > { %v4151_v20 = vpack.c.bf16 %v4452_v17, %v4454_v19 }
 0xdd6   : > { %v4456_v26 = vpop.eup %4455  ;;  %4152 = vmatpush1.bf16.msra.mxu0 %v4151_v20 }
 0xdd7   : > { %v4458_v10 = vpop.eup %4457  ;;  %4153 = vmatprep.subr.bf16.mxu0 %v6093_v62 }
 0xdd8   : > { %v4154_v21 = vpack.c.bf16 %v4456_v26, %v4458_v10 }
 0xdda   : > { %4155 = vmatpush1.bf16.msra.mxu0 %v4154_v21 }
 0xddd   : > { %3665 = vmatmul.mubr.f32.vlgmr.msra.gmra.mrb[76].mxu0 %v3520_v11 }
 0xe8d   : > { %v3981_v16 = vpop.f32.mrb[30].mxu1 }
 0xe8e   : > { %v3982_v43 = vpop.f32.mrb[31].mxu1 }
 0xe8f   : > { %v3983_v0 = vadd.f32 %v3982_v43, %v3981_v16 }
 0xe91   : > { %v3597_v44 = vadd.f32 %v3983_v0, %v3507_v32 }
 0xeb0   : > { %v3666_v47 = vpop.f32.mrb[76].mxu0 }
 0xeb1   : > { %v3667_v3 = vadd.f32 %v3666_v47, %v3597_v44  ;;  %v3668_v35 = vpop.f32.mrb[77].mxu0 }
 0xeb3   : > { %v3838_v2 = vmul.f32 -1.442695, %v3667_v3 }
 0xeb5   : > { %4459 = vpow2.f32 %v3838_v2 }
 0xebf   : > { %v4460_v25 = vpop.eup %4459 }
 0xec0   : > { %v3673_v41 = vadd.f32 1.0, %v4460_v25 }
 0xec2   : > { %4461 = vrcp.f32 %v3673_v41 }
 0xecc   : > { %v4462_v12 = vpop.eup %4461 }
 0xecd   : > { %3677 = vst.msk [vmem:[%s703_s5] sm:$0x1] %vm3676_vm1, %v4462_v12 }
 0xece PF: > { %s36_s4 = sadd.s32 1, %s4469_s4  }
 0xecf   : > { %p33_p4 = scmp.ge.s32.totalorder %s36_s4, 4  }
 0xed1   :  { %35 = sbr.rel (!%p33_p4) target bundleno = 8 (0x8), region = 141 }

</bundles_post_ra>
